<compile_context>
chip_gen: v5e
topology: v5e:2x2
jax: 0.10.0
libtpu: 0.0.40
codegen_flags: <defaults>
</compile_context>

<pallas_src>
import math

import jax
import jax.numpy as jnp
import numpy as np
from jax.experimental import pallas as pl
from jax.experimental.pallas import tpu as pltpu


def _round_up(x, m):
    return ((x + m - 1) // m) * m


# ----------------------------------------------------------------------------
# Pallas kernel
# ----------------------------------------------------------------------------
def _make_kernel(llen, tb, nf_pad):
    def kernel(lhs_ref, cw_ref, cbm_ref, w1_ref, b1_ref, w2_ref, b2_ref,
               cmask_ref, o_ref):
        # Fused conv over all branches: one MXU matmul on the pre-im2col'd LHS.
        conv = jnp.dot(lhs_ref[...], cw_ref[...],
                       preferred_element_type=jnp.float32)       # (TB*llen, NFp) f32

        # Precomputed table fuses conv bias add + (-inf) time-validity mask.
        conv = conv.reshape(tb, llen, nf_pad) + cbm_ref[...][None]

        pooled = jnp.max(conv, axis=1)                            # (TB, NFp)  max_pool2d over time
        feat = jnp.maximum(pooled, 0.0)                           # relu (after pool, as in module)

        # TODO(synk): F.dropout(p=0.2, training=True) is stochastic; treated as identity (inference).
        h = jnp.dot(feat.astype(jnp.bfloat16), w1_ref[...],
                    preferred_element_type=jnp.float32) + b1_ref[...]
        h = jnp.maximum(h, 0.0)                                   # relu after fc1
        z = jnp.dot(h.astype(jnp.bfloat16), w2_ref[...],
                    preferred_element_type=jnp.float32) + b2_ref[...]
        z = jnp.maximum(z, 0.0)                                   # relu after fc2
        z = z + cmask_ref[...]                                    # -inf on padded class columns

        # log_softmax over the real classes; single lane-dense full-block store.
        m = jnp.max(z, axis=1, keepdims=True)
        e = jnp.exp(z - m)
        lse = jnp.log(jnp.sum(e, axis=1, keepdims=True))
        o_ref[...] = (z - m - lse).astype(o_ref.dtype)

    return kernel


# ----------------------------------------------------------------------------
# Wrapper: parameter plumbing / padding (plain JAX) + pallas_call
# ----------------------------------------------------------------------------
def cnn_txt_net_forward(x_nchw, params, filter_shp, tb=128):
    B, C, llen, word_len = x_nchw.shape
    assert C == 1
    filter_shp = tuple(int(s) for s in filter_shp)
    n_branch = len(filter_shp)
    max_shp = max(filter_shp)
    assert llen >= max_shp
    F = params["convs"][0][0].shape[0]
    NF = n_branch * F
    K = max_shp * word_len

    w1, b1 = params["fc1"]                    # (h1, NF), (h1,)
    w2, b2 = params["fc2"]                    # (h2, h1), (h2,)
    h1, h2 = w1.shape[0], w2.shape[0]

    # Lane-dense padded sizes (multiples of 128 everywhere the MXU/DMA sees).
    K_pad = _round_up(K, 128)
    NF_pad = _round_up(NF, 128)
    h1_pad = _round_up(h1, 128)
    h2_pad = _round_up(h2, 128)

    TB = tb                                   # batch tile; M = TB*llen for the conv matmul
    B_pad = _round_up(B, TB)

    # ---- conv weights: (F,1,shp,wl) -> (shp*wl, F), zero-pad K, fuse branches along N ----
    w_cols = []
    for (w, _), shp in zip(params["convs"], filter_shp):
        w2d = jnp.transpose(w[:, 0].reshape(F, shp * word_len))        # (shp*wl, F)
        w2d = jnp.pad(w2d, ((0, K_pad - shp * word_len), (0, 0)))
        w_cols.append(w2d)
    conv_w = jnp.concatenate(w_cols, axis=1)                           # (K_pad, NF)
    conv_w = jnp.pad(conv_w, ((0, 0), (0, NF_pad - NF))).astype(jnp.bfloat16)

    # ---- fused conv-bias + time-validity table: bias[j] where t valid, else -inf ----
    thr = np.zeros((NF_pad,), np.float32)
    for i, shp in enumerate(filter_shp):
        thr[i * F:(i + 1) * F] = llen - shp + 1
    thr[NF:] = llen                                    # padded feature cols "valid" (their conv == 0)
    valid = np.arange(llen)[:, None] < thr[None, :]    # (llen, NF_pad), static
    conv_b = jnp.concatenate([b for (_, b) in params["convs"]])
    conv_b = jnp.pad(conv_b, (0, NF_pad - NF)).astype(jnp.float32)
    cbm = jnp.where(jnp.asarray(valid), conv_b[None, :], -jnp.inf)     # (llen, NF_pad) f32

    # ---- fc1: permute cols from torch-interleaved (f*nb+branch) to branch-major (branch*F+f) ----
    perm = np.arange(NF).reshape(F, n_branch).T.reshape(-1)
    fc1_w = jnp.transpose(w1[:, perm])                                 # (NF, h1)
    fc1_w = jnp.pad(fc1_w, ((0, NF_pad - NF), (0, h1_pad - h1))).astype(jnp.bfloat16)
    fc1_b = jnp.pad(b1, (0, h1_pad - h1)).reshape(1, h1_pad).astype(jnp.float32)
    fc2_w = jnp.pad(jnp.transpose(w2),
                    ((0, h1_pad - h1), (0, h2_pad - h2))).astype(jnp.bfloat16)
    fc2_b = jnp.pad(b2, (0, h2_pad - h2)).reshape(1, h2_pad).astype(jnp.float32)

    # ---- class mask: -inf on padded class cols so log_softmax normalizes over the real h2 ----
    cmask = jnp.where(jnp.arange(h2_pad) < h2, 0.0, -jnp.inf
                      ).reshape(1, h2_pad).astype(jnp.float32)

    # ---- im2col LHS prebuilt lane-dense in the wrapper: (B_pad*llen, K_pad) bf16 ----
    x = x_nchw[:, 0, :, :]
    x = jnp.pad(x, ((0, B_pad - B), (0, max_shp - 1), (0, 0)))         # zero rows pad the time axis
    lhs = jnp.concatenate([x[:, r:r + llen, :] for r in range(max_shp)], axis=-1)
    lhs = lhs.reshape(B_pad * llen, K)
    lhs = jnp.pad(lhs, ((0, 0), (0, K_pad - K))).astype(jnp.bfloat16)

    const = lambda b: (0, 0)
    kernel = _make_kernel(llen, TB, NF_pad)
    out = pl.pallas_call(
        kernel,
        out_shape=jax.ShapeDtypeStruct((B_pad, h2_pad), jnp.float32),
        grid=(B_pad // TB,),
        in_specs=[
            pl.BlockSpec((TB * llen, K_pad), lambda b: (b, 0)),   # im2col LHS (batch-tiled)
            pl.BlockSpec((K_pad, NF_pad), const),                 # fused conv weights (resident)
            pl.BlockSpec((llen, NF_pad), const),                  # bias + time-validity table
            pl.BlockSpec((NF_pad, h1_pad), const),                # fc1 W
            pl.BlockSpec((1, h1_pad), const),                     # fc1 b
            pl.BlockSpec((h1_pad, h2_pad), const),                # fc2 W
            pl.BlockSpec((1, h2_pad), const),                     # fc2 b
            pl.BlockSpec((1, h2_pad), const),                     # class mask
        ],
        out_specs=pl.BlockSpec((TB, h2_pad), lambda b: (b, 0)),
        compiler_params=pltpu.CompilerParams(
            dimension_semantics=("parallel",)),                   # shards batch tiles on v7x's 2 TCs
    )(lhs, conv_w, cbm, fc1_w, fc1_b, fc2_w, fc2_b, cmask)
    return out[:B, :h2]


# ----------------------------------------------------------------------------
# Pure-JAX reference (mirrors the PyTorch forward, dropout as identity)
# ----------------------------------------------------------------------------
def reference_forward(x_nchw, params, filter_shp):
    B = x_nchw.shape[0]
    x = x_nchw[:, 0]                         # (B, llen, word_len)
    outs = []
    for (w, b), shp in zip(params["convs"], filter_shp):
        t = x.shape[1] - shp + 1
        conv = jnp.stack(
            [jnp.einsum("brw,frw->bf", x[:, s:s + shp, :], w[:, 0]) for s in range(t)],
            axis=-1) + b[None, :, None]                            # (B, F, T)
        outs.append(jnp.maximum(jnp.max(conv, axis=-1), 0.0))       # (B, F)
    feat = jnp.stack(outs, axis=-1).reshape(B, -1)                  # torch stack(dim=-2).view layout
    w1, b1 = params["fc1"]
    w2, b2 = params["fc2"]
    h = jnp.maximum(feat @ w1.T + b1, 0.0)
    z = jnp.maximum(h @ w2.T + b2, 0.0)
    return jax.nn.log_softmax(z, axis=1)


# ----------------------------------------------------------------------------
# Deterministic parameter init (PyTorch-style uniform(-1/sqrt(fan_in), ...))
# ----------------------------------------------------------------------------
def init_params(key, filter_shp, word_len, num_filter, hidden_units):
    def uinit(k, shape, fan_in):
        bound = 1.0 / math.sqrt(fan_in)
        return jax.random.uniform(k, shape, jnp.float32, -bound, bound)

    keys = jax.random.split(key, 2 * len(filter_shp) + 4)
    ki = iter(keys)
    convs = []
    for shp in filter_shp:
        fan_in = 1 * shp * word_len
        w = uinit(next(ki), (num_filter, 1, shp, word_len), fan_in)
        b = uinit(next(ki), (num_filter,), fan_in)
        convs.append((w, b))
    in1 = len(filter_shp) * num_filter
    h1, h2 = hidden_units
    fc1 = (uinit(next(ki), (h1, in1), in1), uinit(next(ki), (h1,), in1))
    fc2 = (uinit(next(ki), (h2, h1), h1), uinit(next(ki), (h2,), h1))
    return {"convs": convs, "fc1": fc1, "fc2": fc2}


if __name__ == "__main__":
    # small shapes consistent with the module's forward
    B, llen, word_len = 2, 16, 32
    filter_shp = [3, 4, 5]
    num_filter = 8
    hidden_units = [32, 2]

    key = jax.random.PRNGKey(0)
    kx, kp = jax.random.split(key)
    x = jax.random.normal(kx, (B, 1, llen, word_len), jnp.float32)   # NCHW, C=1
    params = init_params(kp, filter_shp, word_len, num_filter, hidden_units)

    out = jax.block_until_ready(cnn_txt_net_forward(x, params, filter_shp))
    ref = jax.block_until_ready(reference_forward(x, params, filter_shp))
    assert out.shape == (B, hidden_units[-1])
    np.testing.assert_allclose(np.asarray(out), np.asarray(ref), rtol=2e-2, atol=2e-2)
    print("KERNEL_OK")
</pallas_src>

<mosaic_0001>
module attributes {stable_mosaic.version = 11 : i64} {
  func.func @kernel(%arg0: i32, %arg1: memref<2048x256xbf16, #tpu.memory_space<vmem>>, %arg2: memref<256x128xbf16, #tpu.memory_space<vmem>>, %arg3: memref<16x128xf32, #tpu.memory_space<vmem>>, %arg4: memref<128x128xbf16, #tpu.memory_space<vmem>>, %arg5: memref<1x128xf32, #tpu.memory_space<vmem>>, %arg6: memref<128x128xbf16, #tpu.memory_space<vmem>>, %arg7: memref<1x128xf32, #tpu.memory_space<vmem>>, %arg8: memref<1x128xf32, #tpu.memory_space<vmem>>, %arg9: memref<128x128xf32, #tpu.memory_space<vmem>>) attributes {dimension_semantics = [#tpu.dimension_semantics<parallel>], iteration_bounds = array<i64: 1>, scalar_prefetch = 0 : i64, scratch_operands = 0 : i64, tpu.core_type = #tpu.core_type<tc>, window_params = [{transform_indices = @transform_0, window_bounds = array<i64: 2048, 256>}, {pipeline_mode = #tpu.pipeline_mode<synchronous>, transform_indices = @transform_1, window_bounds = array<i64: 256, 128>}, {pipeline_mode = #tpu.pipeline_mode<synchronous>, transform_indices = @transform_2, window_bounds = array<i64: 16, 128>}, {pipeline_mode = #tpu.pipeline_mode<synchronous>, transform_indices = @transform_3, window_bounds = array<i64: 128, 128>}, {pipeline_mode = #tpu.pipeline_mode<synchronous>, transform_indices = @transform_4, window_bounds = array<i64: 1, 128>}, {pipeline_mode = #tpu.pipeline_mode<synchronous>, transform_indices = @transform_5, window_bounds = array<i64: 128, 128>}, {pipeline_mode = #tpu.pipeline_mode<synchronous>, transform_indices = @transform_6, window_bounds = array<i64: 1, 128>}, {pipeline_mode = #tpu.pipeline_mode<synchronous>, transform_indices = @transform_7, window_bounds = array<i64: 1, 128>}, {transform_indices = @transform_8, window_bounds = array<i64: 128, 128>}]} {
    %c0 = arith.constant 0 : index
    %c0_0 = arith.constant 0 : index
    %0 = vector.load %arg1[%c0, %c0_0] : memref<2048x256xbf16, #tpu.memory_space<vmem>>, vector<2048x256xbf16>
    %c0_1 = arith.constant 0 : index
    %c0_2 = arith.constant 0 : index
    %1 = vector.load %arg2[%c0_1, %c0_2] : memref<256x128xbf16, #tpu.memory_space<vmem>>, vector<256x128xbf16>
    %cst = arith.constant dense<0.000000e+00> : vector<2048x128xf32>
    %2 = tpu.matmul %0, %1, %cst {dimension_numbers = #tpu.dot_dimension_numbers<[1], [0], [0], [1], [0, 0, 1, 1], [], []>} : vector<2048x256xbf16>, vector<256x128xbf16>, vector<2048x128xf32> -> vector<2048x128xf32>
    %3 = vector.shape_cast %2 : vector<2048x128xf32> to vector<128x16x128xf32>
    %c0_3 = arith.constant 0 : index
    %c0_4 = arith.constant 0 : index
    %4 = vector.load %arg3[%c0_3, %c0_4] : memref<16x128xf32, #tpu.memory_space<vmem>>, vector<16x128xf32>
    %5 = vector.shape_cast %4 : vector<16x128xf32> to vector<1x16x128xf32>
    %6 = vector.broadcast %5 : vector<1x16x128xf32> to vector<128x16x128xf32>
    %7 = arith.addf %3, %6 : vector<128x16x128xf32>
    %cst_5 = arith.constant dense<0xFF800000> : vector<128x128xf32>
    %8 = vector.multi_reduction <maximumf>, %7, %cst_5 [1] : vector<128x16x128xf32> to vector<128x128xf32>
    %cst_6 = arith.constant 0.000000e+00 : f32
    %9 = vector.broadcast %cst_6 : f32 to vector<128x128xf32>
    %10 = arith.maximumf %8, %9 : vector<128x128xf32>
    %11 = arith.truncf %10 : vector<128x128xf32> to vector<128x128xbf16>
    %c0_7 = arith.constant 0 : index
    %c0_8 = arith.constant 0 : index
    %12 = vector.load %arg4[%c0_7, %c0_8] : memref<128x128xbf16, #tpu.memory_space<vmem>>, vector<128x128xbf16>
    %cst_9 = arith.constant dense<0.000000e+00> : vector<128x128xf32>
    %13 = tpu.matmul %11, %12, %cst_9 {dimension_numbers = #tpu.dot_dimension_numbers<[1], [0], [0], [1], [0, 0, 1, 1], [], []>} : vector<128x128xbf16>, vector<128x128xbf16>, vector<128x128xf32> -> vector<128x128xf32>
    %c0_10 = arith.constant 0 : index
    %c0_11 = arith.constant 0 : index
    %14 = vector.load %arg5[%c0_10, %c0_11] : memref<1x128xf32, #tpu.memory_space<vmem>>, vector<1x128xf32>
    %15 = vector.broadcast %14 : vector<1x128xf32> to vector<128x128xf32>
    %16 = arith.addf %13, %15 : vector<128x128xf32>
    %cst_12 = arith.constant 0.000000e+00 : f32
    %17 = vector.broadcast %cst_12 : f32 to vector<128x128xf32>
    %18 = arith.maximumf %16, %17 : vector<128x128xf32>
    %19 = arith.truncf %18 : vector<128x128xf32> to vector<128x128xbf16>
    %c0_13 = arith.constant 0 : index
    %c0_14 = arith.constant 0 : index
    %20 = vector.load %arg6[%c0_13, %c0_14] : memref<128x128xbf16, #tpu.memory_space<vmem>>, vector<128x128xbf16>
    %cst_15 = arith.constant dense<0.000000e+00> : vector<128x128xf32>
    %21 = tpu.matmul %19, %20, %cst_15 {dimension_numbers = #tpu.dot_dimension_numbers<[1], [0], [0], [1], [0, 0, 1, 1], [], []>} : vector<128x128xbf16>, vector<128x128xbf16>, vector<128x128xf32> -> vector<128x128xf32>
    %c0_16 = arith.constant 0 : index
    %c0_17 = arith.constant 0 : index
    %22 = vector.load %arg7[%c0_16, %c0_17] : memref<1x128xf32, #tpu.memory_space<vmem>>, vector<1x128xf32>
    %23 = vector.broadcast %22 : vector<1x128xf32> to vector<128x128xf32>
    %24 = arith.addf %21, %23 : vector<128x128xf32>
    %cst_18 = arith.constant 0.000000e+00 : f32
    %25 = vector.broadcast %cst_18 : f32 to vector<128x128xf32>
    %26 = arith.maximumf %24, %25 : vector<128x128xf32>
    %c0_19 = arith.constant 0 : index
    %c0_20 = arith.constant 0 : index
    %27 = vector.load %arg8[%c0_19, %c0_20] : memref<1x128xf32, #tpu.memory_space<vmem>>, vector<1x128xf32>
    %28 = vector.broadcast %27 : vector<1x128xf32> to vector<128x128xf32>
    %29 = arith.addf %26, %28 : vector<128x128xf32>
    %cst_21 = arith.constant dense<0xFF800000> : vector<128xf32>
    %30 = vector.multi_reduction <maximumf>, %29, %cst_21 [1] : vector<128x128xf32> to vector<128xf32>
    %31 = vector.shape_cast %30 : vector<128xf32> to vector<128x1xf32>
    %32 = vector.broadcast %31 : vector<128x1xf32> to vector<128x128xf32>
    %33 = arith.subf %29, %32 : vector<128x128xf32>
    %34 = math.exp %33 : vector<128x128xf32>
    %cst_22 = arith.constant dense<0.000000e+00> : vector<128xf32>
    %35 = vector.multi_reduction <add>, %34, %cst_22 [1] : vector<128x128xf32> to vector<128xf32>
    %36 = vector.shape_cast %35 : vector<128xf32> to vector<128x1xf32>
    %37 = math.log %36 : vector<128x1xf32>
    %38 = vector.broadcast %31 : vector<128x1xf32> to vector<128x128xf32>
    %39 = arith.subf %29, %38 : vector<128x128xf32>
    %40 = vector.broadcast %37 : vector<128x1xf32> to vector<128x128xf32>
    %41 = arith.subf %39, %40 : vector<128x128xf32>
    %c0_23 = arith.constant 0 : index
    %c0_24 = arith.constant 0 : index
    %42 = vector.load %arg9[%c0_23, %c0_24] : memref<128x128xf32, #tpu.memory_space<vmem>>, vector<128x128xf32>
    tpu.vector_store %arg9[%c0_23, %c0_24], %41 {strides = array<i32>} : memref<128x128xf32, #tpu.memory_space<vmem>>, vector<128x128xf32>,
    return
  }
  func.func @transform_0(%arg0: i32) -> (i32, i32) {
    %c0_i32 = arith.constant 0 : i32
    %c0_i32_0 = arith.constant 0 : i32
    return %arg0, %c0_i32 : i32, i32
  }
  func.func @transform_1(%arg0: i32) -> (i32, i32) {
    %c0_i32 = arith.constant 0 : i32
    %c0_i32_0 = arith.constant 0 : i32
    %c0_i32_1 = arith.constant 0 : i32
    return %c0_i32, %c0_i32_0 : i32, i32
  }
  func.func @transform_2(%arg0: i32) -> (i32, i32) {
    %c0_i32 = arith.constant 0 : i32
    %c0_i32_0 = arith.constant 0 : i32
    %c0_i32_1 = arith.constant 0 : i32
    return %c0_i32, %c0_i32_0 : i32, i32
  }
  func.func @transform_3(%arg0: i32) -> (i32, i32) {
    %c0_i32 = arith.constant 0 : i32
    %c0_i32_0 = arith.constant 0 : i32
    %c0_i32_1 = arith.constant 0 : i32
    return %c0_i32, %c0_i32_0 : i32, i32
  }
  func.func @transform_4(%arg0: i32) -> (i32, i32) {
    %c0_i32 = arith.constant 0 : i32
    %c0_i32_0 = arith.constant 0 : i32
    %c0_i32_1 = arith.constant 0 : i32
    return %c0_i32, %c0_i32_0 : i32, i32
  }
  func.func @transform_5(%arg0: i32) -> (i32, i32) {
    %c0_i32 = arith.constant 0 : i32
    %c0_i32_0 = arith.constant 0 : i32
    %c0_i32_1 = arith.constant 0 : i32
    return %c0_i32, %c0_i32_0 : i32, i32
  }
  func.func @transform_6(%arg0: i32) -> (i32, i32) {
    %c0_i32 = arith.constant 0 : i32
    %c0_i32_0 = arith.constant 0 : i32
    %c0_i32_1 = arith.constant 0 : i32
    return %c0_i32, %c0_i32_0 : i32, i32
  }
  func.func @transform_7(%arg0: i32) -> (i32, i32) {
    %c0_i32 = arith.constant 0 : i32
    %c0_i32_0 = arith.constant 0 : i32
    %c0_i32_1 = arith.constant 0 : i32
    return %c0_i32, %c0_i32_0 : i32, i32
  }
  func.func @transform_8(%arg0: i32) -> (i32, i32) {
    %c0_i32 = arith.constant 0 : i32
    %c0_i32_0 = arith.constant 0 : i32
    return %arg0, %c0_i32 : i32, i32
  }
}

</mosaic_0001>

<bundles_post_ra>
// kernel: tpu_custom_call.1
= control target key start
LH: loop header
LB: loop body
LE: loop exit
PB: predicated region body
PF: predicated region fallthrough
CT: control target
= control target key end

     0   :  { %13 = vsyncpa [#allocation3], 0  ;;  %s7993_s0 = inlined_call_operand.hbm [shape: bf16[2048,256], index: 0, kind: input, shape index: {}]   ;;  %s7994_s1 = inlined_call_operand.hbm [shape: bf16[256,128], index: 1, kind: input, shape index: {}]   ;;  %s7995_s2 = inlined_call_operand.hbm [shape: f32[16,128], index: 2, kind: input, shape index: {}]   ;;  %s7996_s3 = inlined_call_operand.hbm [shape: bf16[128,128], index: 3, kind: input, shape index: {}]   ;;  %s7997_s4 = inlined_call_operand.vmem [shape: f32[1,128], index: 4, kind: input, shape index: {}]   ;;  %s7998_s5 = inlined_call_operand.hbm [shape: bf16[128,128], index: 5, kind: input, shape index: {}]   ;;  %s7999_s6 = inlined_call_operand.vmem [shape: f32[1,128], index: 6, kind: input, shape index: {}]   ;;  %s8000_s7 = inlined_call_operand.vmem [shape: f32[1,128], index: 7, kind: input, shape index: {}]   ;;  %s8001_s8 = inlined_call_operand.hbm [shape: f32[128,128], index: 8, kind: output, shape index: {}]  }
   0x1   :  { %14 = vsyncpa [#allocation6], 0 }
   0x2   :  { %15 = vsyncpa [#allocation9], 0  ;;  %s34_s29 = sshll.u32 %s7994_s1, 4  ;;  %s35_s29 = int_to_ptr.hbm [resolvable:$true] %s34_s29 }
   0x3   :  { %16 = vsyncpa [#allocation4], 0  ;;  %s7059_s30 = smov [#allocation5]   ;;  %s60_s12 = sshll.u32 %s7996_s3, 4  ;;  %s61_s12 = int_to_ptr.hbm [resolvable:$true] %s60_s12 }
   0x4   :  { %s36_s9 = sshll.u32 %s7059_s30, 4  ;;  %s7060_s13 = smov 64   ;;  %s37_s9 = int_to_ptr.vmem [resolvable:$true] %s36_s9 }
   0x5   :  { %s7061_s14 = smov 4   ;;  %s7062_s15 = smov [#allocation8]  }
   0x6   :  { %42 = dma.hbm_to_vmem [thread:$0]  %s35_s29, 2048, %s37_s9, [#allocation6], %s7060_s13, %s7060_s13, %s7061_s14  }
   0x7   :  { %s62_s16 = sshll.u32 %s7062_s15, 4  ;;  %s21_s18 = sshll.u32 %s7993_s0, 4  ;;  %s63_s16 = int_to_ptr.vmem [resolvable:$true] %s62_s16  ;;  %s22_s18 = int_to_ptr.hbm [resolvable:$true] %s21_s18 }
   0x8   :  { %68 = dma.hbm_to_vmem [thread:$0]  %s61_s12, 1024, %s63_s16, [#allocation9], %s7060_s13, %s7060_s13, %s7061_s14  }
   0x9   :  { %s7063_s3 = smov [#allocation2]   ;;  %s47_s22 = sshll.u32 %s7995_s2, 4  ;;  %s48_s22 = int_to_ptr.hbm [resolvable:$true] %s47_s22 }
   0xa   :  { %s23_s19 = sshll.u32 %s7063_s3, 4  ;;  %s7064_s23 = smov 128   ;;  %s24_s19 = int_to_ptr.vmem [resolvable:$true] %s23_s19 }
   0xb   :  { %s7065_s24 = smov 8   ;;  %s7066_s0 = smov [#allocation7]  }
   0xc   :  { %29 = dma.hbm_to_vmem [thread:$0]  %s22_s18, 32768, %s24_s19, [#allocation3], %s7064_s23, %s7064_s23, %s7065_s24  }
   0xd   :  { %s49_s25 = sshll.u32 %s7066_s0, 4  ;;  %s75_s28 = sshll.u32 %s7998_s5, 4  ;;  %s50_s25 = int_to_ptr.vmem [resolvable:$true] %s49_s25  ;;  %s76_s28 = int_to_ptr.hbm [resolvable:$true] %s75_s28 }
   0xe   :  { %55 = dma.hbm_to_vmem [thread:$0]  %s48_s22, 256, %s50_s25, [#allocation6], %s7064_s23, %s7064_s23, %s7065_s24  }
   0xf   :  { %s7067_s2 = smov [#allocation10]  }
  0x10   :  { %s77_s29 = sshll.u32 %s7067_s2, 4  ;;  %s78_s29 = int_to_ptr.vmem [resolvable:$true] %s77_s29 }
  0x11   :  { %83 = dma.hbm_to_vmem [thread:$0]  %s76_s28, 1024, %s78_s29, [#allocation9], %s7060_s13, %s7060_s13, %s7061_s14  }
  0x12   :  { %7051 = dma.done.wait [#allocation3], 32768  }
  0x13   :  { %7052 = vsyncadd [#allocation3], 4294934528 }
  0x14   :  { %7053 = dma.done.wait [#allocation6], 2304  }
  0x15   :  { %7054 = vsyncadd [#allocation6], 4294964992 }
  0x16   :  { %7055 = dma.done.wait [#allocation9], 2048  }
  0x17   :  { %7056 = vsyncadd [#allocation9], 4294965248  ;;  %v6777_v0 = vld [vmem:[#allocation5 + $0x38] sm:$0xff]  ;;  %v6776_v2 = vld [vmem:[#allocation5 + $0x30] sm:$0xff]  ;;  %vm4756_vm0 = vcmask 1041409   ;;  %vm4758_vm1 = vcmask 1042434  }
  0x18   :  { %v6785_v1 = vld [vmem:[#allocation5 + $0x78] sm:$0xff]  ;;  %1772 = vmatpush.bf16.msra.mxu0 %v6777_v0  ;;  %6802 = vmatpush.bf16.msra.mxu2 %v6777_v0  ;;  %v6784_v3 = vld [vmem:[#allocation5 + $0x70] sm:$0xff]  ;;  %v6775_v4 = vld [vmem:[#allocation5 + $0x28] sm:$0xff]  ;;  %vm4760_vm2 = vcmask 1043459   ;;  %vm4762_vm3 = vcmask 1044484   ;;  %vm4764_vm4 = vcmask 1045509  }
  0x19   :  { %2421 = vmatpush.bf16.msra.mxu1 %v6785_v1  ;;  %6810 = vmatpush.bf16.msra.mxu3 %v6785_v1  ;;  %v6783_v5 = vld [vmem:[#allocation5 + $0x68] sm:$0xff]  ;;  %v6774_v6 = vld [vmem:[#allocation5 + $0x20] sm:$0xff]  ;;  %v6773_v8 = vld [vmem:[#allocation5 + $0x18] sm:$0xff]  ;;  %vm4766_vm5 = vcmask 1046534   ;;  %vm4768_vm6 = vcmask 1047559   ;;  %s5347_s14 = sshll.u32 %s8001_s8, 4  ;;  %s5348_s14 = int_to_ptr.hbm [resolvable:$true] %s5347_s14 }
  0x1a   :  { %v6782_v7 = vld [vmem:[#allocation5 + $0x60] sm:$0xff]  ;;  %v6781_v9 = vld [vmem:[#allocation5 + $0x58] sm:$0xff]  ;;  %v6772_v10 = vld [vmem:[#allocation5 + $0x10] sm:$0xff] }
  0x1b   :  { %v6780_v11 = vld [vmem:[#allocation5 + $0x50] sm:$0xff]  ;;  %v6771_v12 = vld [vmem:[#allocation5 + $0x8] sm:$0xff]  ;;  %v6770_v14 = vld [vmem:[#allocation5] sm:$0xff] }
  0x1c   :  { %1773 = vmatpush.bf16.msra.mxu0 %v6776_v2  ;;  %6803 = vmatpush.bf16.msra.mxu2 %v6776_v2  ;;  %v6779_v13 = vld [vmem:[#allocation5 + $0x48] sm:$0xff]  ;;  %v6778_v15 = vld [vmem:[#allocation5 + $0x40] sm:$0xff]  ;;  %v5372_v28 = vld [vmem:[#allocation2 + $0x10] sm:$0xf] }
  0x1d   :  { %2422 = vmatpush.bf16.msra.mxu1 %v6784_v3  ;;  %6811 = vmatpush.bf16.msra.mxu3 %v6784_v3  ;;  %v5364_v16 = vld [vmem:[#allocation2] sm:$0xf]  ;;  %v6515_v17 = vld [vmem:[#allocation2 + $0x4] sm:$0xf0]  ;;  %v6514_v20 = vld [vmem:[#allocation2 + $0x4] sm:$0xf] }
  0x1e   :  { %v5908_v18 = vld [vmem:[#allocation2 + $0x440] sm:$0xf]  ;;  %v6651_v19 = vld [vmem:[#allocation2 + $0x444] sm:$0xf0]  ;;  %v5366_v21 = vld [vmem:[#allocation2 + $0x8] sm:$0xf0]  ;;  %v5365_v24 = vor.u32 %v6515_v17, %v5364_v16 }
  0x1f   :  { %v6650_v22 = vld [vmem:[#allocation2 + $0x444] sm:$0xf]  ;;  %v5910_v23 = vld [vmem:[#allocation2 + $0x448] sm:$0xf0]  ;;  %v5909_v25 = vor.u32 %v6651_v19, %v5908_v18  ;;  %v5369_v26 = vor.u32 %v6514_v20, %v5366_v21  ;;  %v6517_v29 = vld [vmem:[#allocation2 + $0x14] sm:$0xf0] }
  0x20   :  { %1774 = vmatpush.bf16.msra.mxu0 %v6775_v4  ;;  %6804 = vmatpush.bf16.msra.mxu2 %v6775_v4  ;;  %v5913_v27 = vor.u32 %v6650_v22, %v5910_v23  ;;  %v5916_v30 = vld [vmem:[#allocation2 + $0x450] sm:$0xf]  ;;  %v6653_v31 = vld [vmem:[#allocation2 + $0x454] sm:$0xf0]  ;;  %v6516_v32 = vld [vmem:[#allocation2 + $0x14] sm:$0xf]  ;;  %v5373_v36 = vor.u32 %v6517_v29, %v5372_v28 }
  0x21   :  { %2423 = vmatpush.bf16.msra.mxu1 %v6783_v5  ;;  %6812 = vmatpush.bf16.msra.mxu3 %v6783_v5  ;;  %v5374_v33 = vld [vmem:[#allocation2 + $0x18] sm:$0xf0]  ;;  %v6652_v34 = vld [vmem:[#allocation2 + $0x454] sm:$0xf]  ;;  %v5917_v37 = vor.u32 %v6653_v31, %v5916_v30  ;;  %v5380_v40 = vld [vmem:[#allocation2 + $0x20] sm:$0xf] }
  0x22   :  { %v5918_v35 = vld [vmem:[#allocation2 + $0x458] sm:$0xf0]  ;;  %v5377_v38 = vor.u32 %v6516_v32, %v5374_v33  ;;  %v6519_v41 = vld [vmem:[#allocation2 + $0x24] sm:$0xf0]  ;;  %v5924_v42 = vld [vmem:[#allocation2 + $0x460] sm:$0xf] }
  0x23   :  { %v5921_v39 = vor.u32 %v6652_v34, %v5918_v35  ;;  %v6655_v43 = vld [vmem:[#allocation2 + $0x464] sm:$0xf0]  ;;  %v6518_v44 = vld [vmem:[#allocation2 + $0x24] sm:$0xf]  ;;  %v5382_v45 = vld [vmem:[#allocation2 + $0x28] sm:$0xf0]  ;;  %v5381_v48 = vor.u32 %v6519_v41, %v5380_v40 }
  0x24   :  { %1775 = vmatpush.bf16.msra.mxu0 %v6774_v6  ;;  %6805 = vmatpush.bf16.msra.mxu2 %v6774_v6  ;;  %v6654_v46 = vld [vmem:[#allocation2 + $0x464] sm:$0xf]  ;;  %v5926_v47 = vld [vmem:[#allocation2 + $0x468] sm:$0xf0]  ;;  %v5925_v49 = vor.u32 %v6655_v43, %v5924_v42  ;;  %v5385_v50 = vor.u32 %v6518_v44, %v5382_v45  ;;  %v5388_v52 = vld [vmem:[#allocation2 + $0x30] sm:$0xf] }
  0x25   :  { %2424 = vmatpush.bf16.msra.mxu1 %v6782_v7  ;;  %6813 = vmatpush.bf16.msra.mxu3 %v6782_v7  ;;  %v5929_v51 = vor.u32 %v6654_v46, %v5926_v47  ;;  %v6521_v53 = vld [vmem:[#allocation2 + $0x34] sm:$0xf0]  ;;  %v5932_v54 = vld [vmem:[#allocation2 + $0x470] sm:$0xf]  ;;  %v6520_v56 = vld [vmem:[#allocation2 + $0x34] sm:$0xf] }
  0x26   :  { %v6657_v55 = vld [vmem:[#allocation2 + $0x474] sm:$0xf0]  ;;  %v5390_v57 = vld [vmem:[#allocation2 + $0x38] sm:$0xf0]  ;;  %v6656_v58 = vld [vmem:[#allocation2 + $0x474] sm:$0xf]  ;;  %v5389_v60 = vor.u32 %v6521_v53, %v5388_v52 }
  0x27   :  { %v5934_v59 = vld [vmem:[#allocation2 + $0x478] sm:$0xf0]  ;;  %v5933_v61 = vor.u32 %v6657_v55, %v5932_v54  ;;  %v5393_v62 = vor.u32 %v6520_v56, %v5390_v57  ;;  %v5396_v0 = vld [vmem:[#allocation2 + $0x40] sm:$0xf]  ;;  %v6523_v1 = vld [vmem:[#allocation2 + $0x44] sm:$0xf0] }
  0x28   :  { %1776 = vmatpush.bf16.msra.mxu0 %v6773_v8  ;;  %6806 = vmatpush.bf16.msra.mxu2 %v6773_v8  ;;  %v5937_v63 = vor.u32 %v6656_v58, %v5934_v59  ;;  %v5940_v2 = vld [vmem:[#allocation2 + $0x480] sm:$0xf]  ;;  %v6659_v3 = vld [vmem:[#allocation2 + $0x484] sm:$0xf0]  ;;  %v6522_v4 = vld [vmem:[#allocation2 + $0x44] sm:$0xf]  ;;  %v5397_v8 = vor.u32 %v6523_v1, %v5396_v0 }
  0x29   :  { %2425 = vmatpush.bf16.msra.mxu1 %v6781_v9  ;;  %6814 = vmatpush.bf16.msra.mxu3 %v6781_v9  ;;  %v5398_v5 = vld [vmem:[#allocation2 + $0x48] sm:$0xf0]  ;;  %v6658_v6 = vld [vmem:[#allocation2 + $0x484] sm:$0xf]  ;;  %v5941_v9 = vor.u32 %v6659_v3, %v5940_v2  ;;  %v6524_v16 = vld [vmem:[#allocation2 + $0x54] sm:$0xf] }
  0x2a   :  { %v5942_v7 = vld [vmem:[#allocation2 + $0x488] sm:$0xf0]  ;;  %v5406_v17 = vld [vmem:[#allocation2 + $0x58] sm:$0xf0]  ;;  %v6660_v18 = vld [vmem:[#allocation2 + $0x494] sm:$0xf] }
  0x2b   :  { %v5950_v19 = vld [vmem:[#allocation2 + $0x498] sm:$0xf0]  ;;  %v5409_v22 = vor.u32 %v6524_v16, %v5406_v17  ;;  %v6526_v28 = vld [vmem:[#allocation2 + $0x64] sm:$0xf]  ;;  %v5414_v29 = vld [vmem:[#allocation2 + $0x68] sm:$0xf0] }
  0x2c   :  { %1777 = vmatpush.bf16.msra.mxu0 %v6772_v10  ;;  %6807 = vmatpush.bf16.msra.mxu2 %v6772_v10  ;;  %v5401_v10 = vor.u32 %v6522_v4, %v5398_v5  ;;  %v5953_v23 = vor.u32 %v6660_v18, %v5950_v19  ;;  %v6662_v30 = vld [vmem:[#allocation2 + $0x4a4] sm:$0xf]  ;;  %v5958_v31 = vld [vmem:[#allocation2 + $0x4a8] sm:$0xf0]  ;;  %v5417_v34 = vor.u32 %v6526_v28, %v5414_v29  ;;  %v6528_v40 = vld [vmem:[#allocation2 + $0x74] sm:$0xf] }
  0x2d   :  { %2426 = vmatpush.bf16.msra.mxu1 %v6780_v11  ;;  %6815 = vmatpush.bf16.msra.mxu3 %v6780_v11  ;;  %v5945_v11 = vor.u32 %v6658_v6, %v5942_v7  ;;  %v5961_v35 = vor.u32 %v6662_v30, %v5958_v31  ;;  %v5422_v41 = vld [vmem:[#allocation2 + $0x78] sm:$0xf0]  ;;  %v6664_v42 = vld [vmem:[#allocation2 + $0x4b4] sm:$0xf]  ;;  %v6530_v52 = vld [vmem:[#allocation2 + $0x84] sm:$0xf] }
  0x2e   :  { %v5966_v43 = vld [vmem:[#allocation2 + $0x4b8] sm:$0xf0]  ;;  %v5425_v46 = vor.u32 %v6528_v40, %v5422_v41  ;;  %v5430_v53 = vld [vmem:[#allocation2 + $0x88] sm:$0xf0]  ;;  %v6666_v54 = vld [vmem:[#allocation2 + $0x4c4] sm:$0xf] }
  0x2f   :  { %v5969_v47 = vor.u32 %v6664_v42, %v5966_v43  ;;  %v5974_v55 = vld [vmem:[#allocation2 + $0x4c8] sm:$0xf0]  ;;  %v5433_v59 = vor.u32 %v6530_v52, %v5430_v53  ;;  %v7144_v3 = vld [vmem:[#allocation7] sm:$0xff]  ;;  %v5436_v7 = vld [vmem:[#allocation2 + $0x90] sm:$0xf] }
  0x30   :  { %1778 = vmatpush.bf16.msra.mxu0 %v6771_v12  ;;  %6808 = vmatpush.bf16.msra.mxu2 %v6771_v12  ;;  %v5404_v12 = vld [vmem:[#allocation2 + $0x50] sm:$0xf]  ;;  %v7146_v5 = vld [vmem:[#allocation7 + $0x8] sm:$0xff]  ;;  %v5982_v16 = vld [vmem:[#allocation2 + $0x4d8] sm:$0xf0] }
  0x31   :  { %2427 = vmatpush.bf16.msra.mxu1 %v6779_v13  ;;  %6816 = vmatpush.bf16.msra.mxu3 %v6779_v13  ;;  %v6525_v13 = vld [vmem:[#allocation2 + $0x54] sm:$0xf0]  ;;  %v5444_v41 = vld [vmem:[#allocation2 + $0xa0] sm:$0xf]  ;;  %v6535_v42 = vld [vmem:[#allocation2 + $0xa4] sm:$0xf0] }
  0x32   :  { %v5405_v20 = vor.u32 %v6525_v13, %v5404_v12  ;;  %v6669_v12 = vld [vmem:[#allocation2 + $0x4d4] sm:$0xf0]  ;;  %v6532_v13 = vld [vmem:[#allocation2 + $0x94] sm:$0xf]  ;;  %v5988_v43 = vld [vmem:[#allocation2 + $0x4e0] sm:$0xf] }
  0x34   :  { %1779 = vmatpush.bf16.msra.mxu0 %v6770_v14  ;;  %6809 = vmatpush.bf16.msra.mxu2 %v6770_v14  ;;  %v5948_v14 = vld [vmem:[#allocation2 + $0x490] sm:$0xf] }
  0x35   :  { %2428 = vmatpush.bf16.msra.mxu1 %v6778_v15  ;;  %6817 = vmatpush.bf16.msra.mxu3 %v6778_v15  ;;  %v6661_v15 = vld [vmem:[#allocation2 + $0x494] sm:$0xf0] }
  0x36   :  { %v5949_v21 = vor.u32 %v6661_v15, %v5948_v14  ;;  %v5438_v14 = vld [vmem:[#allocation2 + $0x98] sm:$0xf0]  ;;  %v6668_v15 = vld [vmem:[#allocation2 + $0x4d4] sm:$0xf] }
  0x37   :  { %1780 = vmatmul.bf16.vlgmr.msra.gmra.mxu0 %v5365_v24  ;;  %2120 = vmatmul.bf16.vlgmr.msra.gmra.mxu2 %v5909_v25  ;;  %v5412_v24 = vld [vmem:[#allocation2 + $0x60] sm:$0xf]  ;;  %v6527_v25 = vld [vmem:[#allocation2 + $0x64] sm:$0xf0] }
  0x38   :  { %2429 = vmatmul.bf16.vlgmr.msra.gmra.mxu1 %v5369_v26  ;;  %2769 = vmatmul.bf16.vlgmr.msra.gmra.mxu3 %v5913_v27  ;;  %v5956_v26 = vld [vmem:[#allocation2 + $0x4a0] sm:$0xf]  ;;  %v6663_v27 = vld [vmem:[#allocation2 + $0x4a4] sm:$0xf0]  ;;  %v5413_v32 = vor.u32 %v6527_v25, %v5412_v24 }
  0x39   :  { %v5957_v33 = vor.u32 %v6663_v27, %v5956_v26  ;;  %v5985_v27 = vor.u32 %v6668_v15, %v5982_v16 }
  0x47   :  { %1785 = vmatmul.bf16.gmra.mxu0 %v5373_v36  ;;  %2125 = vmatmul.bf16.gmra.mxu2 %v5917_v37  ;;  %v5420_v36 = vld [vmem:[#allocation2 + $0x70] sm:$0xf]  ;;  %v6529_v37 = vld [vmem:[#allocation2 + $0x74] sm:$0xf0] }
  0x48   :  { %2434 = vmatmul.bf16.gmra.mxu1 %v5377_v38  ;;  %2774 = vmatmul.bf16.gmra.mxu3 %v5921_v39  ;;  %v5964_v38 = vld [vmem:[#allocation2 + $0x4b0] sm:$0xf]  ;;  %v6665_v39 = vld [vmem:[#allocation2 + $0x4b4] sm:$0xf0]  ;;  %v5421_v44 = vor.u32 %v6529_v37, %v5420_v36 }
  0x49   :  { %v5965_v45 = vor.u32 %v6665_v39, %v5964_v38 }
  0x57   :  { %1790 = vmatmul.bf16.gmra.mxu0 %v5381_v48  ;;  %2130 = vmatmul.bf16.gmra.mxu2 %v5925_v49  ;;  %v5428_v48 = vld [vmem:[#allocation2 + $0x80] sm:$0xf]  ;;  %v6531_v49 = vld [vmem:[#allocation2 + $0x84] sm:$0xf0] }
  0x58   :  { %2439 = vmatmul.bf16.gmra.mxu1 %v5385_v50  ;;  %2779 = vmatmul.bf16.gmra.mxu3 %v5929_v51  ;;  %v5972_v50 = vld [vmem:[#allocation2 + $0x4c0] sm:$0xf]  ;;  %v6667_v51 = vld [vmem:[#allocation2 + $0x4c4] sm:$0xf0]  ;;  %v5429_v56 = vor.u32 %v6531_v49, %v5428_v48  ;;  %v5446_v48 = vld [vmem:[#allocation2 + $0xa8] sm:$0xf0] }
  0x59   :  { %v5973_v57 = vor.u32 %v6667_v51, %v5972_v50  ;;  %v6670_v49 = vld [vmem:[#allocation2 + $0x4e4] sm:$0xf]  ;;  %v5990_v50 = vld [vmem:[#allocation2 + $0x4e8] sm:$0xf0] }
  0x67   :  { %1795 = vmatmul.bf16.gmra.mxu0 %v5389_v60  ;;  %2135 = vmatmul.bf16.gmra.mxu2 %v5933_v61  ;;  %v5977_v60 = vor.u32 %v6666_v54, %v5974_v55  ;;  %v5445_v55 = vor.u32 %v6535_v42, %v5444_v41 }
  0x68   :  { %2444 = vmatmul.bf16.gmra.mxu1 %v5393_v62  ;;  %2784 = vmatmul.bf16.gmra.mxu3 %v5937_v63 }
  0x77   :  { %1800 = vmatmul.bf16.gmra.mxu0 %v5397_v8  ;;  %2140 = vmatmul.bf16.gmra.mxu2 %v5941_v9  ;;  %v6533_v8 = vld [vmem:[#allocation2 + $0x94] sm:$0xf0]  ;;  %v5980_v9 = vld [vmem:[#allocation2 + $0x4d0] sm:$0xf] }
  0x78   :  { %2449 = vmatmul.bf16.gmra.mxu1 %v5401_v10  ;;  %2789 = vmatmul.bf16.gmra.mxu3 %v5945_v11 }
  0x87   :  { %1805 = vmatmul.bf16.gmra.mxu0 %v5405_v20  ;;  %2145 = vmatmul.bf16.gmra.mxu2 %v5949_v21  ;;  %v5437_v20 = vor.u32 %v6533_v8, %v5436_v7  ;;  %v5981_v21 = vor.u32 %v6669_v12, %v5980_v9 }
  0x88   :  { %2454 = vmatmul.bf16.gmra.mxu1 %v5409_v22  ;;  %2794 = vmatmul.bf16.gmra.mxu3 %v5953_v23  ;;  %v5441_v22 = vor.u32 %v6532_v13, %v5438_v14 }
  0x97   :  { %1810 = vmatmul.bf16.gmra.mxu0 %v5413_v32  ;;  %2150 = vmatmul.bf16.gmra.mxu2 %v5957_v33 }
  0x98   :  { %2459 = vmatmul.bf16.gmra.mxu1 %v5417_v34  ;;  %2799 = vmatmul.bf16.gmra.mxu3 %v5961_v35 }
  0xa7   :  { %1815 = vmatmul.bf16.gmra.mxu0 %v5421_v44  ;;  %2155 = vmatmul.bf16.gmra.mxu2 %v5965_v45 }
  0xa8   :  { %2464 = vmatmul.bf16.gmra.mxu1 %v5425_v46  ;;  %2804 = vmatmul.bf16.gmra.mxu3 %v5969_v47  ;;  %v6671_v46 = vld [vmem:[#allocation2 + $0x4e4] sm:$0xf0]  ;;  %v6534_v47 = vld [vmem:[#allocation2 + $0xa4] sm:$0xf] }
  0xb4   :  { %v1781_v58 = vpop.f32.mrf.mxu0 }
  0xb5   :  { %v2430_v61 = vpop.f32.mrf.mxu1 }
  0xb6   :  { %v2431_v62 = vadd.f32 %v2430_v61, %v1781_v58 }
  0xb7   :  { %1820 = vmatmul.bf16.gmra.mxu0 %v5429_v56  ;;  %2160 = vmatmul.bf16.gmra.mxu2 %v5973_v57  ;;  %v5989_v56 = vor.u32 %v6671_v46, %v5988_v43  ;;  %v5449_v57 = vor.u32 %v6534_v47, %v5446_v48 }
  0xb8   :  { %2469 = vmatmul.bf16.gmra.mxu1 %v5433_v59  ;;  %2809 = vmatmul.bf16.gmra.mxu3 %v5977_v60  ;;  %v3072_v10 = vadd.f32 %v7144_v3, %v2431_v62  ;;  %v5993_v62 = vor.u32 %v6670_v49, %v5990_v50 }
  0xba   :  { %v2121_v63 = vpop.f32.mrf.mxu2 }
  0xbb   :  { %v2770_v0 = vpop.f32.mrf.mxu3 }
  0xbc   :  { %v2771_v1 = vadd.f32 %v2770_v0, %v2121_v63  ;;  %v1783_v2 = vpop.f32.mrf.mxu0 }
  0xbd   :  { %v2432_v4 = vpop.f32.mrf.mxu1 }
  0xbe   :  { %v2433_v6 = vadd.f32 %v2432_v4, %v1783_v2  ;;  %v3208_v23 = vadd.f32 %v7144_v3, %v2771_v1 }
  0xc0   :  { %v3073_v11 = vadd.f32 %v7146_v5, %v2433_v6 }
  0xc2   :  { %v3328_v17 = vmax.f32 %v3072_v10, %v3073_v11  ;;  %v2123_v18 = vpop.f32.mrf.mxu2 }
  0xc3   :  { %v2772_v19 = vpop.f32.mrf.mxu3 }
  0xc4   :  { %v3329_v24 = vrot.slane %v3328_v17, 4  ;;  %v2773_v25 = vadd.f32 %v2772_v19, %v2123_v18  ;;  %v1786_v26 = vpop.f32.mrf.mxu0  ;;  %v5452_v18 = vld [vmem:[#allocation2 + $0xb0] sm:$0xf]  ;;  %v6537_v19 = vld [vmem:[#allocation2 + $0xb4] sm:$0xf0] }
  0xc5   :  { %v2435_v28 = vpop.f32.mrf.mxu1 }
  0xc6   :  { %v3209_v29 = vadd.f32 %v7146_v5, %v2773_v25  ;;  %v2436_v30 = vadd.f32 %v2435_v28, %v1786_v26  ;;  %v3330_v31 = vmax.f32 %v3328_v17, %v3329_v24  ;;  %v5454_v24 = vld [vmem:[#allocation2 + $0xb8] sm:$0xf0]  ;;  %v6672_v28 = vld [vmem:[#allocation2 + $0x4f4] sm:$0xf] }
  0xc7   :  { %1825 = vmatmul.bf16.gmra.mxu0 %v5437_v20  ;;  %2165 = vmatmul.bf16.gmra.mxu2 %v5981_v21  ;;  %v5996_v20 = vld [vmem:[#allocation2 + $0x4f0] sm:$0xf] }
  0xc8   :  { %v7152_v32 = vmax.f32 %v3208_v23, %v3209_v29  ;;  %2474 = vmatmul.bf16.gmra.mxu1 %v5441_v22  ;;  %2814 = vmatmul.bf16.gmra.mxu3 %v5985_v27  ;;  %v3331_v34 = vrot.slane %v3330_v31, 2  ;;  %v3074_v44 = vadd.f32 %v7144_v3, %v2436_v30  ;;  %v6673_v22 = vld [vmem:[#allocation2 + $0x4f4] sm:$0xf0]  ;;  %v6536_v23 = vld [vmem:[#allocation2 + $0xb4] sm:$0xf] }
  0xc9   :  { %v5998_v29 = vld [vmem:[#allocation2 + $0x4f8] sm:$0xf0] }
  0xca   :  { %v2126_v33 = vpop.f32.mrf.mxu2  ;;  %v3332_v40 = vmax.f32 %v3330_v31, %v3331_v34  ;;  %v5453_v34 = vor.u32 %v6537_v19, %v5452_v18 }
  0xcb   :  { %v2775_v35 = vpop.f32.mrf.mxu3 }
  0xcc   :  { %v2776_v36 = vadd.f32 %v2775_v35, %v2126_v33  ;;  %v1788_v37 = vpop.f32.mrf.mxu0  ;;  %v3333_v53 = vrot.slane %v3332_v40, 1 }
  0xcd   :  { %v2437_v38 = vpop.f32.mrf.mxu1 }
  0xce   :  { %v2438_v39 = vadd.f32 %v2437_v38, %v1788_v37  ;;  %v3210_v58 = vadd.f32 %v7144_v3, %v2776_v36  ;;  %v3334_v4 = vmax.f32 %v3332_v40, %v3333_v53  ;;  %v5997_v37 = vor.u32 %v6673_v22, %v5996_v20 }
  0xcf   :  { %v5457_v38 = vor.u32 %v6536_v23, %v5454_v24 }
  0xd0   :  { %v3075_v45 = vadd.f32 %v7146_v5, %v2438_v39  ;;  %v4224_v10 = vmax.f32 %v3334_v4, 0.0  ;;  %v6001_v39 = vor.u32 %v6672_v28, %v5998_v29 }
  0xd2   :  { %v3335_v51 = vmax.f32 %v3074_v44, %v3075_v45  ;;  %v2128_v52 = vpop.f32.mrf.mxu2  ;;  %v4352_v21 = vpack.c.bf16 %v4224_v10, %v4224_v10  ;;  %v6006_v10 = vld [vmem:[#allocation2 + $0x508] sm:$0xf0] }
  0xd3   :  { %v2777_v54 = vpop.f32.mrf.mxu3 }
  0xd4   :  { %v3336_v59 = vrot.slane %v3335_v51, 4  ;;  %v2778_v60 = vadd.f32 %v2777_v54, %v2128_v52  ;;  %v1791_v61 = vpop.f32.mrf.mxu0  ;;  %v4628_v35 = vunpack.c.l.b16 %v4352_v21 }
  0xd5   :  { %v2440_v63 = vpop.f32.mrf.mxu1 }
  0xd6   :  { %v3337_v0 = vmax.f32 %v3335_v51, %v3336_v59  ;;  %v3211_v1 = vadd.f32 %v7146_v5, %v2778_v60  ;;  %v2441_v2 = vadd.f32 %v2440_v63, %v1791_v61  ;;  %v5460_v61 = vld [vmem:[#allocation2 + $0xc0] sm:$0xf] }
  0xd7   :  { %1830 = vmatmul.bf16.gmra.mxu0 %v5445_v55  ;;  %2170 = vmatmul.bf16.gmra.mxu2 %v5989_v56  ;;  %v6004_v63 = vld [vmem:[#allocation2 + $0x500] sm:$0xf] }
  0xd8   :  { %v3338_v6 = vrot.slane %v3337_v0, 2  ;;  %v7158_v7 = vmax.f32 %v3210_v58, %v3211_v1  ;;  %2479 = vmatmul.bf16.gmra.mxu1 %v5449_v57  ;;  %2819 = vmatmul.bf16.gmra.mxu3 %v5993_v62  ;;  %v3076_v26 = vadd.f32 %v7144_v3, %v2441_v2  ;;  %v6539_v62 = vld [vmem:[#allocation2 + $0xc4] sm:$0xf0]  ;;  %v6538_v1 = vld [vmem:[#allocation2 + $0xc4] sm:$0xf] }
  0xd9   :  { %v5462_v2 = vld [vmem:[#allocation2 + $0xc8] sm:$0xf0] }
  0xda   :  { %v3339_v8 = vmax.f32 %v3337_v0, %v3338_v6  ;;  %v2131_v9 = vpop.f32.mrf.mxu2  ;;  %v6675_v0 = vld [vmem:[#allocation2 + $0x504] sm:$0xf0] }
  0xdb   :  { %v2780_v11 = vpop.f32.mrf.mxu3 }
  0xdc   :  { %v3340_v12 = vrot.slane %v3339_v8, 1  ;;  %v2781_v13 = vadd.f32 %v2780_v11, %v2131_v9  ;;  %v1793_v14 = vpop.f32.mrf.mxu0  ;;  %v6674_v9 = vld [vmem:[#allocation2 + $0x504] sm:$0xf] }
  0xdd   :  { %v2442_v15 = vpop.f32.mrf.mxu1  ;;  %v6009_v18 = vor.u32 %v6674_v9, %v6006_v10 }
  0xde   :  { %v3341_v16 = vmax.f32 %v3339_v8, %v3340_v12  ;;  %v2443_v17 = vadd.f32 %v2442_v15, %v1793_v14  ;;  %v3212_v41 = vadd.f32 %v7144_v3, %v2781_v13  ;;  %v5461_v15 = vor.u32 %v6539_v62, %v5460_v61 }
  0xe0   :  { %v4225_v25 = vmax.f32 %v3341_v16, 0.0  ;;  %v3077_v27 = vadd.f32 %v7146_v5, %v2443_v17  ;;  %v6005_v16 = vor.u32 %v6675_v0, %v6004_v63  ;;  %v5465_v17 = vor.u32 %v6538_v1, %v5462_v2  ;;  %v6793_v2 = vld [vmem:[#allocation8 + $0x38] sm:$0xff] }
  0xe1   :  { %4939 = vmatpush.bf16.msrb.mxu2 %v6793_v2 }
  0xe2   :  { %v4353_v30 = vpack.c.bf16 %v4225_v25, %v4225_v25  ;;  %v3342_v31 = vmax.f32 %v3076_v26, %v3077_v27  ;;  %v2133_v33 = vpop.f32.mrf.mxu2 }
  0xe3   :  { %v2782_v36 = vpop.f32.mrf.mxu3 }
  0xe4   :  { %v4629_v40 = vunpack.c.l.b16 %v4353_v30  ;;  %v3343_v42 = vrot.slane %v3342_v31, 4  ;;  %v2783_v43 = vadd.f32 %v2782_v36, %v2133_v33  ;;  %v1796_v44 = vpop.f32.mrf.mxu0 }
  0xe5   :  { %v2445_v45 = vpop.f32.mrf.mxu1 }
  0xe6   :  { %v4757_v46 = vsel %vm4756_vm0, %v4629_v40, %v4628_v35  ;;  %v3344_v47 = vmax.f32 %v3342_v31, %v3343_v42  ;;  %v3213_v48 = vadd.f32 %v7146_v5, %v2783_v43  ;;  %v2446_v49 = vadd.f32 %v2445_v45, %v1796_v44  ;;  %v6541_v42 = vld [vmem:[#allocation2 + $0xd4] sm:$0xf0]  ;;  %v6012_v43 = vld [vmem:[#allocation2 + $0x510] sm:$0xf]  ;;  %v6540_v45 = vld [vmem:[#allocation2 + $0xd4] sm:$0xf] }
  0xe7   :  { %1835 = vmatmul.bf16.gmra.mxu0 %v5453_v34  ;;  %2175 = vmatmul.bf16.gmra.mxu2 %v5997_v37  ;;  %v6677_v44 = vld [vmem:[#allocation2 + $0x514] sm:$0xf0] }
  0xe8   :  { %v3345_v50 = vrot.slane %v3344_v47, 2  ;;  %v7165_v51 = vmax.f32 %v3212_v41, %v3213_v48  ;;  %2484 = vmatmul.bf16.gmra.mxu1 %v5457_v38  ;;  %2824 = vmatmul.bf16.gmra.mxu3 %v6001_v39  ;;  %v3078_v6 = vadd.f32 %v7144_v3, %v2446_v49  ;;  %v5468_v41 = vld [vmem:[#allocation2 + $0xd0] sm:$0xf] }
  0xea   :  { %v3346_v52 = vmax.f32 %v3344_v47, %v3345_v50  ;;  %v2136_v53 = vpop.f32.mrf.mxu2  ;;  %v6676_v50 = vld [vmem:[#allocation2 + $0x514] sm:$0xf] }
  0xeb   :  { %v2785_v54 = vpop.f32.mrf.mxu3 }
  0xec   :  { %v3347_v55 = vrot.slane %v3346_v52, 1  ;;  %v2786_v56 = vadd.f32 %v2785_v54, %v2136_v53  ;;  %v1798_v57 = vpop.f32.mrf.mxu0 }
  0xed   :  { %v2447_v58 = vpop.f32.mrf.mxu1 }
  0xee   :  { %v3348_v59 = vmax.f32 %v3346_v52, %v3347_v55  ;;  %v2448_v60 = vadd.f32 %v2447_v58, %v1798_v57  ;;  %v3214_v20 = vadd.f32 %v7144_v3, %v2786_v56  ;;  %v6014_v52 = vld [vmem:[#allocation2 + $0x518] sm:$0xf0]  ;;  %v5469_v56 = vor.u32 %v6541_v42, %v5468_v41 }
  0xef   :  { %v6013_v58 = vor.u32 %v6677_v44, %v6012_v43 }
  0xf0   :  { %v4226_v4 = vmax.f32 %v3348_v59, 0.0  ;;  %v3079_v8 = vadd.f32 %v7146_v5, %v2448_v60  ;;  %v6017_v60 = vor.u32 %v6676_v50, %v6014_v52 }
  0xf2   :  { %v4354_v11 = vpack.c.bf16 %v4226_v4, %v4226_v4  ;;  %v3349_v12 = vmax.f32 %v3078_v6, %v3079_v8  ;;  %v2138_v13 = vpop.f32.mrf.mxu2 }
  0xf3   :  { %v2787_v14 = vpop.f32.mrf.mxu3 }
  0xf4   :  { %v4630_v19 = vunpack.c.l.b16 %v4354_v11  ;;  %v3350_v21 = vrot.slane %v3349_v12, 4  ;;  %v2788_v22 = vadd.f32 %v2787_v14, %v2138_v13  ;;  %v1801_v23 = vpop.f32.mrf.mxu0 }
  0xf5   :  { %v2450_v24 = vpop.f32.mrf.mxu1 }
  0xf6   :  { %v4759_v25 = vsel %vm4758_vm1, %v4630_v19, %v4757_v46  ;;  %v3351_v26 = vmax.f32 %v3349_v12, %v3350_v21  ;;  %v3215_v27 = vadd.f32 %v7146_v5, %v2788_v22  ;;  %v2451_v28 = vadd.f32 %v2450_v24, %v1801_v23  ;;  %v5470_v46 = vld [vmem:[#allocation2 + $0xd8] sm:$0xf0]  ;;  %v5476_v22 = vld [vmem:[#allocation2 + $0xe0] sm:$0xf] }
  0xf7   :  { %1840 = vmatmul.bf16.gmra.mxu0 %v5461_v15  ;;  %2180 = vmatmul.bf16.gmra.mxu2 %v6005_v16  ;;  %v5473_v59 = vor.u32 %v6540_v45, %v5470_v46 }
  0xf8   :  { %v3352_v29 = vrot.slane %v3351_v26, 2  ;;  %v7172_v30 = vmax.f32 %v3214_v20, %v3215_v27  ;;  %2489 = vmatmul.bf16.gmra.mxu1 %v5465_v17  ;;  %2829 = vmatmul.bf16.gmra.mxu3 %v6009_v18  ;;  %v3080_v48 = vadd.f32 %v7144_v3, %v2451_v28  ;;  %v6679_v27 = vld [vmem:[#allocation2 + $0x524] sm:$0xf0] }
  0xfa   :  { %v3353_v31 = vmax.f32 %v3351_v26, %v3352_v29  ;;  %v2141_v33 = vpop.f32.mrf.mxu2  ;;  %v6543_v26 = vld [vmem:[#allocation2 + $0xe4] sm:$0xf0]  ;;  %v6542_v29 = vld [vmem:[#allocation2 + $0xe4] sm:$0xf] }
  0xfb   :  { %v2790_v34 = vpop.f32.mrf.mxu3  ;;  %v5477_v41 = vor.u32 %v6543_v26, %v5476_v22  ;;  %v6030_v26 = vld [vmem:[#allocation2 + $0x538] sm:$0xf0] }
  0xfc   :  { %v3354_v35 = vrot.slane %v3353_v31, 1  ;;  %v2791_v36 = vadd.f32 %v2790_v34, %v2141_v33  ;;  %v1803_v37 = vpop.f32.mrf.mxu0 }
  0xfd   :  { %v2452_v38 = vpop.f32.mrf.mxu1 }
  0xfe   :  { %v3355_v39 = vmax.f32 %v3353_v31, %v3354_v35  ;;  %v2453_v40 = vadd.f32 %v2452_v38, %v1803_v37  ;;  %v3216_v62 = vadd.f32 %v7144_v3, %v2791_v36  ;;  %v5478_v31 = vld [vmem:[#allocation2 + $0xe8] sm:$0xf0]  ;;  %v6678_v36 = vld [vmem:[#allocation2 + $0x524] sm:$0xf] }
  0xff   :  { %v6022_v37 = vld [vmem:[#allocation2 + $0x528] sm:$0xf0]  ;;  %v5481_v45 = vor.u32 %v6542_v29, %v5478_v31 }
 0x100   :  { %v4227_v47 = vmax.f32 %v3355_v39, 0.0  ;;  %v3081_v49 = vadd.f32 %v7146_v5, %v2453_v40  ;;  %v6025_v46 = vor.u32 %v6678_v36, %v6022_v37 }
 0x102   :  { %v4355_v53 = vpack.c.bf16 %v4227_v47, %v4227_v47  ;;  %v3356_v54 = vmax.f32 %v3080_v48, %v3081_v49  ;;  %v2143_v55 = vpop.f32.mrf.mxu2 }
 0x103   :  { %v2792_v57 = vpop.f32.mrf.mxu3 }
 0x104   :  { %v4631_v61 = vunpack.c.l.b16 %v4355_v53  ;;  %v3357_v63 = vrot.slane %v3356_v54, 4  ;;  %v2793_v0 = vadd.f32 %v2792_v57, %v2143_v55  ;;  %v1806_v1 = vpop.f32.mrf.mxu0 }
 0x105   :  { %v2455_v4 = vpop.f32.mrf.mxu1 }
 0x106   :  { %v3358_v6 = vmax.f32 %v3356_v54, %v3357_v63  ;;  %v3217_v8 = vadd.f32 %v7146_v5, %v2793_v0  ;;  %v2456_v9 = vadd.f32 %v2455_v4, %v1806_v1  ;;  %v4761_v10 = vsel %vm4760_vm2, %v4631_v61, %v4759_v25  ;;  %v6020_v25 = vld [vmem:[#allocation2 + $0x520] sm:$0xf] }
 0x107   :  { %1845 = vmatmul.bf16.gmra.mxu0 %v5469_v56  ;;  %2185 = vmatmul.bf16.gmra.mxu2 %v6013_v58  ;;  %v6021_v42 = vor.u32 %v6679_v27, %v6020_v25 }
 0x108   :  { %v3359_v11 = vrot.slane %v3358_v6, 2  ;;  %v3832_v12 = vmax.f32 %v3216_v62, %v3217_v8  ;;  %2494 = vmatmul.bf16.gmra.mxu1 %v5473_v59  ;;  %2834 = vmatmul.bf16.gmra.mxu3 %v6017_v60  ;;  %v3082_v34 = vadd.f32 %v7144_v3, %v2456_v9 }
 0x10a   :  { %v3360_v13 = vmax.f32 %v3358_v6, %v3359_v11  ;;  %v3833_v14 = vrot.slane %v3832_v12, 4  ;;  %v2146_v15 = vpop.f32.mrf.mxu2  ;;  %v5484_v11 = vld [vmem:[#allocation2 + $0xf0] sm:$0xf] }
 0x10b   :  { %v2795_v16 = vpop.f32.mrf.mxu3 }
 0x10c   :  { %v3361_v17 = vrot.slane %v3360_v13, 1  ;;  %v3834_v18 = vmax.f32 %v3832_v12, %v3833_v14  ;;  %v2796_v19 = vadd.f32 %v2795_v16, %v2146_v15  ;;  %v1808_v20 = vpop.f32.mrf.mxu0  ;;  %v6545_v12 = vld [vmem:[#allocation2 + $0xf4] sm:$0xf0] }
 0x10d   :  { %v2457_v21 = vpop.f32.mrf.mxu1  ;;  %v6681_v16 = vld [vmem:[#allocation2 + $0x534] sm:$0xf0]  ;;  %v5485_v25 = vor.u32 %v6545_v12, %v5484_v11  ;;  %v5494_v11 = vld [vmem:[#allocation2 + $0x108] sm:$0xf0] }
 0x10e   :  { %v3362_v23 = vmax.f32 %v3360_v13, %v3361_v17  ;;  %v2458_v24 = vadd.f32 %v2457_v21, %v1808_v20  ;;  %v3835_v28 = vrot.slane %v3834_v18, 2  ;;  %v3218_v48 = vadd.f32 %v7144_v3, %v2796_v19  ;;  %v5486_v19 = vld [vmem:[#allocation2 + $0xf8] sm:$0xf0] }
 0x110   :  { %v4228_v33 = vmax.f32 %v3362_v23, 0.0  ;;  %v3083_v35 = vadd.f32 %v7146_v5, %v2458_v24  ;;  %v3836_v43 = vmax.f32 %v3834_v18, %v3835_v28  ;;  %v6544_v18 = vld [vmem:[#allocation2 + $0xf4] sm:$0xf] }
 0x111   :  { %v6680_v24 = vld [vmem:[#allocation2 + $0x534] sm:$0xf] }
 0x112   :  { %v4356_v38 = vpack.c.bf16 %v4228_v33, %v4228_v33  ;;  %v3363_v39 = vmax.f32 %v3082_v34, %v3083_v35  ;;  %v2148_v40 = vpop.f32.mrf.mxu2  ;;  %v3837_v57 = vrot.slane %v3836_v43, 1  ;;  %v5489_v34 = vor.u32 %v6544_v18, %v5486_v19 }
 0x113   :  { %v2797_v44 = vpop.f32.mrf.mxu3 }
 0x114   :  { %v4632_v47 = vunpack.c.l.b16 %v4356_v38  ;;  %v3364_v49 = vrot.slane %v3363_v39, 4  ;;  %v2798_v50 = vadd.f32 %v2797_v44, %v2148_v40  ;;  %v1811_v52 = vpop.f32.mrf.mxu0  ;;  %v3838_v0 = vmax.f32 %v3836_v43, %v3837_v57 }
 0x115   :  { %v2460_v53 = vpop.f32.mrf.mxu1  ;;  %v6033_v38 = vor.u32 %v6680_v24, %v6030_v26 }
 0x116   :  { %v3365_v54 = vmax.f32 %v3363_v39, %v3364_v49  ;;  %v3219_v55 = vadd.f32 %v7146_v5, %v2798_v50  ;;  %v2461_v56 = vadd.f32 %v2460_v53, %v1811_v52  ;;  %v4763_v58 = vsel %vm4762_vm3, %v4632_v47, %v4761_v10  ;;  %v6028_v10 = vld [vmem:[#allocation2 + $0x530] sm:$0xf] }
 0x117   :  { %1850 = vmatmul.bf16.gmra.mxu0 %v5477_v41  ;;  %2190 = vmatmul.bf16.gmra.mxu2 %v6021_v42  ;;  %v4296_v17 = vmax.f32 %v3838_v0, 0.0  ;;  %v6029_v27 = vor.u32 %v6681_v16, %v6028_v10  ;;  %v6038_v10 = vld [vmem:[#allocation2 + $0x548] sm:$0xf0] }
 0x118   :  { %v3366_v59 = vrot.slane %v3365_v54, 2  ;;  %v3839_v60 = vmax.f32 %v3218_v48, %v3219_v55  ;;  %2499 = vmatmul.bf16.gmra.mxu1 %v5481_v45  ;;  %2839 = vmatmul.bf16.gmra.mxu3 %v6025_v46  ;;  %v3084_v22 = vadd.f32 %v7144_v3, %v2461_v56 }
 0x119   :  { %v4424_v35 = vpack.c.bf16 %v4296_v17, %v4296_v17 }
 0x11a   :  { %v3367_v61 = vmax.f32 %v3365_v54, %v3366_v59  ;;  %v3840_v62 = vrot.slane %v3839_v60, 4  ;;  %v2151_v63 = vpop.f32.mrf.mxu2 }
 0x11b   :  { %v2800_v1 = vpop.f32.mrf.mxu3  ;;  %v4700_v50 = vunpack.c.l.b16 %v4424_v35 }
 0x11c   :  { %v3368_v2 = vrot.slane %v3367_v61, 1  ;;  %v3841_v4 = vmax.f32 %v3839_v60, %v3840_v62  ;;  %v2801_v6 = vadd.f32 %v2800_v1, %v2151_v63  ;;  %v1813_v8 = vpop.f32.mrf.mxu0 }
 0x11d   :  { %v2462_v9 = vpop.f32.mrf.mxu1 }
 0x11e   :  { %v3369_v13 = vmax.f32 %v3367_v61, %v3368_v2  ;;  %v3842_v14 = vrot.slane %v3841_v4, 2  ;;  %v2463_v15 = vadd.f32 %v2462_v9, %v1813_v8  ;;  %v3220_v36 = vadd.f32 %v7144_v3, %v2801_v6  ;;  %v5492_v2 = vld [vmem:[#allocation2 + $0x100] sm:$0xf]  ;;  %v6683_v8 = vld [vmem:[#allocation2 + $0x544] sm:$0xf0] }
 0x11f   :  { %v6036_v6 = vld [vmem:[#allocation2 + $0x540] sm:$0xf]  ;;  %v6546_v9 = vld [vmem:[#allocation2 + $0x104] sm:$0xf] }
 0x120   :  { %v4229_v20 = vmax.f32 %v3369_v13, 0.0  ;;  %v3843_v21 = vmax.f32 %v3841_v4, %v3842_v14  ;;  %v3085_v23 = vadd.f32 %v7146_v5, %v2463_v15  ;;  %v6547_v4 = vld [vmem:[#allocation2 + $0x104] sm:$0xf0]  ;;  %v6682_v15 = vld [vmem:[#allocation2 + $0x544] sm:$0xf] }
 0x121   :  { %v5493_v19 = vor.u32 %v6547_v4, %v5492_v2 }
 0x122   :  { %v4357_v28 = vpack.c.bf16 %v4229_v20, %v4229_v20  ;;  %v3844_v29 = vrot.slane %v3843_v21, 1  ;;  %v3370_v31 = vmax.f32 %v3084_v22, %v3085_v23  ;;  %v2153_v33 = vpop.f32.mrf.mxu2  ;;  %v5497_v22 = vor.u32 %v6546_v9, %v5494_v11 }
 0x123   :  { %v2802_v37 = vpop.f32.mrf.mxu3  ;;  %v6041_v23 = vor.u32 %v6682_v15, %v6038_v10 }
 0x124   :  { %v4633_v39 = vunpack.c.l.b16 %v4357_v28  ;;  %v3845_v40 = vmax.f32 %v3843_v21, %v3844_v29  ;;  %v3371_v41 = vrot.slane %v3370_v31, 4  ;;  %v2803_v42 = vadd.f32 %v2802_v37, %v2153_v33  ;;  %v1816_v43 = vpop.f32.mrf.mxu0 }
 0x125   :  { %v2465_v44 = vpop.f32.mrf.mxu1  ;;  %v6037_v21 = vor.u32 %v6683_v8, %v6036_v6 }
 0x126   :  { %v4297_v45 = vmax.f32 %v3845_v40, 0.0  ;;  %v3372_v46 = vmax.f32 %v3370_v31, %v3371_v41  ;;  %v3221_v47 = vadd.f32 %v7146_v5, %v2803_v42  ;;  %v2466_v48 = vadd.f32 %v2465_v44, %v1816_v43 }
 0x127   :  { %1855 = vmatmul.bf16.gmra.mxu0 %v5485_v25  ;;  %2195 = vmatmul.bf16.gmra.mxu2 %v6029_v27  ;;  %v4765_v49 = vsel %vm4764_vm4, %v4633_v39, %v4763_v58 }
 0x128   :  { %v4425_v52 = vpack.c.bf16 %v4297_v45, %v4297_v45  ;;  %v3373_v53 = vrot.slane %v3372_v46, 2  ;;  %v7189_v54 = vmax.f32 %v3220_v36, %v3221_v47  ;;  %2504 = vmatmul.bf16.gmra.mxu1 %v5489_v34  ;;  %2844 = vmatmul.bf16.gmra.mxu3 %v6033_v38  ;;  %v3086_v13 = vadd.f32 %v7144_v3, %v2466_v48  ;;  %v5500_v47 = vld [vmem:[#allocation2 + $0x110] sm:$0xf]  ;;  %v6549_v48 = vld [vmem:[#allocation2 + $0x114] sm:$0xf0] }
 0x12a   :  { %v4701_v55 = vunpack.c.l.b16 %v4425_v52  ;;  %v3374_v56 = vmax.f32 %v3372_v46, %v3373_v53  ;;  %v2156_v57 = vpop.f32.mrf.mxu2  ;;  %v6685_v52 = vld [vmem:[#allocation2 + $0x554] sm:$0xf0]  ;;  %v6548_v53 = vld [vmem:[#allocation2 + $0x114] sm:$0xf] }
 0x12b   :  { %v2805_v59 = vpop.f32.mrf.mxu3 }
 0x12c   :  { %v7192_v60 = vsel %vm4756_vm0, %v4701_v55, %v4700_v50  ;;  %v3375_v61 = vrot.slane %v3374_v56, 1  ;;  %v2806_v62 = vadd.f32 %v2805_v59, %v2156_v57  ;;  %v1818_v63 = vpop.f32.mrf.mxu0  ;;  %v6044_v50 = vld [vmem:[#allocation2 + $0x550] sm:$0xf]  ;;  %v6684_v59 = vld [vmem:[#allocation2 + $0x554] sm:$0xf] }
 0x12d   :  { %v2467_v0 = vpop.f32.mrf.mxu1  ;;  %v6045_v2 = vor.u32 %v6685_v52, %v6044_v50 }
 0x12e   :  { %v3376_v1 = vmax.f32 %v3374_v56, %v3375_v61  ;;  %v2468_v58 = vadd.f32 %v2467_v0, %v1818_v63  ;;  %v3222_v26 = vadd.f32 %v7144_v3, %v2806_v62  ;;  %v6046_v61 = vld [vmem:[#allocation2 + $0x558] sm:$0xf0] }
 0x12f   :  { %v6049_v6 = vor.u32 %v6684_v59, %v6046_v61 }
 0x130   :  { %v4230_v12 = vmax.f32 %v3376_v1, 0.0  ;;  %v3087_v14 = vadd.f32 %v7146_v5, %v2468_v58  ;;  %v5501_v1 = vor.u32 %v6549_v48, %v5500_v47 }
 0x132   :  { %v4358_v16 = vpack.c.bf16 %v4230_v12, %v4230_v12  ;;  %v3377_v17 = vmax.f32 %v3086_v13, %v3087_v14  ;;  %v2158_v18 = vpop.f32.mrf.mxu2 }
 0x133   :  { %v2807_v20 = vpop.f32.mrf.mxu3 }
 0x134   :  { %v4634_v24 = vunpack.c.l.b16 %v4358_v16  ;;  %v3378_v25 = vrot.slane %v3377_v17, 4  ;;  %v2808_v27 = vadd.f32 %v2807_v20, %v2158_v18  ;;  %v1821_v28 = vpop.f32.mrf.mxu0 }
 0x135   :  { %v2470_v29 = vpop.f32.mrf.mxu1 }
 0x136   :  { %v3379_v31 = vmax.f32 %v3377_v17, %v3378_v25  ;;  %v3223_v33 = vadd.f32 %v7146_v5, %v2808_v27  ;;  %v2471_v34 = vadd.f32 %v2470_v29, %v1821_v28  ;;  %v4767_v35 = vsel %vm4766_vm5, %v4634_v24, %v4765_v49  ;;  %v5502_v49 = vld [vmem:[#allocation2 + $0x118] sm:$0xf0]  ;;  %v5508_v27 = vld [vmem:[#allocation2 + $0x120] sm:$0xf]  ;;  %v6551_v28 = vld [vmem:[#allocation2 + $0x124] sm:$0xf0] }
 0x137   :  { %1860 = vmatmul.bf16.gmra.mxu0 %v5493_v19  ;;  %2200 = vmatmul.bf16.gmra.mxu2 %v6037_v21  ;;  %v5505_v4 = vor.u32 %v6548_v53, %v5502_v49  ;;  %v6052_v29 = vld [vmem:[#allocation2 + $0x560] sm:$0xf] }
 0x138   :  { %v3380_v36 = vrot.slane %v3379_v31, 2  ;;  %v7199_v37 = vmax.f32 %v3222_v26, %v3223_v33  ;;  %2509 = vmatmul.bf16.gmra.mxu1 %v5497_v22  ;;  %2849 = vmatmul.bf16.gmra.mxu3 %v6041_v23  ;;  %v3088_v56 = vadd.f32 %v7144_v3, %v2471_v34  ;;  %v6687_v34 = vld [vmem:[#allocation2 + $0x564] sm:$0xf0] }
 0x13a   :  { %v3381_v38 = vmax.f32 %v3379_v31, %v3380_v36  ;;  %v2161_v39 = vpop.f32.mrf.mxu2  ;;  %v5510_v36 = vld [vmem:[#allocation2 + $0x128] sm:$0xf0] }
 0x13b   :  { %v2810_v40 = vpop.f32.mrf.mxu3 }
 0x13c   :  { %v3382_v41 = vrot.slane %v3381_v38, 1  ;;  %v2811_v42 = vadd.f32 %v2810_v40, %v2161_v39  ;;  %v1823_v43 = vpop.f32.mrf.mxu0  ;;  %v6054_v39 = vld [vmem:[#allocation2 + $0x568] sm:$0xf0] }
 0x13d   :  { %v2472_v44 = vpop.f32.mrf.mxu1 }
 0x13e   :  { %v3383_v45 = vmax.f32 %v3381_v38, %v3382_v41  ;;  %v2473_v46 = vadd.f32 %v2472_v44, %v1823_v43  ;;  %v3224_v8 = vadd.f32 %v7144_v3, %v2811_v42  ;;  %v6686_v38 = vld [vmem:[#allocation2 + $0x564] sm:$0xf]  ;;  %v5509_v44 = vor.u32 %v6551_v28, %v5508_v27 }
 0x13f   :  { %v6057_v53 = vor.u32 %v6686_v38, %v6054_v39 }
 0x140   :  { %v4231_v55 = vmax.f32 %v3383_v45, 0.0  ;;  %v3089_v57 = vadd.f32 %v7146_v5, %v2473_v46  ;;  %v6053_v45 = vor.u32 %v6687_v34, %v6052_v29 }
 0x142   :  { %v4359_v62 = vpack.c.bf16 %v4231_v55, %v4231_v55  ;;  %v3384_v63 = vmax.f32 %v3088_v56, %v3089_v57  ;;  %v2163_v0 = vpop.f32.mrf.mxu2 }
 0x143   :  { %v2812_v58 = vpop.f32.mrf.mxu3 }
 0x144   :  { %v3385_v9 = vrot.slane %v3384_v63, 4  ;;  %v2813_v11 = vadd.f32 %v2812_v58, %v2163_v0  ;;  %v1826_v12 = vpop.f32.mrf.mxu0  ;;  %v4635_v13 = vunpack.c.l.b16 %v4359_v62 }
 0x145   :  { %v2475_v14 = vpop.f32.mrf.mxu1 }
 0x146   :  { %v3225_v15 = vadd.f32 %v7146_v5, %v2813_v11  ;;  %v2476_v10 = vadd.f32 %v2475_v14, %v1826_v12  ;;  %v3386_v16 = vmax.f32 %v3384_v63, %v3385_v9  ;;  %v7206_v17 = vsel %vm4768_vm6, %v4635_v13, %v4767_v35  ;;  %v6550_v35 = vld [vmem:[#allocation2 + $0x124] sm:$0xf]  ;;  %v5516_v12 = vld [vmem:[#allocation2 + $0x130] sm:$0xf]  ;;  %v6553_v13 = vld [vmem:[#allocation2 + $0x134] sm:$0xf0] }
 0x147   :  { %1865 = vmatmul.bf16.gmra.mxu0 %v5501_v1  ;;  %2205 = vmatmul.bf16.gmra.mxu2 %v6045_v2  ;;  %v5513_v46 = vor.u32 %v6550_v35, %v5510_v36  ;;  %v6060_v14 = vld [vmem:[#allocation2 + $0x570] sm:$0xf]  ;;  %v5517_v28 = vor.u32 %v6553_v13, %v5516_v12  ;;  %v6070_v12 = vld [vmem:[#allocation2 + $0x588] sm:$0xf0] }
 0x148   :  { %v7208_v18 = vmax.f32 %v3224_v8, %v3225_v15  ;;  %2514 = vmatmul.bf16.gmra.mxu1 %v5505_v4  ;;  %2854 = vmatmul.bf16.gmra.mxu3 %v6049_v6  ;;  %v3387_v20 = vrot.slane %v3386_v16, 2  ;;  %v3090_v31 = vadd.f32 %v7144_v3, %v2476_v10  ;;  %v6689_v10 = vld [vmem:[#allocation2 + $0x574] sm:$0xf0] }
 0x14a   :  { %v2166_v19 = vpop.f32.mrf.mxu2  ;;  %v3388_v25 = vmax.f32 %v3386_v16, %v3387_v20  ;;  %v6552_v16 = vld [vmem:[#allocation2 + $0x134] sm:$0xf] }
 0x14b   :  { %v2815_v21 = vpop.f32.mrf.mxu3 }
 0x14c   :  { %v2816_v22 = vadd.f32 %v2815_v21, %v2166_v19  ;;  %v1828_v23 = vpop.f32.mrf.mxu0  ;;  %v3389_v42 = vrot.slane %v3388_v25, 1  ;;  %v5518_v19 = vld [vmem:[#allocation2 + $0x138] sm:$0xf0] }
 0x14d   :  { %v2477_v24 = vpop.f32.mrf.mxu1  ;;  %v5521_v34 = vor.u32 %v6552_v16, %v5518_v19 }
 0x14e   :  { %v2478_v26 = vadd.f32 %v2477_v24, %v1828_v23  ;;  %v3226_v47 = vadd.f32 %v7144_v3, %v2816_v22  ;;  %v3390_v59 = vmax.f32 %v3388_v25, %v3389_v42  ;;  %v6688_v23 = vld [vmem:[#allocation2 + $0x574] sm:$0xf]  ;;  %v6062_v24 = vld [vmem:[#allocation2 + $0x578] sm:$0xf0] }
 0x14f   :  { %v6065_v35 = vor.u32 %v6688_v23, %v6062_v24 }
 0x150   :  { %v3091_v33 = vadd.f32 %v7146_v5, %v2478_v26  ;;  %v4232_v1 = vmax.f32 %v3390_v59, 0.0 }
 0x152   :  { %v3391_v40 = vmax.f32 %v3090_v31, %v3091_v33  ;;  %v2168_v41 = vpop.f32.mrf.mxu2  ;;  %v4360_v15 = vpack.c.bf16 %v4232_v1, %v4232_v1  ;;  %v6061_v33 = vor.u32 %v6689_v10, %v6060_v14  ;;  %v6554_v1 = vld [vmem:[#allocation2 + $0x144] sm:$0xf] }
 0x153   :  { %v2817_v43 = vpop.f32.mrf.mxu3 }
 0x154   :  { %v3392_v48 = vrot.slane %v3391_v40, 4  ;;  %v2818_v50 = vadd.f32 %v2817_v43, %v2168_v41  ;;  %v1831_v52 = vpop.f32.mrf.mxu0  ;;  %v4636_v29 = vunpack.c.l.b16 %v4360_v15 }
 0x155   :  { %v2480_v49 = vpop.f32.mrf.mxu1 }
 0x156   :  { %v3393_v55 = vmax.f32 %v3391_v40, %v3392_v48  ;;  %v3227_v56 = vadd.f32 %v7146_v5, %v2818_v50  ;;  %v2481_v57 = vadd.f32 %v2480_v49, %v1831_v52 }
 0x157   :  { %1870 = vmatmul.bf16.gmra.mxu0 %v5509_v44  ;;  %2210 = vmatmul.bf16.gmra.mxu2 %v6053_v45 }
 0x158   :  { %v3394_v61 = vrot.slane %v3393_v55, 2  ;;  %v7214_v62 = vmax.f32 %v3226_v47, %v3227_v56  ;;  %2519 = vmatmul.bf16.gmra.mxu1 %v5513_v46  ;;  %2859 = vmatmul.bf16.gmra.mxu3 %v6057_v53  ;;  %v3092_v21 = vadd.f32 %v7144_v3, %v2481_v57 }
 0x15a   :  { %v3395_v63 = vmax.f32 %v3393_v55, %v3394_v61  ;;  %v2171_v0 = vpop.f32.mrf.mxu2  ;;  %v5524_v61 = vld [vmem:[#allocation2 + $0x140] sm:$0xf] }
 0x15b   :  { %v2820_v58 = vpop.f32.mrf.mxu3 }
 0x15c   :  { %v3396_v2 = vrot.slane %v3395_v63, 1  ;;  %v2821_v4 = vadd.f32 %v2820_v58, %v2171_v0  ;;  %v1833_v6 = vpop.f32.mrf.mxu0  ;;  %v6691_v0 = vld [vmem:[#allocation2 + $0x584] sm:$0xf0]  ;;  %v5526_v58 = vld [vmem:[#allocation2 + $0x148] sm:$0xf0] }
 0x15d   :  { %v2482_v8 = vpop.f32.mrf.mxu1 }
 0x15e   :  { %v3397_v9 = vmax.f32 %v3395_v63, %v3396_v2  ;;  %v2483_v11 = vadd.f32 %v2482_v8, %v1833_v6  ;;  %v3228_v38 = vadd.f32 %v7144_v3, %v2821_v4  ;;  %v6555_v63 = vld [vmem:[#allocation2 + $0x144] sm:$0xf0]  ;;  %v7223_v4 = vld [vmem:[#allocation7] sm:$0xff] }
 0x15f   :  { %v7226_v8 = vld [vmem:[#allocation7 + $0x8] sm:$0xff]  ;;  %v5525_v16 = vor.u32 %v6555_v63, %v5524_v61  ;;  %v6693_v61 = vld [vmem:[#allocation2 + $0x594] sm:$0xf0]  ;;  %v6556_v63 = vld [vmem:[#allocation2 + $0x154] sm:$0xf] }
 0x160   :  { %v4233_v20 = vmax.f32 %v3397_v9, 0.0  ;;  %v3093_v22 = vadd.f32 %v7146_v5, %v2483_v11  ;;  %v6690_v11 = vld [vmem:[#allocation2 + $0x584] sm:$0xf] }
 0x162   :  { %v4361_v26 = vpack.c.bf16 %v4233_v20, %v4233_v20  ;;  %v3398_v25 = vmax.f32 %v3092_v21, %v3093_v22  ;;  %v2173_v27 = vpop.f32.mrf.mxu2  ;;  %v5529_v20 = vor.u32 %v6554_v1, %v5526_v58  ;;  %v6073_v21 = vor.u32 %v6690_v11, %v6070_v12 }
 0x163   :  { %v2822_v31 = vpop.f32.mrf.mxu3 }
 0x164   :  { %v4637_v36 = vunpack.c.l.b16 %v4361_v26  ;;  %v3399_v39 = vrot.slane %v3398_v25, 4  ;;  %v2823_v40 = vadd.f32 %v2822_v31, %v2173_v27  ;;  %v1836_v41 = vpop.f32.mrf.mxu0  ;;  %v3847_v27 = vrot.slane %v7189_v54, 4 }
 0x165   :  { %v2485_v42 = vpop.f32.mrf.mxu1 }
 0x166   :  { %v4770_v43 = vsel %vm4756_vm0, %v4637_v36, %v4636_v29  ;;  %v3400_v44 = vmax.f32 %v3398_v25, %v3399_v39  ;;  %v3229_v45 = vadd.f32 %v7146_v5, %v2823_v40  ;;  %v2486_v46 = vadd.f32 %v2485_v42, %v1836_v41  ;;  %v6068_v5 = vld [vmem:[#allocation2 + $0x580] sm:$0xf] }
 0x167   :  { %1875 = vmatmul.bf16.gmra.mxu0 %v5517_v28  ;;  %2215 = vmatmul.bf16.gmra.mxu2 %v6061_v33  ;;  %v6069_v19 = vor.u32 %v6691_v0, %v6068_v5  ;;  %v3854_v39 = vrot.slane %v7199_v37, 4  ;;  %v3861_v40 = vrot.slane %v7208_v18, 4  ;;  %v5534_v5 = vld [vmem:[#allocation2 + $0x158] sm:$0xf0] }
 0x168   :  { %v3401_v47 = vrot.slane %v3400_v44, 2  ;;  %v7221_v48 = vmax.f32 %v3228_v38, %v3229_v45  ;;  %2524 = vmatmul.bf16.gmra.mxu1 %v5521_v34  ;;  %2864 = vmatmul.bf16.gmra.mxu3 %v6065_v35  ;;  %v3094_v6 = vadd.f32 %v7223_v4, %v2486_v46  ;;  %v3848_v38 = vmax.f32 %v7189_v54, %v3847_v27 }
 0x16a   :  { %v3402_v50 = vmax.f32 %v3400_v44, %v3401_v47  ;;  %v2176_v52 = vpop.f32.mrf.mxu2  ;;  %v3875_v11 = vrot.slane %v7221_v48, 4 }
 0x16b   :  { %v2825_v3 = vpop.f32.mrf.mxu3 }
 0x16c   :  { %v3403_v53 = vrot.slane %v3402_v50, 1  ;;  %v2826_v49 = vadd.f32 %v2825_v3, %v2176_v52  ;;  %v1838_v55 = vpop.f32.mrf.mxu0  ;;  %v3855_v52 = vmax.f32 %v7199_v37, %v3854_v39  ;;  %v3862_v3 = vmax.f32 %v7208_v18, %v3861_v40  ;;  %v6078_v37 = vld [vmem:[#allocation2 + $0x598] sm:$0xf0] }
 0x16d   :  { %v2487_v56 = vpop.f32.mrf.mxu1 }
 0x16e   :  { %v3404_v57 = vmax.f32 %v3402_v50, %v3403_v53  ;;  %v2488_v59 = vadd.f32 %v2487_v56, %v1838_v55  ;;  %v3230_v23 = vadd.f32 %v7223_v4, %v2826_v49  ;;  %v3849_v50 = vrot.slane %v3848_v38, 2  ;;  %v5532_v56 = vld [vmem:[#allocation2 + $0x150] sm:$0xf] }
 0x16f   :  { %v3868_v53 = vrot.slane %v7214_v62, 4  ;;  %v3863_v18 = vrot.slane %v3862_v3, 2 }
 0x170   :  { %v4234_v2 = vmax.f32 %v3404_v57, 0.0  ;;  %v3095_v9 = vadd.f32 %v7226_v8, %v2488_v59  ;;  %v6557_v57 = vld [vmem:[#allocation2 + $0x154] sm:$0xf0]  ;;  %v6076_v59 = vld [vmem:[#allocation2 + $0x590] sm:$0xf]  ;;  %v3850_v12 = vmax.f32 %v3848_v38, %v3849_v50 }
 0x172   :  { %v4362_v13 = vpack.c.bf16 %v4234_v2, %v4234_v2  ;;  %v3405_v14 = vmax.f32 %v3094_v6, %v3095_v9  ;;  %v2178_v15 = vpop.f32.mrf.mxu2  ;;  %v6692_v2 = vld [vmem:[#allocation2 + $0x594] sm:$0xf]  ;;  %v3856_v6 = vrot.slane %v3855_v52, 2  ;;  %v3869_v9 = vmax.f32 %v7214_v62, %v3868_v53 }
 0x173   :  { %v2827_v10 = vpop.f32.mrf.mxu3 }
 0x174   :  { %v4638_v22 = vunpack.c.l.b16 %v4362_v13  ;;  %v3406_v24 = vrot.slane %v3405_v14, 4  ;;  %v2828_v26 = vadd.f32 %v2827_v10, %v2178_v15  ;;  %v1841_v25 = vpop.f32.mrf.mxu0  ;;  %v3857_v27 = vmax.f32 %v3855_v52, %v3856_v6  ;;  %v6084_v6 = vld [vmem:[#allocation2 + $0x5a0] sm:$0xf] }
 0x175   :  { %v2490_v28 = vpop.f32.mrf.mxu1  ;;  %v3870_v62 = vrot.slane %v3869_v9, 2 }
 0x176   :  { %v7232_v29 = vsel %vm4758_vm1, %v4638_v22, %v4770_v43  ;;  %v3407_v31 = vmax.f32 %v3405_v14, %v3406_v24  ;;  %v3231_v33 = vadd.f32 %v7226_v8, %v2828_v26  ;;  %v2491_v34 = vadd.f32 %v2490_v28, %v1841_v25  ;;  %v6792_v43 = vld [vmem:[#allocation8 + $0x30] sm:$0xff] }
 0x177   :  { %1880 = vmatmul.bf16.gmra.mxu0 %v5525_v16  ;;  %2220 = vmatmul.bf16.gmra.mxu2 %v6069_v19  ;;  %v5533_v16 = vor.u32 %v6557_v57, %v5532_v56  ;;  %v6077_v19 = vor.u32 %v6693_v61, %v6076_v59  ;;  %v3864_v28 = vmax.f32 %v3862_v3, %v3863_v18  ;;  %v6695_v18 = vld [vmem:[#allocation2 + $0x5a4] sm:$0xf0] }
 0x178   :  { %v3408_v35 = vrot.slane %v3407_v31, 2  ;;  %v7235_v36 = vmax.f32 %v3230_v23, %v3231_v33  ;;  %2529 = vmatmul.bf16.gmra.mxu1 %v5529_v20  ;;  %2869 = vmatmul.bf16.gmra.mxu3 %v6073_v21  ;;  %v3096_v1 = vadd.f32 %v7223_v4, %v2491_v34  ;;  %v5537_v20 = vor.u32 %v6556_v63, %v5534_v5 }
 0x179   :  { %4940 = vmatpush.bf16.msrb.mxu2 %v6792_v43  ;;  %v6081_v21 = vor.u32 %v6692_v2, %v6078_v37 }
 0x17a   :  { %v3409_v41 = vmax.f32 %v3407_v31, %v3408_v35  ;;  %v2181_v42 = vpop.f32.mrf.mxu2  ;;  %v3876_v31 = vmax.f32 %v7221_v48, %v3875_v11  ;;  %v3882_v40 = vrot.slane %v7235_v36, 4  ;;  %v3865_v48 = vrot.slane %v3864_v28, 1  ;;  %v5542_v11 = vld [vmem:[#allocation2 + $0x168] sm:$0xf0] }
 0x17b   :  { %v2830_v44 = vpop.f32.mrf.mxu3 }
 0x17c   :  { %v3410_v45 = vrot.slane %v3409_v41, 1  ;;  %v2831_v46 = vadd.f32 %v2830_v44, %v2181_v42  ;;  %v1843_v47 = vpop.f32.mrf.mxu0  ;;  %v3858_v44 = vrot.slane %v3857_v27, 1  ;;  %v3883_v3 = vmax.f32 %v7235_v36, %v3882_v40  ;;  %v6558_v36 = vld [vmem:[#allocation2 + $0x164] sm:$0xf] }
 0x17d   :  { %v2492_v54 = vpop.f32.mrf.mxu1  ;;  %v3866_v59 = vmax.f32 %v3864_v28, %v3865_v48 }
 0x17e   :  { %v3411_v49 = vmax.f32 %v3409_v41, %v3410_v45  ;;  %v2493_v55 = vadd.f32 %v2492_v54, %v1843_v47  ;;  %v3232_v23 = vadd.f32 %v7223_v4, %v2831_v46  ;;  %v3851_v41 = vrot.slane %v3850_v12, 1 }
 0x17f   :  { %v3871_v45 = vmax.f32 %v3869_v9, %v3870_v62  ;;  %v3877_v46 = vrot.slane %v3876_v31, 2  ;;  %v3859_v57 = vmax.f32 %v3857_v27, %v3858_v44  ;;  %v3884_v9 = vrot.slane %v3883_v3, 2 }
 0x180   :  { %v4235_v0 = vmax.f32 %v3411_v49, 0.0  ;;  %v3097_v58 = vadd.f32 %v7226_v8, %v2493_v55  ;;  %v3852_v53 = vmax.f32 %v3850_v12, %v3851_v41 }
 0x181   :  { %v3872_v61 = vrot.slane %v3871_v45, 1  ;;  %v3878_v63 = vmax.f32 %v3876_v31, %v3877_v46  ;;  %v3885_v28 = vmax.f32 %v3883_v3, %v3884_v9  ;;  %v6085_v31 = vor.u32 %v6695_v18, %v6084_v6 }
 0x182   :  { %v4363_v13 = vpack.c.bf16 %v4235_v0, %v4235_v0  ;;  %v3412_v14 = vmax.f32 %v3096_v1, %v3097_v58  ;;  %v2183_v15 = vpop.f32.mrf.mxu2  ;;  %v5540_v0 = vld [vmem:[#allocation2 + $0x160] sm:$0xf]  ;;  %v6559_v1 = vld [vmem:[#allocation2 + $0x164] sm:$0xf0]  ;;  %v4298_v12 = vmax.f32 %v3852_v53, 0.0 }
 0x183   :  { %v2832_v10 = vpop.f32.mrf.mxu3  ;;  %v5541_v27 = vor.u32 %v6559_v1, %v5540_v0  ;;  %v6697_v0 = vld [vmem:[#allocation2 + $0x5b4] sm:$0xf0] }
 0x184   :  { %v4639_v22 = vunpack.c.l.b16 %v4363_v13  ;;  %v3413_v24 = vrot.slane %v3412_v14, 4  ;;  %v2833_v26 = vadd.f32 %v2832_v10, %v2183_v15  ;;  %v1846_v25 = vpop.f32.mrf.mxu0  ;;  %v6694_v10 = vld [vmem:[#allocation2 + $0x5a4] sm:$0xf]  ;;  %v4426_v44 = vpack.c.bf16 %v4298_v12, %v4298_v12 }
 0x185   :  { %v2495_v33 = vpop.f32.mrf.mxu1 }
 0x186   :  { %v3414_v34 = vmax.f32 %v3412_v14, %v3413_v24  ;;  %v3233_v35 = vadd.f32 %v7226_v8, %v2833_v26  ;;  %v2496_v38 = vadd.f32 %v2495_v33, %v1846_v25  ;;  %v7252_v39 = vsel %vm4760_vm2, %v4639_v22, %v7232_v29 }
 0x187   :  { %1885 = vmatmul.bf16.gmra.mxu0 %v5533_v16  ;;  %2225 = vmatmul.bf16.gmra.mxu2 %v6077_v19  ;;  %v6086_v16 = vld [vmem:[#allocation2 + $0x5a8] sm:$0xf0]  ;;  %v4299_v19 = vmax.f32 %v3859_v57, 0.0  ;;  %v3879_v22 = vrot.slane %v3878_v63, 1  ;;  %v5545_v33 = vor.u32 %v6558_v36, %v5542_v11  ;;  %v7264_v57 = vld [vmem:[#allocation2 + $0x170] sm:$0xf]  ;;  %v4702_v6 = vunpack.c.l.b16 %v4426_v44 }
 0x188   :  { %v3415_v42 = vrot.slane %v3414_v34, 2  ;;  %v3888_v43 = vmax.f32 %v3232_v23, %v3233_v35  ;;  %2534 = vmatmul.bf16.gmra.mxu1 %v5537_v20  ;;  %2874 = vmatmul.bf16.gmra.mxu3 %v6081_v21  ;;  %v3098_v14 = vadd.f32 %v7223_v4, %v2496_v38  ;;  %v4300_v20 = vmax.f32 %v3866_v59, 0.0 }
 0x189   :  { %v3873_v21 = vmax.f32 %v3871_v45, %v3872_v61  ;;  %v4427_v48 = vpack.c.bf16 %v4299_v19, %v4299_v19  ;;  %v3880_v53 = vmax.f32 %v3878_v63, %v3879_v22  ;;  %v7266_v61 = vld [vmem:[#allocation2 + $0x174] sm:$0xf0] }
 0x18a   :  { %v3416_v47 = vmax.f32 %v3414_v34, %v3415_v42  ;;  %v3889_v50 = vrot.slane %v3888_v43, 4  ;;  %v2186_v52 = vpop.f32.mrf.mxu2  ;;  %v6089_v34 = vor.u32 %v6694_v10, %v6086_v16 }
 0x18b   :  { %v2835_v29 = vpop.f32.mrf.mxu3  ;;  %v4301_v45 = vmax.f32 %v3873_v21, 0.0  ;;  %v4703_v18 = vunpack.c.l.b16 %v4427_v48  ;;  %v4302_v36 = vmax.f32 %v3880_v53, 0.0 }
 0x18c   :  { %v3417_v54 = vrot.slane %v3416_v47, 1  ;;  %v3890_v49 = vmax.f32 %v3888_v43, %v3889_v50  ;;  %v2836_v55 = vadd.f32 %v2835_v29, %v2186_v52  ;;  %v1848_v56 = vpop.f32.mrf.mxu0  ;;  %v6801_v43 = vld [vmem:[#allocation10 + $0x38] sm:$0xff]  ;;  %v4428_v29 = vpack.c.bf16 %v4300_v20, %v4300_v20 }
 0x18d   :  { %v2497_v5 = vpop.f32.mrf.mxu1  ;;  %5080 = vmatpush.bf16.msrb.mxu3 %v6801_v43  ;;  %v4429_v59 = vpack.c.bf16 %v4301_v45, %v4301_v45  ;;  %v5549_v20 = vor.u32 %v7266_v61, %v7264_v57 }
 0x18e   :  { %v3418_v58 = vmax.f32 %v3416_v47, %v3417_v54  ;;  %v3891_v2 = vrot.slane %v3890_v49, 2  ;;  %v2498_v37 = vadd.f32 %v2497_v5, %v1848_v56  ;;  %v3234_v38 = vadd.f32 %v7223_v4, %v2836_v55  ;;  %v7268_v5 = vld [vmem:[#allocation2 + $0x5b0] sm:$0xf] }
 0x18f   :  { %v4704_v9 = vunpack.c.l.b16 %v4428_v29  ;;  %v4705_v16 = vunpack.c.l.b16 %v4429_v59  ;;  %v6093_v21 = vor.u32 %v6697_v0, %v7268_v5 }
 0x190   :  { %v4236_v13 = vmax.f32 %v3418_v58, 0.0  ;;  %v3099_v15 = vadd.f32 %v7226_v8, %v2498_v37  ;;  %v3892_v24 = vmax.f32 %v3890_v49, %v3891_v2  ;;  %v3886_v49 = vrot.slane %v3885_v28, 1  ;;  %v7270_v37 = vld [vmem:[#allocation2 + $0x174] sm:$0xf] }
 0x192   :  { %v4364_v23 = vpack.c.bf16 %v4236_v13, %v4236_v13  ;;  %v3419_v26 = vmax.f32 %v3098_v14, %v3099_v15  ;;  %v2188_v25 = vpop.f32.mrf.mxu2  ;;  %v3893_v47 = vrot.slane %v3892_v24, 1  ;;  %v3887_v10 = vmax.f32 %v3885_v28, %v3886_v49 }
 0x193   :  { %v2837_v62 = vpop.f32.mrf.mxu3  ;;  %v4827_v28 = vsel %vm4758_vm1, %v4702_v6, %v7192_v60 }
 0x194   :  { %v4640_v35 = vunpack.c.l.b16 %v4364_v23  ;;  %v3420_v40 = vrot.slane %v3419_v26, 4  ;;  %v2838_v41 = vadd.f32 %v2837_v62, %v2188_v25  ;;  %v1851_v42 = vpop.f32.mrf.mxu0  ;;  %v3894_v63 = vmax.f32 %v3892_v24, %v3893_v47  ;;  %v6094_v62 = vld [vmem:[#allocation2 + $0x5b8] sm:$0xf0] }
 0x195   :  { %v2500_v46 = vpop.f32.mrf.mxu1 }
 0x196   :  { %v3421_v50 = vmax.f32 %v3419_v26, %v3420_v40  ;;  %v3235_v52 = vadd.f32 %v7226_v8, %v2838_v41  ;;  %v2501_v3 = vadd.f32 %v2500_v46, %v1851_v42  ;;  %v7262_v54 = vsel %vm4762_vm3, %v4640_v35, %v7252_v39  ;;  %v5550_v39 = vld [vmem:[#allocation2 + $0x178] sm:$0xf0] }
 0x197   :  { %1890 = vmatmul.bf16.gmra.mxu0 %v5541_v27  ;;  %2230 = vmatmul.bf16.gmra.mxu2 %v6085_v31  ;;  %v5553_v22 = vor.u32 %v7270_v37, %v5550_v39  ;;  %v4304_v23 = vmax.f32 %v3894_v63, 0.0  ;;  %v6696_v27 = vld [vmem:[#allocation2 + $0x5b4] sm:$0xf]  ;;  %v4828_v41 = vsel %vm4760_vm2, %v4703_v18, %v4827_v28 }
 0x198   :  { %v3422_v55 = vrot.slane %v3421_v50, 2  ;;  %v3895_v56 = vmax.f32 %v3234_v38, %v3235_v52  ;;  %2539 = vmatmul.bf16.gmra.mxu1 %v5545_v33  ;;  %2879 = vmatmul.bf16.gmra.mxu3 %v6089_v34  ;;  %v3100_v31 = vadd.f32 %v7223_v4, %v2501_v3  ;;  %v4303_v33 = vmax.f32 %v3887_v10, 0.0 }
 0x199   :  { %v4430_v34 = vpack.c.bf16 %v4302_v36, %v4302_v36  ;;  %v6097_v42 = vor.u32 %v6696_v27, %v6094_v62  ;;  %v4829_v48 = vsel %vm4762_vm3, %v4704_v9, %v4828_v41  ;;  %v4432_v3 = vpack.c.bf16 %v4304_v23, %v4304_v23  ;;  %v6563_v23 = vld [vmem:[#allocation2 + $0x184] sm:$0xf0] }
 0x19a   :  { %v3423_v1 = vmax.f32 %v3421_v50, %v3422_v55  ;;  %v3896_v58 = vrot.slane %v3895_v56, 4  ;;  %v2191_v2 = vpop.f32.mrf.mxu2  ;;  %v4431_v43 = vpack.c.bf16 %v4303_v33, %v4303_v33  ;;  %v4830_v52 = vsel %vm4764_vm4, %v4705_v16, %v4829_v48  ;;  %v6698_v33 = vld [vmem:[#allocation2 + $0x5c4] sm:$0xf] }
 0x19b   :  { %v2840_v11 = vpop.f32.mrf.mxu3  ;;  %v4706_v44 = vunpack.c.l.b16 %v4430_v34  ;;  %v4708_v39 = vunpack.c.l.b16 %v4432_v3  ;;  %v6102_v34 = vld [vmem:[#allocation2 + $0x5c8] sm:$0xf0] }
 0x19c   :  { %v3424_v12 = vrot.slane %v3423_v1, 1  ;;  %v3897_v13 = vmax.f32 %v3895_v56, %v3896_v58  ;;  %v2841_v14 = vadd.f32 %v2840_v11, %v2191_v2  ;;  %v1853_v15 = vpop.f32.mrf.mxu0  ;;  %v4707_v53 = vunpack.c.l.b16 %v4431_v43 }
 0x19d   :  { %v2502_v19 = vpop.f32.mrf.mxu1  ;;  %v4831_v49 = vsel %vm4766_vm5, %v4706_v44, %v4830_v52  ;;  %v6105_v44 = vor.u32 %v6698_v33, %v6102_v34 }
 0x19e   :  { %v3425_v24 = vmax.f32 %v3423_v1, %v3424_v12  ;;  %v3898_v26 = vrot.slane %v3897_v13, 2  ;;  %v2503_v25 = vadd.f32 %v2502_v19, %v1853_v15  ;;  %v3236_v60 = vadd.f32 %v7223_v4, %v2841_v14 }
 0x19f   :  { %v7286_v0 = vsel %vm4768_vm6, %v4707_v53, %v4831_v49 }
 0x1a0   :  { %v4237_v35 = vmax.f32 %v3425_v24, 0.0  ;;  %v3899_v38 = vmax.f32 %v3897_v13, %v3898_v26  ;;  %v3101_v40 = vadd.f32 %v7226_v8, %v2503_v25  ;;  %v6100_v24 = vld [vmem:[#allocation2 + $0x5c0] sm:$0xf]  ;;  %v6699_v26 = vld [vmem:[#allocation2 + $0x5c4] sm:$0xf0] }
 0x1a1   :  { %v6562_v25 = vld [vmem:[#allocation2 + $0x184] sm:$0xf] }
 0x1a2   :  { %v4365_v45 = vpack.c.bf16 %v4237_v35, %v4237_v35  ;;  %v3900_v46 = vrot.slane %v3899_v38, 1  ;;  %v3426_v47 = vmax.f32 %v3100_v31, %v3101_v40  ;;  %v2193_v50 = vpop.f32.mrf.mxu2 }
 0x1a3   :  { %v2842_v29 = vpop.f32.mrf.mxu3 }
 0x1a4   :  { %v4641_v55 = vunpack.c.l.b16 %v4365_v45  ;;  %v3901_v56 = vmax.f32 %v3899_v38, %v3900_v46  ;;  %v3427_v57 = vrot.slane %v3426_v47, 4  ;;  %v2843_v59 = vadd.f32 %v2842_v29, %v2193_v50  ;;  %v1856_v61 = vpop.f32.mrf.mxu0 }
 0x1a5   :  { %v2505_v5 = vpop.f32.mrf.mxu1 }
 0x1a6   :  { %v4305_v63 = vmax.f32 %v3901_v56, 0.0  ;;  %v3428_v1 = vmax.f32 %v3426_v47, %v3427_v57  ;;  %v3237_v58 = vadd.f32 %v7226_v8, %v2843_v59  ;;  %v2506_v2 = vadd.f32 %v2505_v5, %v1856_v61 }
 0x1a7   :  { %1895 = vmatmul.bf16.gmra.mxu0 %v5549_v20  ;;  %2235 = vmatmul.bf16.gmra.mxu2 %v6093_v21  ;;  %v4774_v37 = vsel %vm4764_vm4, %v4641_v55, %v7262_v54  ;;  %v5556_v21 = vld [vmem:[#allocation2 + $0x180] sm:$0xf] }
 0x1a8   :  { %v4433_v6 = vpack.c.bf16 %v4305_v63, %v4305_v63  ;;  %v3429_v18 = vrot.slane %v3428_v1, 2  ;;  %v7291_v9 = vmax.f32 %v3236_v60, %v3237_v58  ;;  %2544 = vmatmul.bf16.gmra.mxu1 %v5553_v22  ;;  %2884 = vmatmul.bf16.gmra.mxu3 %v6097_v42  ;;  %v5558_v22 = vld [vmem:[#allocation2 + $0x188] sm:$0xf0]  ;;  %v3102_v62 = vadd.f32 %v7223_v4, %v2506_v2 }
 0x1a9   :  { %v5557_v41 = vor.u32 %v6563_v23, %v5556_v21  ;;  %v6101_v42 = vor.u32 %v6699_v26, %v6100_v24  ;;  %v5561_v43 = vor.u32 %v6562_v25, %v5558_v22 }
 0x1aa   :  { %v4709_v36 = vunpack.c.l.b16 %v4433_v6  ;;  %v3430_v11 = vmax.f32 %v3428_v1, %v3429_v18  ;;  %v2196_v12 = vpop.f32.mrf.mxu2  ;;  %v6565_v6 = vld [vmem:[#allocation2 + $0x194] sm:$0xf0]  ;;  %v6108_v18 = vld [vmem:[#allocation2 + $0x5d0] sm:$0xf] }
 0x1ab   :  { %v2845_v13 = vpop.f32.mrf.mxu3 }
 0x1ac   :  { %v7294_v14 = vsel %vm4756_vm0, %v4709_v36, %v4708_v39  ;;  %v3431_v15 = vrot.slane %v3430_v11, 1  ;;  %v2846_v10 = vadd.f32 %v2845_v13, %v2196_v12  ;;  %v1858_v16 = vpop.f32.mrf.mxu0  ;;  %v5564_v39 = vld [vmem:[#allocation2 + $0x190] sm:$0xf]  ;;  %v6701_v36 = vld [vmem:[#allocation2 + $0x5d4] sm:$0xf0] }
 0x1ad   :  { %v2507_v19 = vpop.f32.mrf.mxu1  ;;  %v5565_v23 = vor.u32 %v6565_v6, %v5564_v39  ;;  %v6109_v24 = vor.u32 %v6701_v36, %v6108_v18 }
 0x1ae   :  { %v3432_v20 = vmax.f32 %v3430_v11, %v3431_v15  ;;  %v2508_v54 = vadd.f32 %v2507_v19, %v1858_v16  ;;  %v3238_v45 = vadd.f32 %v7223_v4, %v2846_v10  ;;  %v6564_v11 = vld [vmem:[#allocation2 + $0x194] sm:$0xf]  ;;  %v6110_v16 = vld [vmem:[#allocation2 + $0x5d8] sm:$0xf0] }
 0x1af   :  { %v6700_v10 = vld [vmem:[#allocation2 + $0x5d4] sm:$0xf] }
 0x1b0   :  { %v4238_v27 = vmax.f32 %v3432_v20, 0.0  ;;  %v3103_v31 = vadd.f32 %v7226_v8, %v2508_v54  ;;  %v6113_v25 = vor.u32 %v6700_v10, %v6110_v16 }
 0x1b2   :  { %v4366_v28 = vpack.c.bf16 %v4238_v27, %v4238_v27  ;;  %v3433_v35 = vmax.f32 %v3102_v62, %v3103_v31  ;;  %v2198_v38 = vpop.f32.mrf.mxu2 }
 0x1b3   :  { %v2847_v40 = vpop.f32.mrf.mxu3 }
 0x1b4   :  { %v4642_v48 = vunpack.c.l.b16 %v4366_v28  ;;  %v3434_v46 = vrot.slane %v3433_v35, 4  ;;  %v2848_v47 = vadd.f32 %v2847_v40, %v2198_v38  ;;  %v1861_v50 = vpop.f32.mrf.mxu0 }
 0x1b5   :  { %v2510_v52 = vpop.f32.mrf.mxu1 }
 0x1b6   :  { %v3435_v3 = vmax.f32 %v3433_v35, %v3434_v46  ;;  %v3239_v60 = vadd.f32 %v7226_v8, %v2848_v47  ;;  %v2511_v29 = vadd.f32 %v2510_v52, %v1861_v50  ;;  %v4775_v53 = vsel %vm4766_vm5, %v4642_v48, %v4774_v37  ;;  %v5566_v37 = vld [vmem:[#allocation2 + $0x198] sm:$0xf0] }
 0x1b7   :  { %1900 = vmatmul.bf16.gmra.mxu0 %v5557_v41  ;;  %2240 = vmatmul.bf16.gmra.mxu2 %v6101_v42  ;;  %v5569_v26 = vor.u32 %v6564_v11, %v5566_v37 }
 0x1b8   :  { %v3436_v49 = vrot.slane %v3435_v3, 2  ;;  %v7301_v55 = vmax.f32 %v3238_v45, %v3239_v60  ;;  %2549 = vmatmul.bf16.gmra.mxu1 %v5561_v43  ;;  %2889 = vmatmul.bf16.gmra.mxu3 %v6105_v44  ;;  %v3104_v13 = vadd.f32 %v7223_v4, %v2511_v29  ;;  %v6567_v60 = vld [vmem:[#allocation2 + $0x1a4] sm:$0xf0]  ;;  %v6116_v29 = vld [vmem:[#allocation2 + $0x5e0] sm:$0xf] }
 0x1ba   :  { %v3437_v56 = vmax.f32 %v3435_v3, %v3436_v49  ;;  %v2201_v57 = vpop.f32.mrf.mxu2  ;;  %v5572_v3 = vld [vmem:[#allocation2 + $0x1a0] sm:$0xf] }
 0x1bb   :  { %v2850_v59 = vpop.f32.mrf.mxu3  ;;  %v5573_v39 = vor.u32 %v6567_v60, %v5572_v3  ;;  %v6126_v3 = vld [vmem:[#allocation2 + $0x5f8] sm:$0xf0] }
 0x1bc   :  { %v3438_v61 = vrot.slane %v3437_v56, 1  ;;  %v2851_v5 = vadd.f32 %v2850_v59, %v2201_v57  ;;  %v1863_v63 = vpop.f32.mrf.mxu0  ;;  %v6566_v57 = vld [vmem:[#allocation2 + $0x1a4] sm:$0xf]  ;;  %v5574_v59 = vld [vmem:[#allocation2 + $0x1a8] sm:$0xf0] }
 0x1bd   :  { %v2512_v1 = vpop.f32.mrf.mxu1  ;;  %v5577_v18 = vor.u32 %v6566_v57, %v5574_v59 }
 0x1be   :  { %v3439_v58 = vmax.f32 %v3437_v56, %v3438_v61  ;;  %v2513_v2 = vadd.f32 %v2512_v1, %v1863_v63  ;;  %v3240_v22 = vadd.f32 %v7223_v4, %v2851_v5  ;;  %v6703_v56 = vld [vmem:[#allocation2 + $0x5e4] sm:$0xf0]  ;;  %v6702_v61 = vld [vmem:[#allocation2 + $0x5e4] sm:$0xf]  ;;  %v6118_v5 = vld [vmem:[#allocation2 + $0x5e8] sm:$0xf0] }
 0x1bf   :  { %v6117_v6 = vor.u32 %v6703_v56, %v6116_v29 }
 0x1c0   :  { %v4239_v12 = vmax.f32 %v3439_v58, 0.0  ;;  %v3105_v15 = vadd.f32 %v7226_v8, %v2513_v2 }
 0x1c2   :  { %v4367_v19 = vpack.c.bf16 %v4239_v12, %v4239_v12  ;;  %v3440_v20 = vmax.f32 %v3104_v13, %v3105_v15  ;;  %v2203_v54 = vpop.f32.mrf.mxu2  ;;  %v6121_v13 = vor.u32 %v6702_v61, %v6118_v5 }
 0x1c3   :  { %v2852_v21 = vpop.f32.mrf.mxu3 }
 0x1c4   :  { %v3441_v27 = vrot.slane %v3440_v20, 4  ;;  %v2853_v62 = vadd.f32 %v2852_v21, %v2203_v54  ;;  %v1866_v31 = vpop.f32.mrf.mxu0  ;;  %v4643_v33 = vunpack.c.l.b16 %v4367_v19 }
 0x1c5   :  { %v2515_v34 = vpop.f32.mrf.mxu1 }
 0x1c6   :  { %v3241_v28 = vadd.f32 %v7226_v8, %v2853_v62  ;;  %v2516_v35 = vadd.f32 %v2515_v34, %v1866_v31  ;;  %v3442_v38 = vmax.f32 %v3440_v20, %v3441_v27  ;;  %v7308_v40 = vsel %vm4768_vm6, %v4643_v33, %v4775_v53 }
 0x1c7   :  { %1905 = vmatmul.bf16.gmra.mxu0 %v5565_v23  ;;  %2245 = vmatmul.bf16.gmra.mxu2 %v6109_v24  ;;  %v4875_v42 = vpack.c.b16 %v7308_v40, %v7206_v17  ;;  %v5852_v40 = vld [vmem:[#allocation2 + $0x3d0] sm:$0xf] }
 0x1c8   :  { %v7310_v41 = vmax.f32 %v3240_v22, %v3241_v28  ;;  %2554 = vmatmul.bf16.gmra.mxu1 %v5569_v26  ;;  %2894 = vmatmul.bf16.gmra.mxu3 %v6113_v25  ;;  %v3443_v44 = vrot.slane %v3442_v38, 2  ;;  %v3106_v53 = vadd.f32 %v7223_v4, %v2516_v35  ;;  %v5580_v28 = vld [vmem:[#allocation2 + $0x1b0] sm:$0xf]  ;;  %v6569_v35 = vld [vmem:[#allocation2 + $0x1b4] sm:$0xf0] }
 0x1ca   :  { %v2206_v43 = vpop.f32.mrf.mxu2  ;;  %v3444_v52 = vmax.f32 %v3442_v38, %v3443_v44  ;;  %v6124_v38 = vld [vmem:[#allocation2 + $0x5f0] sm:$0xf]  ;;  %v6705_v44 = vld [vmem:[#allocation2 + $0x5f4] sm:$0xf0] }
 0x1cb   :  { %v2855_v48 = vpop.f32.mrf.mxu3  ;;  %v6125_v59 = vor.u32 %v6705_v44, %v6124_v38  ;;  %v6706_v38 = vld [vmem:[#allocation2 + $0x604] sm:$0xf] }
 0x1cc   :  { %v2856_v45 = vadd.f32 %v2855_v48, %v2206_v43  ;;  %v1868_v46 = vpop.f32.mrf.mxu0  ;;  %v3445_v58 = vrot.slane %v3444_v52, 1  ;;  %v6568_v48 = vld [vmem:[#allocation2 + $0x1b4] sm:$0xf] }
 0x1cd   :  { %v2517_v47 = vpop.f32.mrf.mxu1 }
 0x1ce   :  { %v2518_v50 = vadd.f32 %v2517_v47, %v1868_v46  ;;  %v3242_v36 = vadd.f32 %v7223_v4, %v2856_v45  ;;  %v3446_v20 = vmax.f32 %v3444_v52, %v3445_v58  ;;  %v5582_v45 = vld [vmem:[#allocation2 + $0x1b8] sm:$0xf0]  ;;  %v6704_v52 = vld [vmem:[#allocation2 + $0x5f4] sm:$0xf] }
 0x1cf   :  { %v5585_v61 = vor.u32 %v6568_v48, %v5582_v45  ;;  %v6129_v5 = vor.u32 %v6704_v52, %v6126_v3 }
 0x1d0   :  { %v3107_v49 = vadd.f32 %v7226_v8, %v2518_v50  ;;  %v4240_v26 = vmax.f32 %v3446_v20, 0.0 }
 0x1d2   :  { %v3447_v63 = vmax.f32 %v3106_v53, %v3107_v49  ;;  %v2208_v1 = vpop.f32.mrf.mxu2  ;;  %v4368_v43 = vpack.c.bf16 %v4240_v26, %v4240_v26  ;;  %v5581_v49 = vor.u32 %v6569_v35, %v5580_v28 }
 0x1d3   :  { %v2857_v2 = vpop.f32.mrf.mxu3 }
 0x1d4   :  { %v3448_v11 = vrot.slane %v3447_v63, 4  ;;  %v2858_v37 = vadd.f32 %v2857_v2, %v2208_v1  ;;  %v1871_v12 = vpop.f32.mrf.mxu0  ;;  %v4644_v56 = vunpack.c.l.b16 %v4368_v43  ;;  %v6134_v43 = vld [vmem:[#allocation2 + $0x608] sm:$0xf0] }
 0x1d5   :  { %v2520_v15 = vpop.f32.mrf.mxu1  ;;  %v6137_v3 = vor.u32 %v6706_v38, %v6134_v43 }
 0x1d6   :  { %v3449_v10 = vmax.f32 %v3447_v63, %v3448_v11  ;;  %v3243_v16 = vadd.f32 %v7226_v8, %v2858_v37  ;;  %v2521_v19 = vadd.f32 %v2520_v15, %v1871_v12 }
 0x1d7   :  { %1910 = vmatmul.bf16.gmra.mxu0 %v5573_v39  ;;  %2250 = vmatmul.bf16.gmra.mxu2 %v6117_v6 }
 0x1d8   :  { %v3450_v54 = vrot.slane %v3449_v10, 2  ;;  %v7318_v21 = vmax.f32 %v3242_v36, %v3243_v16  ;;  %2559 = vmatmul.bf16.gmra.mxu1 %v5577_v18  ;;  %2899 = vmatmul.bf16.gmra.mxu3 %v6121_v13  ;;  %v3108_v47 = vadd.f32 %v7223_v4, %v2521_v19 }
 0x1da   :  { %v3451_v23 = vmax.f32 %v3449_v10, %v3450_v54  ;;  %v2211_v24 = vpop.f32.mrf.mxu2 }
 0x1db   :  { %v2860_v25 = vpop.f32.mrf.mxu3 }
 0x1dc   :  { %v3452_v22 = vrot.slane %v3451_v23, 1  ;;  %v2861_v27 = vadd.f32 %v2860_v25, %v2211_v24  ;;  %v1873_v62 = vpop.f32.mrf.mxu0  ;;  %v5588_v25 = vld [vmem:[#allocation2 + $0x1c0] sm:$0xf] }
 0x1dd   :  { %v2522_v31 = vpop.f32.mrf.mxu1 }
 0x1de   :  { %v3453_v33 = vmax.f32 %v3451_v23, %v3452_v22  ;;  %v2523_v34 = vadd.f32 %v2522_v31, %v1873_v62  ;;  %v3244_v1 = vadd.f32 %v7223_v4, %v2861_v27  ;;  %v6571_v22 = vld [vmem:[#allocation2 + $0x1c4] sm:$0xf0]  ;;  %v6132_v27 = vld [vmem:[#allocation2 + $0x600] sm:$0xf]  ;;  %v6570_v31 = vld [vmem:[#allocation2 + $0x1c4] sm:$0xf] }
 0x1df   :  { %v6707_v62 = vld [vmem:[#allocation2 + $0x604] sm:$0xf0] }
 0x1e0   :  { %v4241_v46 = vmax.f32 %v3453_v33, 0.0  ;;  %v3109_v50 = vadd.f32 %v7226_v8, %v2523_v34  ;;  %v5590_v33 = vld [vmem:[#allocation2 + $0x1c8] sm:$0xf0] }
 0x1e1   :  { %v5593_v52 = vor.u32 %v6570_v31, %v5590_v33 }
 0x1e2   :  { %v4369_v60 = vpack.c.bf16 %v4241_v46, %v4241_v46  ;;  %v3454_v29 = vmax.f32 %v3108_v47, %v3109_v50  ;;  %v2213_v53 = vpop.f32.mrf.mxu2  ;;  %v5589_v47 = vor.u32 %v6571_v22, %v5588_v25  ;;  %v6133_v50 = vor.u32 %v6707_v62, %v6132_v27  ;;  %v6140_v25 = vld [vmem:[#allocation2 + $0x610] sm:$0xf]  ;;  %v6709_v22 = vld [vmem:[#allocation2 + $0x614] sm:$0xf0]  ;;  %v6572_v27 = vld [vmem:[#allocation2 + $0x1d4] sm:$0xf] }
 0x1e3   :  { %v2862_v57 = vpop.f32.mrf.mxu3  ;;  %v5598_v62 = vld [vmem:[#allocation2 + $0x1d8] sm:$0xf0] }
 0x1e4   :  { %v4645_v63 = vunpack.c.l.b16 %v4369_v60  ;;  %v3455_v58 = vrot.slane %v3454_v29, 4  ;;  %v2863_v2 = vadd.f32 %v2862_v57, %v2213_v53  ;;  %v1876_v39 = vpop.f32.mrf.mxu0  ;;  %v6791_v57 = vld [vmem:[#allocation8 + $0x28] sm:$0xff] }
 0x1e5   :  { %v2525_v6 = vpop.f32.mrf.mxu1  ;;  %4941 = vmatpush.bf16.msrb.mxu2 %v6791_v57 }
 0x1e6   :  { %v4777_v18 = vsel %vm4756_vm0, %v4645_v63, %v4644_v56  ;;  %v3456_v36 = vmax.f32 %v3454_v29, %v3455_v58  ;;  %v3245_v11 = vadd.f32 %v7226_v8, %v2863_v2  ;;  %v2526_v37 = vadd.f32 %v2525_v6, %v1876_v39 }
 0x1e7   :  { %1915 = vmatmul.bf16.gmra.mxu0 %v5581_v49  ;;  %2255 = vmatmul.bf16.gmra.mxu2 %v6125_v59  ;;  %v3903_v39 = vrot.slane %v7291_v9, 4 }
 0x1e8   :  { %v3457_v12 = vrot.slane %v3456_v36, 2  ;;  %v7325_v13 = vmax.f32 %v3244_v1, %v3245_v11  ;;  %2564 = vmatmul.bf16.gmra.mxu1 %v5585_v61  ;;  %2904 = vmatmul.bf16.gmra.mxu3 %v6129_v5  ;;  %v3110_v28 = vadd.f32 %v7223_v4, %v2526_v37 }
 0x1ea   :  { %v3458_v15 = vmax.f32 %v3456_v36, %v3457_v12  ;;  %v2216_v10 = vpop.f32.mrf.mxu2 }
 0x1eb   :  { %v2865_v16 = vpop.f32.mrf.mxu3 }
 0x1ec   :  { %v3459_v19 = vrot.slane %v3458_v15, 1  ;;  %v2866_v20 = vadd.f32 %v2865_v16, %v2216_v10  ;;  %v1878_v54 = vpop.f32.mrf.mxu0  ;;  %v3910_v10 = vrot.slane %v7301_v55, 4  ;;  %v3917_v16 = vrot.slane %v7310_v41, 4 }
 0x1ed   :  { %v2527_v23 = vpop.f32.mrf.mxu1 }
 0x1ee   :  { %v3460_v24 = vmax.f32 %v3458_v15, %v3459_v19  ;;  %v2528_v26 = vadd.f32 %v2527_v23, %v1878_v54  ;;  %v3246_v29 = vadd.f32 %v7223_v4, %v2866_v20  ;;  %v3924_v19 = vrot.slane %v7318_v21, 4 }
 0x1ef   :  { %v3904_v20 = vmax.f32 %v7291_v9, %v3903_v39  ;;  %v3911_v38 = vmax.f32 %v7301_v55, %v3910_v10  ;;  %v3918_v43 = vmax.f32 %v7310_v41, %v3917_v16 }
 0x1f0   :  { %v4242_v34 = vmax.f32 %v3460_v24, 0.0  ;;  %v3111_v35 = vadd.f32 %v7226_v8, %v2528_v26  ;;  %v5596_v24 = vld [vmem:[#allocation2 + $0x1d0] sm:$0xf]  ;;  %v6573_v26 = vld [vmem:[#allocation2 + $0x1d4] sm:$0xf0]  ;;  %v3925_v9 = vmax.f32 %v7318_v21, %v3924_v19  ;;  %v3931_v21 = vrot.slane %v7325_v13, 4 }
 0x1f1   :  { %v3912_v55 = vrot.slane %v3911_v38, 2  ;;  %v3919_v57 = vrot.slane %v3918_v43, 2 }
 0x1f2   :  { %v4370_v44 = vpack.c.bf16 %v4242_v34, %v4242_v34  ;;  %v3461_v48 = vmax.f32 %v3110_v28, %v3111_v35  ;;  %v2218_v45 = vpop.f32.mrf.mxu2  ;;  %v6708_v28 = vld [vmem:[#allocation2 + $0x614] sm:$0xf]  ;;  %v6142_v35 = vld [vmem:[#allocation2 + $0x618] sm:$0xf0]  ;;  %v3926_v41 = vrot.slane %v3925_v9, 2  ;;  %v3932_v10 = vmax.f32 %v7325_v13, %v3931_v21 }
 0x1f3   :  { %v2867_v46 = vpop.f32.mrf.mxu3 }
 0x1f4   :  { %v4646_v60 = vunpack.c.l.b16 %v4370_v44  ;;  %v3462_v53 = vrot.slane %v3461_v48, 4  ;;  %v2868_v49 = vadd.f32 %v2867_v46, %v2218_v45  ;;  %v1881_v56 = vpop.f32.mrf.mxu0  ;;  %v3905_v44 = vrot.slane %v3904_v20, 2 }
 0x1f5   :  { %v2530_v59 = vpop.f32.mrf.mxu1 }
 0x1f6   :  { %v3463_v61 = vmax.f32 %v3461_v48, %v3462_v53  ;;  %v3247_v5 = vadd.f32 %v7226_v8, %v2868_v49  ;;  %v2531_v63 = vadd.f32 %v2530_v59, %v1881_v56  ;;  %v4778_v1 = vsel %vm4758_vm1, %v4646_v60, %v4777_v18 }
 0x1f7   :  { %1920 = vmatmul.bf16.gmra.mxu0 %v5589_v47  ;;  %2260 = vmatmul.bf16.gmra.mxu2 %v6133_v50  ;;  %v5597_v50 = vor.u32 %v6573_v26, %v5596_v24  ;;  %v6145_v60 = vor.u32 %v6708_v28, %v6142_v35  ;;  %v5604_v28 = vld [vmem:[#allocation2 + $0x1e0] sm:$0xf] }
 0x1f8   :  { %v3464_v58 = vrot.slane %v3463_v61, 2  ;;  %v7332_v2 = vmax.f32 %v3246_v29, %v3247_v5  ;;  %2569 = vmatmul.bf16.gmra.mxu1 %v5593_v52  ;;  %2909 = vmatmul.bf16.gmra.mxu3 %v6137_v3  ;;  %v3112_v33 = vadd.f32 %v7223_v4, %v2531_v63  ;;  %v6141_v52 = vor.u32 %v6709_v22, %v6140_v25  ;;  %v7346_v5 = vld [vmem:[#allocation7 + $0x8] sm:$0xff]  ;;  %v6800_v22 = vld [vmem:[#allocation10 + $0x30] sm:$0xff] }
 0x1f9   :  { %v5601_v3 = vor.u32 %v6572_v27, %v5598_v62  ;;  %5081 = vmatpush.bf16.msrb.mxu3 %v6800_v22 }
 0x1fa   :  { %v3465_v6 = vmax.f32 %v3463_v61, %v3464_v58  ;;  %v2221_v36 = vpop.f32.mrf.mxu2 }
 0x1fb   :  { %v2870_v11 = vpop.f32.mrf.mxu3 }
 0x1fc   :  { %v3466_v37 = vrot.slane %v3465_v6, 1  ;;  %v2871_v12 = vadd.f32 %v2870_v11, %v2221_v36  ;;  %v1883_v15 = vpop.f32.mrf.mxu0 }
 0x1fd   :  { %v2532_v18 = vpop.f32.mrf.mxu1 }
 0x1fe   :  { %v3467_v54 = vmax.f32 %v3465_v6, %v3466_v37  ;;  %v2533_v23 = vadd.f32 %v2532_v18, %v1883_v15  ;;  %v3906_v6 = vmax.f32 %v3904_v20, %v3905_v44  ;;  %v3913_v37 = vmax.f32 %v3911_v38, %v3912_v55  ;;  %v6575_v38 = vld [vmem:[#allocation2 + $0x1e4] sm:$0xf0] }
 0x1ff   :  { %v3927_v15 = vmax.f32 %v3925_v9, %v3926_v41  ;;  %v6711_v9 = vld [vmem:[#allocation2 + $0x624] sm:$0xf0]  ;;  %v5605_v21 = vor.u32 %v6575_v38, %v5604_v28 }
 0x200   :  { %v4243_v31 = vmax.f32 %v3467_v54, 0.0  ;;  %v3113_v34 = vadd.f32 %v7226_v8, %v2533_v23  ;;  %v3248_v8 = vadd.f32 %v7223_v4, %v2871_v12  ;;  %v3938_v4 = vrot.slane %v7332_v2, 4 }
 0x201   :  { %v3920_v12 = vmax.f32 %v3918_v43, %v3919_v57  ;;  %v3907_v23 = vrot.slane %v3906_v6, 1  ;;  %v3914_v27 = vrot.slane %v3913_v37, 1  ;;  %v6148_v43 = vld [vmem:[#allocation2 + $0x620] sm:$0xf] }
 0x202   :  { %v4371_v48 = vpack.c.bf16 %v4243_v31, %v4243_v31  ;;  %v3468_v45 = vmax.f32 %v3112_v33, %v3113_v34  ;;  %v2223_v46 = vpop.f32.mrf.mxu2  ;;  %v3928_v31 = vrot.slane %v3927_v15, 1  ;;  %v3933_v33 = vrot.slane %v3932_v10, 2 }
 0x203   :  { %v2872_v47 = vpop.f32.mrf.mxu3  ;;  %v3921_v62 = vrot.slane %v3920_v12, 1 }
 0x204   :  { %v4647_v29 = vunpack.c.l.b16 %v4371_v48  ;;  %v3469_v53 = vrot.slane %v3468_v45, 4  ;;  %v2873_v49 = vadd.f32 %v2872_v47, %v2223_v46  ;;  %v1886_v56 = vpop.f32.mrf.mxu0  ;;  %v6574_v48 = vld [vmem:[#allocation2 + $0x1e4] sm:$0xf]  ;;  %v3908_v46 = vmax.f32 %v3906_v6, %v3907_v23 }
 0x205   :  { %v2535_v59 = vpop.f32.mrf.mxu1 }
 0x206   :  { %v3470_v61 = vmax.f32 %v3468_v45, %v3469_v53  ;;  %v3249_v63 = vadd.f32 %v7346_v5, %v2873_v49  ;;  %v2536_v58 = vadd.f32 %v2535_v59, %v1886_v56  ;;  %v7350_v39 = vsel %vm4760_vm2, %v4647_v29, %v4778_v1  ;;  %v5606_v45 = vld [vmem:[#allocation2 + $0x1e8] sm:$0xf0] }
 0x207   :  { %1925 = vmatmul.bf16.gmra.mxu0 %v5597_v50  ;;  %2265 = vmatmul.bf16.gmra.mxu2 %v6141_v52  ;;  %v3939_v1 = vmax.f32 %v7332_v2, %v3938_v4  ;;  %v7355_v50 = vld [vmem:[#allocation7] sm:$0xff]  ;;  %v6150_v29 = vld [vmem:[#allocation2 + $0x628] sm:$0xf0]  ;;  %v3922_v53 = vmax.f32 %v3920_v12, %v3921_v62  ;;  %v3929_v49 = vmax.f32 %v3927_v15, %v3928_v31 }
 0x208   :  { %v3471_v36 = vrot.slane %v3470_v61, 2  ;;  %v3944_v11 = vmax.f32 %v3248_v8, %v3249_v63  ;;  %2574 = vmatmul.bf16.gmra.mxu1 %v5601_v3  ;;  %2914 = vmatmul.bf16.gmra.mxu3 %v6145_v60  ;;  %v3114_v52 = vadd.f32 %v7355_v50, %v2536_v58  ;;  %v6710_v60 = vld [vmem:[#allocation2 + $0x624] sm:$0xf]  ;;  %v3915_v8 = vmax.f32 %v3913_v37, %v3914_v27 }
 0x209   :  { %v3940_v2 = vrot.slane %v3939_v1, 2  ;;  %v3934_v56 = vmax.f32 %v3932_v10, %v3933_v33  ;;  %v6149_v59 = vor.u32 %v6711_v9, %v6148_v43  ;;  %v5609_v6 = vor.u32 %v6574_v48, %v5606_v45 }
 0x20a   :  { %v3472_v16 = vmax.f32 %v3470_v61, %v3471_v36  ;;  %v3945_v19 = vrot.slane %v3944_v11, 4  ;;  %v2226_v18 = vpop.f32.mrf.mxu2  ;;  %v6153_v36 = vor.u32 %v6710_v60, %v6150_v29  ;;  %v4306_v37 = vmax.f32 %v3908_v46, 0.0  ;;  %v5612_v46 = vld [vmem:[#allocation2 + $0x1f0] sm:$0xf] }
 0x20b   :  { %v2875_v54 = vpop.f32.mrf.mxu3  ;;  %v3941_v61 = vmax.f32 %v3939_v1, %v3940_v2  ;;  %v4307_v12 = vmax.f32 %v3915_v8, 0.0  ;;  %v3935_v15 = vrot.slane %v3934_v56, 1  ;;  %v4309_v1 = vmax.f32 %v3929_v49, 0.0  ;;  %v6713_v49 = vld [vmem:[#allocation2 + $0x634] sm:$0xf0] }
 0x20c   :  { %v3473_v24 = vrot.slane %v3472_v16, 1  ;;  %v3946_v26 = vmax.f32 %v3944_v11, %v3945_v19  ;;  %v2876_v25 = vadd.f32 %v2875_v54, %v2226_v18  ;;  %v1888_v20 = vpop.f32.mrf.mxu0  ;;  %v4308_v54 = vmax.f32 %v3922_v53, 0.0  ;;  %v6156_v53 = vld [vmem:[#allocation2 + $0x630] sm:$0xf] }
 0x20d   :  { %v2537_v34 = vpop.f32.mrf.mxu1  ;;  %v4434_v31 = vpack.c.bf16 %v4306_v37, %v4306_v37  ;;  %v4435_v33 = vpack.c.bf16 %v4307_v12, %v4307_v12  ;;  %v7365_v43 = vpack.c.bf16 %v4309_v1, %v4309_v1  ;;  %v6157_v37 = vor.u32 %v6713_v49, %v6156_v53 }
 0x20e   :  { %v3474_v35 = vmax.f32 %v3472_v16, %v3473_v24  ;;  %v2538_v13 = vadd.f32 %v2537_v34, %v1888_v20  ;;  %v3947_v44 = vrot.slane %v3946_v26, 2  ;;  %v3250_v58 = vadd.f32 %v7355_v50, %v2876_v25 }
 0x20f   :  { %v3942_v25 = vrot.slane %v3941_v61, 1  ;;  %v3936_v34 = vmax.f32 %v3934_v56, %v3935_v15  ;;  %v4436_v28 = vpack.c.bf16 %v4308_v54, %v4308_v54  ;;  %v4711_v60 = vunpack.c.l.b16 %v4435_v33 }
 0x210   :  { %v4244_v47 = vmax.f32 %v3474_v35, 0.0  ;;  %v3115_v3 = vadd.f32 %v7346_v5, %v2538_v13  ;;  %v3948_v63 = vmax.f32 %v3946_v26, %v3947_v44 }
 0x211   :  { %v4310_v29 = vmax.f32 %v3936_v34, 0.0  ;;  %v4712_v56 = vunpack.c.l.b16 %v4436_v28 }
 0x212   :  { %v4372_v55 = vpack.c.bf16 %v4244_v47, %v4244_v47  ;;  %v3475_v57 = vmax.f32 %v3114_v52, %v3115_v3  ;;  %v2228_v41 = vpop.f32.mrf.mxu2  ;;  %v3949_v26 = vrot.slane %v3948_v63, 1  ;;  %v6577_v47 = vld [vmem:[#allocation2 + $0x1f4] sm:$0xf0]  ;;  %v3943_v52 = vmax.f32 %v3941_v61, %v3942_v25 }
 0x213   :  { %v2877_v4 = vpop.f32.mrf.mxu3  ;;  %v4710_v3 = vunpack.c.l.b16 %v4434_v31  ;;  %v4438_v15 = vpack.c.bf16 %v4310_v29, %v4310_v29 }
 0x214   :  { %v4648_v11 = vunpack.c.l.b16 %v4372_v55  ;;  %v3476_v16 = vrot.slane %v3475_v57, 4  ;;  %v2878_v19 = vadd.f32 %v2877_v4, %v2228_v41  ;;  %v1891_v18 = vpop.f32.mrf.mxu0  ;;  %v3950_v9 = vmax.f32 %v3948_v63, %v3949_v26 }
 0x215   :  { %v2540_v10 = vpop.f32.mrf.mxu1  ;;  %v4713_v63 = vunpack.c.l.b16 %v7365_v43  ;;  %v4714_v43 = vunpack.c.l.b16 %v4438_v15  ;;  %v6166_v15 = vld [vmem:[#allocation2 + $0x648] sm:$0xf0] }
 0x216   :  { %v3477_v23 = vmax.f32 %v3475_v57, %v3476_v16  ;;  %v3251_v24 = vadd.f32 %v7346_v5, %v2878_v19  ;;  %v2541_v20 = vadd.f32 %v2540_v10, %v1891_v18  ;;  %v7363_v22 = vsel %vm4762_vm3, %v4648_v11, %v7350_v39  ;;  %v6158_v11 = vld [vmem:[#allocation2 + $0x638] sm:$0xf0] }
 0x217   :  { %1930 = vmatmul.bf16.gmra.mxu0 %v5605_v21  ;;  %2270 = vmatmul.bf16.gmra.mxu2 %v6149_v59  ;;  %v6576_v21 = vld [vmem:[#allocation2 + $0x1f4] sm:$0xf]  ;;  %v5614_v59 = vld [vmem:[#allocation2 + $0x1f8] sm:$0xf0]  ;;  %v4312_v4 = vmax.f32 %v3950_v9, 0.0  ;;  %v4834_v10 = vsel %vm4758_vm1, %v4710_v3, %v7294_v14 }
 0x218   :  { %v3478_v27 = vrot.slane %v3477_v23, 2  ;;  %v3951_v62 = vmax.f32 %v3250_v58, %v3251_v24  ;;  %2579 = vmatmul.bf16.gmra.mxu1 %v5609_v6  ;;  %2919 = vmatmul.bf16.gmra.mxu3 %v6153_v36  ;;  %v5613_v6 = vor.u32 %v6577_v47, %v5612_v46  ;;  %v6712_v36 = vld [vmem:[#allocation2 + $0x634] sm:$0xf]  ;;  %v4311_v58 = vmax.f32 %v3943_v52, 0.0 }
 0x219   :  { %v3116_v19 = vadd.f32 %v7355_v50, %v2541_v20  ;;  %v5617_v12 = vor.u32 %v6576_v21, %v5614_v59  ;;  %v6161_v26 = vor.u32 %v6712_v36, %v6158_v11  ;;  %v4440_v25 = vpack.c.bf16 %v4312_v4, %v4312_v4  ;;  %v6579_v36 = vld [vmem:[#allocation2 + $0x204] sm:$0xf0]  ;;  %v6164_v11 = vld [vmem:[#allocation2 + $0x640] sm:$0xf] }
 0x21a   :  { %v3479_v35 = vmax.f32 %v3477_v23, %v3478_v27  ;;  %v3952_v13 = vrot.slane %v3951_v62, 4  ;;  %v2231_v38 = vpop.f32.mrf.mxu2  ;;  %v4439_v31 = vpack.c.bf16 %v4311_v58, %v4311_v58  ;;  %v4835_v20 = vsel %vm4760_vm2, %v4711_v60, %v4834_v10  ;;  %v6715_v58 = vld [vmem:[#allocation2 + $0x644] sm:$0xf0] }
 0x21b   :  { %v2880_v2 = vpop.f32.mrf.mxu3  ;;  %v4836_v14 = vsel %vm4762_vm3, %v4712_v56, %v4835_v20  ;;  %v4716_v47 = vunpack.c.l.b16 %v4440_v25 }
 0x21c   :  { %v3480_v44 = vrot.slane %v3479_v35, 1  ;;  %v3953_v48 = vmax.f32 %v3951_v62, %v3952_v13  ;;  %v2881_v39 = vadd.f32 %v2880_v2, %v2231_v38  ;;  %v1893_v45 = vpop.f32.mrf.mxu0  ;;  %v4837_v46 = vsel %vm4764_vm4, %v4713_v63, %v4836_v14 }
 0x21d   :  { %v2542_v8 = vpop.f32.mrf.mxu1  ;;  %v4838_v29 = vsel %vm4766_vm5, %v4714_v43, %v4837_v46 }
 0x21e   :  { %v3481_v55 = vmax.f32 %v3479_v35, %v3480_v44  ;;  %v3954_v57 = vrot.slane %v3953_v48, 2  ;;  %v2543_v41 = vadd.f32 %v2542_v8, %v1893_v45  ;;  %v3252_v27 = vadd.f32 %v7355_v50, %v2881_v39 }
 0x21f   :  { %v4715_v45 = vunpack.c.l.b16 %v4439_v31 }
 0x220   :  { %v4245_v61 = vmax.f32 %v3481_v55, 0.0  ;;  %v3955_v16 = vmax.f32 %v3953_v48, %v3954_v57  ;;  %v3117_v18 = vadd.f32 %v7346_v5, %v2543_v41 }
 0x221   :  { %v7383_v55 = vsel %vm4768_vm6, %v4715_v45, %v4838_v29  ;;  %v5628_v29 = vld [vmem:[#allocation2 + $0x210] sm:$0xf] }
 0x222   :  { %v4373_v54 = vpack.c.bf16 %v4245_v61, %v4245_v61  ;;  %v3956_v23 = vrot.slane %v3955_v16, 1  ;;  %v3482_v24 = vmax.f32 %v3116_v19, %v3117_v18  ;;  %v2233_v1 = vpop.f32.mrf.mxu2  ;;  %v6578_v61 = vld [vmem:[#allocation2 + $0x204] sm:$0xf] }
 0x223   :  { %v2882_v62 = vpop.f32.mrf.mxu3 }
 0x224   :  { %v4649_v33 = vunpack.c.l.b16 %v4373_v54  ;;  %v3957_v34 = vmax.f32 %v3955_v16, %v3956_v23  ;;  %v3483_v28 = vrot.slane %v3482_v24, 4  ;;  %v2883_v35 = vadd.f32 %v2882_v62, %v2233_v1  ;;  %v1896_v13 = vpop.f32.mrf.mxu0  ;;  %v5622_v16 = vld [vmem:[#allocation2 + $0x208] sm:$0xf0] }
 0x225   :  { %v2545_v38 = vpop.f32.mrf.mxu1  ;;  %v5625_v25 = vor.u32 %v6578_v61, %v5622_v16 }
 0x226   :  { %v4313_v9 = vmax.f32 %v3957_v34, 0.0  ;;  %v3484_v2 = vmax.f32 %v3482_v24, %v3483_v28  ;;  %v3253_v44 = vadd.f32 %v7346_v5, %v2883_v35  ;;  %v2546_v48 = vadd.f32 %v2545_v38, %v1896_v13 }
 0x227   :  { %1935 = vmatmul.bf16.gmra.mxu0 %v5613_v6  ;;  %2275 = vmatmul.bf16.gmra.mxu2 %v6157_v37  ;;  %v4781_v39 = vsel %vm4764_vm4, %v4649_v33, %v7363_v22  ;;  %v5620_v6 = vld [vmem:[#allocation2 + $0x200] sm:$0xf] }
 0x228   :  { %v4441_v52 = vpack.c.bf16 %v4313_v9, %v4313_v9  ;;  %v3485_v3 = vrot.slane %v3484_v2, 2  ;;  %v7379_v60 = vmax.f32 %v3252_v27, %v3253_v44  ;;  %2584 = vmatmul.bf16.gmra.mxu1 %v5617_v12  ;;  %2924 = vmatmul.bf16.gmra.mxu3 %v6161_v26  ;;  %v3118_v18 = vadd.f32 %v7355_v50, %v2546_v48  ;;  %v6714_v12 = vld [vmem:[#allocation2 + $0x644] sm:$0xf] }
 0x229   :  { %v5621_v1 = vor.u32 %v6579_v36, %v5620_v6  ;;  %v6165_v26 = vor.u32 %v6715_v58, %v6164_v11  ;;  %v6169_v27 = vor.u32 %v6714_v12, %v6166_v15 }
 0x22a   :  { %v4717_v8 = vunpack.c.l.b16 %v4441_v52  ;;  %v3486_v53 = vmax.f32 %v3484_v2, %v3485_v3  ;;  %v2236_v49 = vpop.f32.mrf.mxu2 }
 0x22b   :  { %v2885_v56 = vpop.f32.mrf.mxu3 }
 0x22c   :  { %v7386_v22 = vsel %vm4756_vm0, %v4717_v8, %v4716_v47  ;;  %v3487_v57 = vrot.slane %v3486_v53, 1  ;;  %v2886_v41 = vadd.f32 %v2885_v56, %v2236_v49  ;;  %v1898_v21 = vpop.f32.mrf.mxu0  ;;  %v6581_v8 = vld [vmem:[#allocation2 + $0x214] sm:$0xf0] }
 0x22d   :  { %v2547_v59 = vpop.f32.mrf.mxu1  ;;  %v6717_v56 = vld [vmem:[#allocation2 + $0x654] sm:$0xf0]  ;;  %v5629_v61 = vor.u32 %v6581_v8, %v5628_v29  ;;  %v6582_v8 = vld [vmem:[#allocation2 + $0x224] sm:$0xf] }
 0x22e   :  { %v3488_v63 = vmax.f32 %v3486_v53, %v3487_v57  ;;  %v2548_v4 = vadd.f32 %v2547_v59, %v1898_v21  ;;  %v3254_v62 = vadd.f32 %v7355_v50, %v2886_v41  ;;  %v6172_v53 = vld [vmem:[#allocation2 + $0x650] sm:$0xf]  ;;  %v6580_v57 = vld [vmem:[#allocation2 + $0x214] sm:$0xf]  ;;  %v5630_v41 = vld [vmem:[#allocation2 + $0x218] sm:$0xf0] }
 0x22f   :  { %v6716_v59 = vld [vmem:[#allocation2 + $0x654] sm:$0xf]  ;;  %v6173_v16 = vor.u32 %v6717_v56, %v6172_v53  ;;  %v5638_v53 = vld [vmem:[#allocation2 + $0x228] sm:$0xf0] }
 0x230   :  { %v4246_v19 = vmax.f32 %v3488_v63, 0.0  ;;  %v3119_v37 = vadd.f32 %v7346_v5, %v2548_v4  ;;  %v6174_v63 = vld [vmem:[#allocation2 + $0x658] sm:$0xf0] }
 0x232   :  { %v3489_v10 = vmax.f32 %v3118_v18, %v3119_v37  ;;  %v2238_v54 = vpop.f32.mrf.mxu2  ;;  %v4374_v23 = vpack.c.bf16 %v4246_v19, %v4246_v19  ;;  %v5633_v19 = vor.u32 %v6580_v57, %v5630_v41  ;;  %v6177_v18 = vor.u32 %v6716_v59, %v6174_v63  ;;  %v6718_v41 = vld [vmem:[#allocation2 + $0x664] sm:$0xf] }
 0x233   :  { %v2887_v24 = vpop.f32.mrf.mxu3 }
 0x234   :  { %v3490_v31 = vrot.slane %v3489_v10, 4  ;;  %v2888_v20 = vadd.f32 %v2887_v24, %v2238_v54  ;;  %v1901_v33 = vpop.f32.mrf.mxu0  ;;  %v4650_v34 = vunpack.c.l.b16 %v4374_v23  ;;  %v3959_v23 = vrot.slane %v7379_v60, 4 }
 0x235   :  { %v2550_v28 = vpop.f32.mrf.mxu1 }
 0x236   :  { %v3491_v35 = vmax.f32 %v3489_v10, %v3490_v31  ;;  %v3255_v13 = vadd.f32 %v7346_v5, %v2888_v20  ;;  %v2551_v38 = vadd.f32 %v2550_v28, %v1901_v33  ;;  %v4782_v43 = vsel %vm4766_vm5, %v4650_v34, %v4781_v39 }
 0x237   :  { %1940 = vmatmul.bf16.gmra.mxu0 %v5621_v1  ;;  %2280 = vmatmul.bf16.gmra.mxu2 %v6165_v26  ;;  %v3960_v20 = vmax.f32 %v7379_v60, %v3959_v23 }
 0x238   :  { %v3492_v14 = vrot.slane %v3491_v35, 2  ;;  %v3965_v9 = vmax.f32 %v3254_v62, %v3255_v13  ;;  %2589 = vmatmul.bf16.gmra.mxu1 %v5625_v25  ;;  %2929 = vmatmul.bf16.gmra.mxu3 %v6169_v27  ;;  %v3120_v39 = vadd.f32 %v7355_v50, %v2551_v38 }
 0x23a   :  { %v3493_v2 = vmax.f32 %v3491_v35, %v3492_v14  ;;  %v2241_v44 = vpop.f32.mrf.mxu2  ;;  %v3966_v24 = vrot.slane %v3965_v9, 4 }
 0x23b   :  { %v2890_v48 = vpop.f32.mrf.mxu3 }
 0x23c   :  { %v3494_v45 = vrot.slane %v3493_v2, 1  ;;  %v2891_v46 = vadd.f32 %v2890_v48, %v2241_v44  ;;  %v1903_v47 = vpop.f32.mrf.mxu0  ;;  %v3967_v33 = vmax.f32 %v3965_v9, %v3966_v24  ;;  %v6719_v9 = vld [vmem:[#allocation2 + $0x664] sm:$0xf0] }
 0x23d   :  { %v2552_v52 = vpop.f32.mrf.mxu1 }
 0x23e   :  { %v2553_v3 = vadd.f32 %v2552_v52, %v1903_v47  ;;  %v3495_v49 = vmax.f32 %v3493_v2, %v3494_v45  ;;  %v3256_v37 = vadd.f32 %v7355_v50, %v2891_v46  ;;  %v3961_v2 = vrot.slane %v3960_v20, 2  ;;  %v6583_v52 = vld [vmem:[#allocation2 + $0x224] sm:$0xf0] }
 0x23f   :  { %v3968_v44 = vrot.slane %v3967_v33, 2 }
 0x240   :  { %v3121_v21 = vadd.f32 %v7346_v5, %v2553_v3  ;;  %v4247_v4 = vmax.f32 %v3495_v49, 0.0  ;;  %v6180_v3 = vld [vmem:[#allocation2 + $0x660] sm:$0xf]  ;;  %v3962_v49 = vmax.f32 %v3960_v20, %v3961_v2 }
 0x241   :  { %v3969_v56 = vmax.f32 %v3967_v33, %v3968_v44 }
 0x242   :  { %v3496_v6 = vmax.f32 %v3120_v39, %v3121_v21  ;;  %v2243_v36 = vpop.f32.mrf.mxu2  ;;  %v4375_v11 = vpack.c.bf16 %v4247_v4, %v4247_v4  ;;  %v6182_v39 = vld [vmem:[#allocation2 + $0x668] sm:$0xf0] }
 0x243   :  { %v2892_v58 = vpop.f32.mrf.mxu3 }
 0x244   :  { %v3497_v12 = vrot.slane %v3496_v6, 4  ;;  %v2893_v15 = vadd.f32 %v2892_v58, %v2243_v36  ;;  %v1906_v10 = vpop.f32.mrf.mxu0  ;;  %v4651_v54 = vunpack.c.l.b16 %v4375_v11  ;;  %v6181_v36 = vor.u32 %v6719_v9, %v6180_v3  ;;  %v6188_v9 = vld [vmem:[#allocation2 + $0x670] sm:$0xf] }
 0x245   :  { %v2555_v1 = vpop.f32.mrf.mxu1  ;;  %v5641_v11 = vor.u32 %v6582_v8, %v5638_v53  ;;  %v6721_v53 = vld [vmem:[#allocation2 + $0x674] sm:$0xf0] }
 0x246   :  { %v3257_v26 = vadd.f32 %v7346_v5, %v2893_v15  ;;  %v2556_v25 = vadd.f32 %v2555_v1, %v1906_v10  ;;  %v3498_v27 = vmax.f32 %v3496_v6, %v3497_v12  ;;  %v7399_v62 = vsel %vm4768_vm6, %v4651_v54, %v4782_v43  ;;  %v5636_v43 = vld [vmem:[#allocation2 + $0x220] sm:$0xf] }
 0x247   :  { %1945 = vmatmul.bf16.gmra.mxu0 %v5629_v61  ;;  %2285 = vmatmul.bf16.gmra.mxu2 %v6173_v16  ;;  %v5637_v6 = vor.u32 %v6583_v52, %v5636_v43  ;;  %v3970_v12 = vrot.slane %v3969_v56, 1  ;;  %v5644_v43 = vld [vmem:[#allocation2 + $0x230] sm:$0xf] }
 0x248   :  { %v3972_v31 = vmax.f32 %v3256_v37, %v3257_v26  ;;  %2594 = vmatmul.bf16.gmra.mxu1 %v5633_v19  ;;  %2934 = vmatmul.bf16.gmra.mxu3 %v6177_v18  ;;  %v3499_v35 = vrot.slane %v3498_v27, 2  ;;  %v3122_v29 = vadd.f32 %v7355_v50, %v2556_v25  ;;  %v6185_v18 = vor.u32 %v6718_v41, %v6182_v39 }
 0x249   :  { %v3963_v37 = vrot.slane %v3962_v49, 1 }
 0x24a   :  { %v3973_v34 = vrot.slane %v3972_v31, 4  ;;  %v2246_v28 = vpop.f32.mrf.mxu2  ;;  %v3500_v47 = vmax.f32 %v3498_v27, %v3499_v35 }
 0x24b   :  { %v2895_v13 = vpop.f32.mrf.mxu3  ;;  %v3964_v27 = vmax.f32 %v3962_v49, %v3963_v37  ;;  %v6584_v49 = vld [vmem:[#allocation2 + $0x234] sm:$0xf] }
 0x24c   :  { %v2896_v38 = vadd.f32 %v2895_v13, %v2246_v28  ;;  %v1908_v14 = vpop.f32.mrf.mxu0  ;;  %v3974_v48 = vmax.f32 %v3972_v31, %v3973_v34  ;;  %v3501_v63 = vrot.slane %v3500_v47, 1  ;;  %v3971_v31 = vmax.f32 %v3969_v56, %v3970_v12  ;;  %v5646_v56 = vld [vmem:[#allocation2 + $0x238] sm:$0xf0] }
 0x24d   :  { %v2557_v45 = vpop.f32.mrf.mxu1 }
 0x24e   :  { %v2558_v46 = vadd.f32 %v2557_v45, %v1908_v14  ;;  %v3975_v57 = vrot.slane %v3974_v48, 2  ;;  %v3258_v58 = vadd.f32 %v7355_v50, %v2896_v38  ;;  %v3502_v1 = vmax.f32 %v3500_v47, %v3501_v63  ;;  %v6190_v63 = vld [vmem:[#allocation2 + $0x678] sm:$0xf0] }
 0x24f   :  { %v4315_v45 = vmax.f32 %v3971_v31, 0.0 }
 0x250   :  { %v3123_v60 = vadd.f32 %v7346_v5, %v2558_v46  ;;  %v3976_v15 = vmax.f32 %v3974_v48, %v3975_v57  ;;  %v4248_v35 = vmax.f32 %v3502_v1, 0.0  ;;  %v4314_v48 = vmax.f32 %v3964_v27, 0.0  ;;  %v6790_v27 = vld [vmem:[#allocation8 + $0x20] sm:$0xff] }
 0x251   :  { %4942 = vmatpush.bf16.msrb.mxu2 %v6790_v27 }
 0x252   :  { %v3503_v21 = vmax.f32 %v3122_v29, %v3123_v60  ;;  %v2248_v59 = vpop.f32.mrf.mxu2  ;;  %v3977_v20 = vrot.slane %v3976_v15, 1  ;;  %v6585_v60 = vld [vmem:[#allocation2 + $0x234] sm:$0xf0]  ;;  %v4376_v8 = vpack.c.bf16 %v4248_v35, %v4248_v35 }
 0x253   :  { %v2897_v4 = vpop.f32.mrf.mxu3 }
 0x254   :  { %v3504_v61 = vrot.slane %v3503_v21, 4  ;;  %v2898_v16 = vadd.f32 %v2897_v4, %v2248_v59  ;;  %v1911_v19 = vpop.f32.mrf.mxu0  ;;  %v3978_v46 = vmax.f32 %v3976_v15, %v3977_v20  ;;  %v6720_v59 = vld [vmem:[#allocation2 + $0x674] sm:$0xf]  ;;  %v4442_v4 = vpack.c.bf16 %v4314_v48, %v4314_v48 }
 0x255   :  { %v2560_v10 = vpop.f32.mrf.mxu1  ;;  %v4652_v37 = vunpack.c.l.b16 %v4376_v8 }
 0x256   :  { %v3505_v54 = vmax.f32 %v3503_v21, %v3504_v61  ;;  %v3259_v23 = vadd.f32 %v7346_v5, %v2898_v16  ;;  %v2561_v24 = vadd.f32 %v2560_v10, %v1911_v19  ;;  %v5649_v10 = vor.u32 %v6584_v49, %v5646_v56 }
 0x257   :  { %1950 = vmatmul.bf16.gmra.mxu0 %v5637_v6  ;;  %2290 = vmatmul.bf16.gmra.mxu2 %v6181_v36  ;;  %v4443_v6 = vpack.c.bf16 %v4315_v45, %v4315_v45  ;;  %v4316_v36 = vmax.f32 %v3978_v46, 0.0 }
 0x258   :  { %v3506_v26 = vrot.slane %v3505_v54, 2  ;;  %v3979_v25 = vmax.f32 %v3258_v58, %v3259_v23  ;;  %2599 = vmatmul.bf16.gmra.mxu1 %v5641_v11  ;;  %2939 = vmatmul.bf16.gmra.mxu3 %v6185_v18  ;;  %v3124_v39 = vadd.f32 %v7355_v50, %v2561_v24  ;;  %v5645_v11 = vor.u32 %v6585_v60, %v5644_v43 }
 0x259   :  { %v6189_v18 = vor.u32 %v6721_v53, %v6188_v9  ;;  %v4444_v31 = vpack.c.bf16 %v4316_v36, %v4316_v36  ;;  %v6586_v36 = vld [vmem:[#allocation2 + $0x244] sm:$0xf] }
 0x25a   :  { %v3507_v33 = vmax.f32 %v3505_v54, %v3506_v26  ;;  %v3980_v34 = vrot.slane %v3979_v25, 4  ;;  %v2251_v28 = vpop.f32.mrf.mxu2  ;;  %v6193_v54 = vor.u32 %v6720_v59, %v6190_v63  ;;  %v6587_v63 = vld [vmem:[#allocation2 + $0x244] sm:$0xf0] }
 0x25b   :  { %v2900_v13 = vpop.f32.mrf.mxu3  ;;  %v4720_v45 = vunpack.c.l.b16 %v4444_v31 }
 0x25c   :  { %v3508_v38 = vrot.slane %v3507_v33, 1  ;;  %v3981_v14 = vmax.f32 %v3979_v25, %v3980_v34  ;;  %v2901_v2 = vadd.f32 %v2900_v13, %v2251_v28  ;;  %v1913_v44 = vpop.f32.mrf.mxu0  ;;  %v4718_v13 = vunpack.c.l.b16 %v4442_v4  ;;  %v6196_v4 = vld [vmem:[#allocation2 + $0x680] sm:$0xf] }
 0x25d   :  { %v2562_v47 = vpop.f32.mrf.mxu1 }
 0x25e   :  { %v3509_v52 = vmax.f32 %v3507_v33, %v3508_v38  ;;  %v3982_v3 = vrot.slane %v3981_v14, 2  ;;  %v2563_v29 = vadd.f32 %v2562_v47, %v1913_v44  ;;  %v3260_v12 = vadd.f32 %v7355_v50, %v2901_v2 }
 0x260   :  { %v4249_v57 = vmax.f32 %v3509_v52, 0.0  ;;  %v3983_v41 = vmax.f32 %v3981_v14, %v3982_v3  ;;  %v3125_v21 = vadd.f32 %v7346_v5, %v2563_v29  ;;  %v4719_v14 = vunpack.c.l.b16 %v4443_v6  ;;  %v6723_v6 = vld [vmem:[#allocation2 + $0x684] sm:$0xf0] }
 0x261   :  { %v4841_v29 = vsel %vm4758_vm1, %v4718_v13, %v7386_v22 }
 0x262   :  { %v4377_v58 = vpack.c.bf16 %v4249_v57, %v4249_v57  ;;  %v3984_v61 = vrot.slane %v3983_v41, 1  ;;  %v3510_v16 = vmax.f32 %v3124_v39, %v3125_v21  ;;  %v2253_v19 = vpop.f32.mrf.mxu2  ;;  %v4842_v49 = vsel %vm4760_vm2, %v4719_v14, %v4841_v29  ;;  %v5652_v57 = vld [vmem:[#allocation2 + $0x240] sm:$0xf] }
 0x263   :  { %v2902_v15 = vpop.f32.mrf.mxu3 }
 0x264   :  { %v4653_v23 = vunpack.c.l.b16 %v4377_v58  ;;  %v3985_v24 = vmax.f32 %v3983_v41, %v3984_v61  ;;  %v3511_v1 = vrot.slane %v3510_v16, 4  ;;  %v2903_v26 = vadd.f32 %v2902_v15, %v2253_v19  ;;  %v1916_v25 = vpop.f32.mrf.mxu0 }
 0x265   :  { %v2565_v20 = vpop.f32.mrf.mxu1  ;;  %v4843_v41 = vsel %vm4762_vm3, %v4720_v45, %v4842_v49 }
 0x266   :  { %v7410_v33 = vsel %vm4756_vm0, %v4653_v23, %v4652_v37  ;;  %v4317_v34 = vmax.f32 %v3985_v24, 0.0  ;;  %v3512_v28 = vmax.f32 %v3510_v16, %v3511_v1  ;;  %v3261_v35 = vadd.f32 %v7346_v5, %v2903_v26  ;;  %v6198_v37 = vld [vmem:[#allocation2 + $0x688] sm:$0xf0] }
 0x267   :  { %v2566_v38 = vadd.f32 %v2565_v20, %v1916_v25  ;;  %1955 = vmatmul.bf16.gmra.mxu0 %v5645_v11  ;;  %2295 = vmatmul.bf16.gmra.mxu2 %v6189_v18  ;;  %v5654_v11 = vld [vmem:[#allocation2 + $0x248] sm:$0xf0]  ;;  %v6722_v18 = vld [vmem:[#allocation2 + $0x684] sm:$0xf]  ;;  %v5653_v23 = vor.u32 %v6587_v63, %v5652_v57  ;;  %v6197_v26 = vor.u32 %v6723_v6, %v6196_v4  ;;  %v6204_v63 = vld [vmem:[#allocation2 + $0x690] sm:$0xf] }
 0x268   :  { %v4445_v2 = vpack.c.bf16 %v4317_v34, %v4317_v34  ;;  %v3513_v44 = vrot.slane %v3512_v28, 2  ;;  %v3986_v48 = vmax.f32 %v3260_v12, %v3261_v35  ;;  %2604 = vmatmul.bf16.gmra.mxu1 %v5649_v10  ;;  %2944 = vmatmul.bf16.gmra.mxu3 %v6193_v54  ;;  %v5657_v25 = vor.u32 %v6586_v36, %v5654_v11  ;;  %v6725_v4 = vld [vmem:[#allocation2 + $0x694] sm:$0xf0]  ;;  %v6588_v6 = vld [vmem:[#allocation2 + $0x254] sm:$0xf] }
 0x269   :  { %v3126_v16 = vadd.f32 %v7355_v50, %v2566_v38  ;;  %v6201_v27 = vor.u32 %v6722_v18, %v6198_v37  ;;  %v5662_v36 = vld [vmem:[#allocation2 + $0x258] sm:$0xf0] }
 0x26a   :  { %v3514_v46 = vmax.f32 %v3512_v28, %v3513_v44  ;;  %v3987_v47 = vrot.slane %v3986_v48, 4  ;;  %v2256_v43 = vpop.f32.mrf.mxu2  ;;  %v4721_v52 = vunpack.c.l.b16 %v4445_v2  ;;  %v6206_v18 = vld [vmem:[#allocation2 + $0x698] sm:$0xf0] }
 0x26b   :  { %v2905_v3 = vpop.f32.mrf.mxu3 }
 0x26c   :  { %v3515_v60 = vrot.slane %v3514_v46, 1  ;;  %v3988_v9 = vmax.f32 %v3986_v48, %v3987_v47  ;;  %v2906_v8 = vadd.f32 %v2905_v3, %v2256_v43  ;;  %v1918_v53 = vpop.f32.mrf.mxu0  ;;  %v4844_v22 = vsel %vm4764_vm4, %v4721_v52, %v4843_v41 }
 0x26d   :  { %v2567_v56 = vpop.f32.mrf.mxu1 }
 0x26e   :  { %v3516_v39 = vmax.f32 %v3514_v46, %v3515_v60  ;;  %v3989_v21 = vrot.slane %v3988_v9, 2  ;;  %v2568_v59 = vadd.f32 %v2567_v56, %v1918_v53  ;;  %v3262_v24 = vadd.f32 %v7355_v50, %v2906_v8 }
 0x270   :  { %v4250_v58 = vmax.f32 %v3516_v39, 0.0  ;;  %v3990_v61 = vmax.f32 %v3988_v9, %v3989_v21  ;;  %v3127_v19 = vadd.f32 %v7346_v5, %v2568_v59  ;;  %v5660_v21 = vld [vmem:[#allocation2 + $0x250] sm:$0xf]  ;;  %v6589_v59 = vld [vmem:[#allocation2 + $0x254] sm:$0xf0] }
 0x272   :  { %v4378_v12 = vpack.c.bf16 %v4250_v58, %v4250_v58  ;;  %v3991_v15 = vrot.slane %v3990_v61, 1  ;;  %v3517_v10 = vmax.f32 %v3126_v16, %v3127_v19  ;;  %v2258_v54 = vpop.f32.mrf.mxu2  ;;  %v6724_v19 = vld [vmem:[#allocation2 + $0x694] sm:$0xf] }
 0x273   :  { %v2907_v1 = vpop.f32.mrf.mxu3 }
 0x274   :  { %v4654_v31 = vunpack.c.l.b16 %v4378_v12  ;;  %v3992_v20 = vmax.f32 %v3990_v61, %v3991_v15  ;;  %v3518_v34 = vrot.slane %v3517_v10, 4  ;;  %v2908_v28 = vadd.f32 %v2907_v1, %v2258_v54  ;;  %v1921_v35 = vpop.f32.mrf.mxu0 }
 0x275   :  { %v2570_v13 = vpop.f32.mrf.mxu1  ;;  %v5661_v54 = vor.u32 %v6589_v59, %v5660_v21  ;;  %v6209_v1 = vor.u32 %v6724_v19, %v6206_v18  ;;  %v6727_v21 = vld [vmem:[#allocation2 + $0x6a4] sm:$0xf0]  ;;  %v6214_v19 = vld [vmem:[#allocation2 + $0x6a8] sm:$0xf0] }
 0x276   :  { %v4318_v38 = vmax.f32 %v3992_v20, 0.0  ;;  %v3519_v14 = vmax.f32 %v3517_v10, %v3518_v34  ;;  %v3263_v2 = vadd.f32 %v7346_v5, %v2908_v28  ;;  %v2571_v44 = vadd.f32 %v2570_v13, %v1921_v35  ;;  %v6799_v34 = vld [vmem:[#allocation10 + $0x28] sm:$0xff] }
 0x277   :  { %1960 = vmatmul.bf16.gmra.mxu0 %v5653_v23  ;;  %2300 = vmatmul.bf16.gmra.mxu2 %v6197_v26  ;;  %v4785_v48 = vsel %vm4758_vm1, %v4654_v31, %v7410_v33  ;;  %v6205_v23 = vor.u32 %v6725_v4, %v6204_v63  ;;  %v6590_v63 = vld [vmem:[#allocation2 + $0x264] sm:$0xf]  ;;  %v5670_v4 = vld [vmem:[#allocation2 + $0x268] sm:$0xf0] }
 0x278   :  { %v3520_v45 = vrot.slane %v3519_v14, 2  ;;  %v3993_v46 = vmax.f32 %v3262_v24, %v3263_v2  ;;  %2609 = vmatmul.bf16.gmra.mxu1 %v5657_v25  ;;  %2949 = vmatmul.bf16.gmra.mxu3 %v6201_v27  ;;  %v4446_v47 = vpack.c.bf16 %v4318_v38, %v4318_v38  ;;  %v3128_v61 = vadd.f32 %v7355_v50, %v2571_v44 }
 0x279   :  { %v5665_v24 = vor.u32 %v6588_v6, %v5662_v36  ;;  %5082 = vmatpush.bf16.msrb.mxu3 %v6799_v34 }
 0x27a   :  { %v3521_v43 = vmax.f32 %v3519_v14, %v3520_v45  ;;  %v3994_v52 = vrot.slane %v3993_v46, 4  ;;  %v2261_v3 = vpop.f32.mrf.mxu2  ;;  %v4722_v60 = vunpack.c.l.b16 %v4446_v47 }
 0x27b   :  { %v2910_v29 = vpop.f32.mrf.mxu3 }
 0x27c   :  { %v3522_v9 = vrot.slane %v3521_v43, 1  ;;  %v3995_v8 = vmax.f32 %v3993_v46, %v3994_v52  ;;  %v2911_v53 = vadd.f32 %v2910_v29, %v2261_v3  ;;  %v1923_v49 = vpop.f32.mrf.mxu0  ;;  %v7425_v57 = vsel %vm4766_vm5, %v4722_v60, %v4844_v22 }
 0x27d   :  { %v2572_v56 = vpop.f32.mrf.mxu1 }
 0x27e   :  { %v3523_v41 = vmax.f32 %v3521_v43, %v3522_v9  ;;  %v3996_v33 = vrot.slane %v3995_v8, 2  ;;  %v2573_v39 = vadd.f32 %v2572_v56, %v1923_v49  ;;  %v3264_v25 = vadd.f32 %v7355_v50, %v2911_v53  ;;  %v5668_v49 = vld [vmem:[#allocation2 + $0x260] sm:$0xf] }
 0x280   :  { %v4251_v11 = vmax.f32 %v3523_v41, 0.0  ;;  %v3997_v58 = vmax.f32 %v3995_v8, %v3996_v33  ;;  %v3129_v16 = vadd.f32 %v7346_v5, %v2573_v39  ;;  %v6591_v33 = vld [vmem:[#allocation2 + $0x264] sm:$0xf0]  ;;  %v6212_v39 = vld [vmem:[#allocation2 + $0x6a0] sm:$0xf] }
 0x282   :  { %v4379_v37 = vpack.c.bf16 %v4251_v11, %v4251_v11  ;;  %v3998_v22 = vrot.slane %v3997_v58, 1  ;;  %v3524_v12 = vmax.f32 %v3128_v61, %v3129_v16  ;;  %v2263_v15 = vpop.f32.mrf.mxu2  ;;  %v6726_v16 = vld [vmem:[#allocation2 + $0x6a4] sm:$0xf] }
 0x283   :  { %v2912_v10 = vpop.f32.mrf.mxu3 }
 0x284   :  { %v4655_v26 = vunpack.c.l.b16 %v4379_v37  ;;  %v3525_v27 = vrot.slane %v3524_v12, 4  ;;  %v2913_v31 = vadd.f32 %v2912_v10, %v2263_v15  ;;  %v1926_v20 = vpop.f32.mrf.mxu0  ;;  %v3999_v35 = vmax.f32 %v3997_v58, %v3998_v22  ;;  %v7437_v58 = vld [vmem:[#allocation7 + $0x8] sm:$0xff] }
 0x285   :  { %v2575_v28 = vpop.f32.mrf.mxu1  ;;  %v5669_v15 = vor.u32 %v6591_v33, %v5668_v49  ;;  %v6592_v33 = vld [vmem:[#allocation2 + $0x274] sm:$0xf] }
 0x286   :  { %v3526_v13 = vmax.f32 %v3524_v12, %v3525_v27  ;;  %v3265_v38 = vadd.f32 %v7346_v5, %v2913_v31  ;;  %v2576_v14 = vadd.f32 %v2575_v28, %v1926_v20  ;;  %v4786_v2 = vsel %vm4760_vm2, %v4655_v26, %v4785_v48 }
 0x287   :  { %1965 = vmatmul.bf16.gmra.mxu0 %v5661_v54  ;;  %2305 = vmatmul.bf16.gmra.mxu2 %v6205_v23  ;;  %v4319_v46 = vmax.f32 %v3999_v35, 0.0  ;;  %v5673_v23 = vor.u32 %v6590_v63, %v5670_v4  ;;  %v7445_v63 = vld [vmem:[#allocation7] sm:$0xff] }
 0x288   :  { %v3527_v44 = vrot.slane %v3526_v13, 2  ;;  %v4000_v45 = vmax.f32 %v3264_v25, %v3265_v38  ;;  %2614 = vmatmul.bf16.gmra.mxu1 %v5665_v24  ;;  %2954 = vmatmul.bf16.gmra.mxu3 %v6209_v1  ;;  %v3130_v11 = vadd.f32 %v7355_v50, %v2576_v14  ;;  %v6217_v24 = vor.u32 %v6726_v16, %v6214_v19 }
 0x289   :  { %v4447_v29 = vpack.c.bf16 %v4319_v46, %v4319_v46 }
 0x28a   :  { %v3528_v47 = vmax.f32 %v3526_v13, %v3527_v44  ;;  %v4001_v43 = vrot.slane %v4000_v45, 4  ;;  %v2266_v52 = vpop.f32.mrf.mxu2 }
 0x28b   :  { %v2915_v3 = vpop.f32.mrf.mxu3  ;;  %v4723_v56 = vunpack.c.l.b16 %v4447_v29 }
 0x28c   :  { %v3529_v60 = vrot.slane %v3528_v47, 1  ;;  %v4002_v9 = vmax.f32 %v4000_v45, %v4001_v43  ;;  %v2916_v8 = vadd.f32 %v2915_v3, %v2266_v52  ;;  %v1928_v5 = vpop.f32.mrf.mxu0 }
 0x28d   :  { %v2577_v53 = vpop.f32.mrf.mxu1  ;;  %v7434_v6 = vsel %vm4768_vm6, %v4723_v56, %v7425_v57  ;;  %v6213_v57 = vor.u32 %v6727_v21, %v6212_v39  ;;  %v5678_v39 = vld [vmem:[#allocation2 + $0x278] sm:$0xf0] }
 0x28e   :  { %v3530_v48 = vmax.f32 %v3528_v47, %v3529_v60  ;;  %v2578_v41 = vadd.f32 %v2577_v53, %v1928_v5  ;;  %v4003_v59 = vrot.slane %v4002_v9, 2  ;;  %v4880_v18 = vpack.c.b16 %v7434_v6, %v7383_v55  ;;  %v6593_v5 = vld [vmem:[#allocation2 + $0x274] sm:$0xf0] }
 0x28f   :  { %v3266_v26 = vadd.f32 %v7355_v50, %v2916_v8  ;;  %v5676_v8 = vld [vmem:[#allocation2 + $0x270] sm:$0xf] }
 0x290   :  { %v4252_v36 = vmax.f32 %v3530_v48, 0.0  ;;  %v3131_v61 = vadd.f32 %v7437_v58, %v2578_v41  ;;  %v4004_v10 = vmax.f32 %v4002_v9, %v4003_v59  ;;  %v6729_v48 = vld [vmem:[#allocation2 + $0x6b4] sm:$0xf0]  ;;  %v5677_v16 = vor.u32 %v6593_v5, %v5676_v8 }
 0x292   :  { %v4380_v37 = vpack.c.bf16 %v4252_v36, %v4252_v36  ;;  %v3531_v22 = vmax.f32 %v3130_v11, %v3131_v61  ;;  %v2268_v12 = vpop.f32.mrf.mxu2  ;;  %v4005_v13 = vrot.slane %v4004_v10, 1  ;;  %v6728_v11 = vld [vmem:[#allocation2 + $0x6b4] sm:$0xf]  ;;  %v6222_v61 = vld [vmem:[#allocation2 + $0x6b8] sm:$0xf0] }
 0x293   :  { %v2917_v54 = vpop.f32.mrf.mxu3 }
 0x294   :  { %v4656_v1 = vunpack.c.l.b16 %v4380_v37  ;;  %v3532_v25 = vrot.slane %v3531_v22, 4  ;;  %v2918_v27 = vadd.f32 %v2917_v54, %v2268_v12  ;;  %v1931_v31 = vpop.f32.mrf.mxu0  ;;  %v4006_v47 = vmax.f32 %v4004_v10, %v4005_v13 }
 0x295   :  { %v2580_v20 = vpop.f32.mrf.mxu1 }
 0x296   :  { %v3533_v34 = vmax.f32 %v3531_v22, %v3532_v25  ;;  %v3267_v28 = vadd.f32 %v7437_v58, %v2918_v27  ;;  %v2581_v35 = vadd.f32 %v2580_v20, %v1931_v31  ;;  %v4787_v38 = vsel %vm4762_vm3, %v4656_v1, %v4786_v2  ;;  %v6220_v2 = vld [vmem:[#allocation2 + $0x6b0] sm:$0xf] }
 0x297   :  { %1970 = vmatmul.bf16.gmra.mxu0 %v5669_v15  ;;  %2310 = vmatmul.bf16.gmra.mxu2 %v6213_v57  ;;  %v4320_v41 = vmax.f32 %v4006_v47, 0.0  ;;  %v6221_v15 = vor.u32 %v6729_v48, %v6220_v2  ;;  %v6228_v2 = vld [vmem:[#allocation2 + $0x6c0] sm:$0xf]  ;;  %v6731_v48 = vld [vmem:[#allocation2 + $0x6c4] sm:$0xf0] }
 0x298   :  { %v3534_v14 = vrot.slane %v3533_v34, 2  ;;  %v4007_v44 = vmax.f32 %v3266_v26, %v3267_v28  ;;  %2619 = vmatmul.bf16.gmra.mxu1 %v5673_v23  ;;  %2959 = vmatmul.bf16.gmra.mxu3 %v6217_v24  ;;  %v3132_v4 = vadd.f32 %v7445_v63, %v2581_v35  ;;  %v5681_v23 = vor.u32 %v6592_v33, %v5678_v39  ;;  %v5686_v33 = vld [vmem:[#allocation2 + $0x288] sm:$0xf0] }
 0x299   :  { %v4448_v10 = vpack.c.bf16 %v4320_v41, %v4320_v41  ;;  %v6225_v24 = vor.u32 %v6728_v11, %v6222_v61  ;;  %v6594_v41 = vld [vmem:[#allocation2 + $0x284] sm:$0xf] }
 0x29a   :  { %v3535_v45 = vmax.f32 %v3533_v34, %v3534_v14  ;;  %v4008_v46 = vrot.slane %v4007_v44, 4  ;;  %v2271_v50 = vpop.f32.mrf.mxu2 }
 0x29b   :  { %v2920_v43 = vpop.f32.mrf.mxu3 }
 0x29c   :  { %v3536_v52 = vrot.slane %v3535_v45, 1  ;;  %v4009_v3 = vmax.f32 %v4007_v44, %v4008_v46  ;;  %v2921_v29 = vadd.f32 %v2920_v43, %v2271_v50  ;;  %v1933_v60 = vpop.f32.mrf.mxu0  ;;  %v4724_v44 = vunpack.c.l.b16 %v4448_v10 }
 0x29d   :  { %v2582_v9 = vpop.f32.mrf.mxu1 }
 0x29e   :  { %v3537_v53 = vmax.f32 %v3535_v45, %v3536_v52  ;;  %v4010_v49 = vrot.slane %v4009_v3, 2  ;;  %v2583_v56 = vadd.f32 %v2582_v9, %v1933_v60  ;;  %v3268_v54 = vadd.f32 %v7445_v63, %v2921_v29 }
 0x2a0   :  { %v4253_v21 = vmax.f32 %v3537_v53, 0.0  ;;  %v4011_v59 = vmax.f32 %v4009_v3, %v4010_v49  ;;  %v3133_v36 = vadd.f32 %v7437_v58, %v2583_v56  ;;  %v5684_v49 = vld [vmem:[#allocation2 + $0x280] sm:$0xf]  ;;  %v6595_v56 = vld [vmem:[#allocation2 + $0x284] sm:$0xf0] }
 0x2a2   :  { %v4381_v19 = vpack.c.bf16 %v4253_v21, %v4253_v21  ;;  %v4012_v37 = vrot.slane %v4011_v59, 1  ;;  %v3538_v22 = vmax.f32 %v3132_v4, %v3133_v36  ;;  %v2273_v12 = vpop.f32.mrf.mxu2  ;;  %v6730_v4 = vld [vmem:[#allocation2 + $0x6c4] sm:$0xf]  ;;  %v6230_v36 = vld [vmem:[#allocation2 + $0x6c8] sm:$0xf0] }
 0x2a3   :  { %v2922_v57 = vpop.f32.mrf.mxu3 }
 0x2a4   :  { %v4657_v1 = vunpack.c.l.b16 %v4381_v19  ;;  %v4013_v26 = vmax.f32 %v4011_v59, %v4012_v37  ;;  %v3539_v25 = vrot.slane %v3538_v22, 4  ;;  %v2923_v27 = vadd.f32 %v2922_v57, %v2273_v12  ;;  %v1936_v31 = vpop.f32.mrf.mxu0 }
 0x2a5   :  { %v2585_v20 = vpop.f32.mrf.mxu1  ;;  %v5685_v37 = vor.u32 %v6595_v56, %v5684_v49  ;;  %v5689_v12 = vor.u32 %v6594_v41, %v5686_v33  ;;  %v6732_v49 = vld [vmem:[#allocation2 + $0x6d4] sm:$0xf]  ;;  %v6238_v56 = vld [vmem:[#allocation2 + $0x6d8] sm:$0xf0] }
 0x2a6   :  { %v4321_v34 = vmax.f32 %v4013_v26, 0.0  ;;  %v3540_v28 = vmax.f32 %v3538_v22, %v3539_v25  ;;  %v3269_v35 = vadd.f32 %v7437_v58, %v2923_v27  ;;  %v2586_v13 = vadd.f32 %v2585_v20, %v1936_v31 }
 0x2a7   :  { %1975 = vmatmul.bf16.gmra.mxu0 %v5677_v16  ;;  %2315 = vmatmul.bf16.gmra.mxu2 %v6221_v15  ;;  %v4788_v14 = vsel %vm4764_vm4, %v4657_v1, %v4787_v38  ;;  %v6229_v22 = vor.u32 %v6731_v48, %v6228_v2  ;;  %v6233_v15 = vor.u32 %v6730_v4, %v6230_v36 }
 0x2a8   :  { %v4449_v45 = vpack.c.bf16 %v4321_v34, %v4321_v34  ;;  %v3541_v46 = vrot.slane %v3540_v28, 2  ;;  %v7452_v50 = vmax.f32 %v3268_v54, %v3269_v35  ;;  %2624 = vmatmul.bf16.gmra.mxu1 %v5681_v23  ;;  %2964 = vmatmul.bf16.gmra.mxu3 %v6225_v24  ;;  %v3134_v21 = vadd.f32 %v7445_v63, %v2586_v13 }
 0x2a9   :  { %v6241_v36 = vor.u32 %v6732_v49, %v6238_v56 }
 0x2aa   :  { %v4725_v47 = vunpack.c.l.b16 %v4449_v45  ;;  %v3542_v43 = vmax.f32 %v3540_v28, %v3541_v46  ;;  %v2276_v52 = vpop.f32.mrf.mxu2 }
 0x2ab   :  { %v2925_v3 = vpop.f32.mrf.mxu3 }
 0x2ac   :  { %v7455_v29 = vsel %vm4756_vm0, %v4725_v47, %v4724_v44  ;;  %v3543_v60 = vrot.slane %v3542_v43, 1  ;;  %v2926_v9 = vadd.f32 %v2925_v3, %v2276_v52  ;;  %v1938_v8 = vpop.f32.mrf.mxu0  ;;  %v5692_v52 = vld [vmem:[#allocation2 + $0x290] sm:$0xf]  ;;  %v6597_v3 = vld [vmem:[#allocation2 + $0x294] sm:$0xf0] }
 0x2ad   :  { %v2587_v5 = vpop.f32.mrf.mxu1 }
 0x2ae   :  { %v3544_v53 = vmax.f32 %v3542_v43, %v3543_v60  ;;  %v2588_v38 = vadd.f32 %v2587_v5, %v1938_v8  ;;  %v3270_v10 = vadd.f32 %v7445_v63, %v2926_v9  ;;  %v6236_v60 = vld [vmem:[#allocation2 + $0x6d0] sm:$0xf]  ;;  %v6733_v8 = vld [vmem:[#allocation2 + $0x6d4] sm:$0xf0]  ;;  %v6596_v5 = vld [vmem:[#allocation2 + $0x294] sm:$0xf] }
 0x2b0   :  { %v4254_v39 = vmax.f32 %v3544_v53, 0.0  ;;  %v3135_v59 = vadd.f32 %v7437_v58, %v2588_v38 }
 0x2b2   :  { %v3545_v11 = vmax.f32 %v3134_v21, %v3135_v59  ;;  %v2278_v61 = vpop.f32.mrf.mxu2  ;;  %v4382_v16 = vpack.c.bf16 %v4254_v39, %v4254_v39  ;;  %v5693_v21 = vor.u32 %v6597_v3, %v5692_v52  ;;  %v6237_v59 = vor.u32 %v6733_v8, %v6236_v60  ;;  %v5702_v52 = vld [vmem:[#allocation2 + $0x2a8] sm:$0xf0]  ;;  %v6734_v3 = vld [vmem:[#allocation2 + $0x6e4] sm:$0xf] }
 0x2b3   :  { %v2927_v19 = vpop.f32.mrf.mxu3  ;;  %v6246_v60 = vld [vmem:[#allocation2 + $0x6e8] sm:$0xf0] }
 0x2b4   :  { %v3546_v54 = vrot.slane %v3545_v11, 4  ;;  %v2928_v57 = vadd.f32 %v2927_v19, %v2278_v61  ;;  %v1941_v23 = vpop.f32.mrf.mxu0  ;;  %v4658_v24 = vunpack.c.l.b16 %v4382_v16 }
 0x2b5   :  { %v2590_v1 = vpop.f32.mrf.mxu1 }
 0x2b6   :  { %v3547_v26 = vmax.f32 %v3545_v11, %v3546_v54  ;;  %v3271_v25 = vadd.f32 %v7437_v58, %v2928_v57  ;;  %v2591_v27 = vadd.f32 %v2590_v1, %v1941_v23  ;;  %v4789_v31 = vsel %vm4766_vm5, %v4658_v24, %v4788_v14  ;;  %v5694_v14 = vld [vmem:[#allocation2 + $0x298] sm:$0xf0] }
 0x2b7   :  { %1980 = vmatmul.bf16.gmra.mxu0 %v5685_v37  ;;  %2320 = vmatmul.bf16.gmra.mxu2 %v6229_v22  ;;  %v5697_v4 = vor.u32 %v6596_v5, %v5694_v14 }
 0x2b8   :  { %v3548_v20 = vrot.slane %v3547_v26, 2  ;;  %v7462_v34 = vmax.f32 %v3270_v10, %v3271_v25  ;;  %2629 = vmatmul.bf16.gmra.mxu1 %v5689_v12  ;;  %2969 = vmatmul.bf16.gmra.mxu3 %v6233_v15  ;;  %v3136_v53 = vadd.f32 %v7445_v63, %v2591_v27 }
 0x2ba   :  { %v3549_v28 = vmax.f32 %v3547_v26, %v3548_v20  ;;  %v2281_v35 = vpop.f32.mrf.mxu2 }
 0x2bb   :  { %v2930_v13 = vpop.f32.mrf.mxu3 }
 0x2bc   :  { %v3550_v44 = vrot.slane %v3549_v28, 1  ;;  %v2931_v45 = vadd.f32 %v2930_v13, %v2281_v35  ;;  %v1943_v46 = vpop.f32.mrf.mxu0  ;;  %v5700_v13 = vld [vmem:[#allocation2 + $0x2a0] sm:$0xf] }
 0x2bd   :  { %v2592_v47 = vpop.f32.mrf.mxu1 }
 0x2be   :  { %v2593_v43 = vadd.f32 %v2592_v47, %v1943_v46  ;;  %v3551_v9 = vmax.f32 %v3549_v28, %v3550_v44  ;;  %v3272_v11 = vadd.f32 %v7445_v63, %v2931_v45  ;;  %v6599_v44 = vld [vmem:[#allocation2 + $0x2a4] sm:$0xf0]  ;;  %v6244_v45 = vld [vmem:[#allocation2 + $0x6e0] sm:$0xf] }
 0x2bf   :  { %v6735_v47 = vld [vmem:[#allocation2 + $0x6e4] sm:$0xf0] }
 0x2c0   :  { %v3137_v38 = vadd.f32 %v7437_v58, %v2593_v43  ;;  %v4255_v2 = vmax.f32 %v3551_v9, 0.0  ;;  %v6598_v43 = vld [vmem:[#allocation2 + $0x2a4] sm:$0xf] }
 0x2c1   :  { %v5705_v49 = vor.u32 %v6598_v43, %v5702_v52  ;;  %v6254_v43 = vld [vmem:[#allocation2 + $0x6f8] sm:$0xf0] }
 0x2c2   :  { %v3552_v48 = vmax.f32 %v3136_v53, %v3137_v38  ;;  %v2283_v41 = vpop.f32.mrf.mxu2  ;;  %v4383_v33 = vpack.c.bf16 %v4255_v2, %v4255_v2  ;;  %v5701_v53 = vor.u32 %v6599_v44, %v5700_v13  ;;  %v6245_v38 = vor.u32 %v6735_v47, %v6244_v45  ;;  %v6600_v13 = vld [vmem:[#allocation2 + $0x2b4] sm:$0xf]  ;;  %v5710_v44 = vld [vmem:[#allocation2 + $0x2b8] sm:$0xf0] }
 0x2c3   :  { %v2932_v39 = vpop.f32.mrf.mxu3  ;;  %v6736_v47 = vld [vmem:[#allocation2 + $0x6f4] sm:$0xf] }
 0x2c4   :  { %v3553_v61 = vrot.slane %v3552_v48, 4  ;;  %v2933_v16 = vadd.f32 %v2932_v39, %v2283_v41  ;;  %v1946_v19 = vpop.f32.mrf.mxu0  ;;  %v4659_v37 = vunpack.c.l.b16 %v4383_v33  ;;  %v6249_v33 = vor.u32 %v6734_v3, %v6246_v60 }
 0x2c5   :  { %v2595_v22 = vpop.f32.mrf.mxu1 }
 0x2c6   :  { %v3273_v12 = vadd.f32 %v7437_v58, %v2933_v16  ;;  %v2596_v15 = vadd.f32 %v2595_v22, %v1946_v19  ;;  %v3554_v10 = vmax.f32 %v3552_v48, %v3553_v61  ;;  %v7469_v54 = vsel %vm4768_vm6, %v4659_v37, %v4789_v31 }
 0x2c7   :  { %1985 = vmatmul.bf16.gmra.mxu0 %v5693_v21  ;;  %2325 = vmatmul.bf16.gmra.mxu2 %v6237_v59  ;;  %v4876_v23 = vpack.c.b16 %v7469_v54, %v7399_v62 }
 0x2c8   :  { %v7471_v57 = vmax.f32 %v3272_v11, %v3273_v12  ;;  %2634 = vmatmul.bf16.gmra.mxu1 %v5697_v4  ;;  %2974 = vmatmul.bf16.gmra.mxu3 %v6241_v36  ;;  %v3555_v1 = vrot.slane %v3554_v10, 2  ;;  %v3138_v31 = vadd.f32 %v7445_v63, %v2596_v15 }
 0x2ca   :  { %v2286_v24 = vpop.f32.mrf.mxu2  ;;  %v3556_v35 = vmax.f32 %v3554_v10, %v3555_v1 }
 0x2cb   :  { %v2935_v26 = vpop.f32.mrf.mxu3 }
 0x2cc   :  { %v2936_v25 = vadd.f32 %v2935_v26, %v2286_v24  ;;  %v1948_v27 = vpop.f32.mrf.mxu0  ;;  %v3557_v5 = vrot.slane %v3556_v35, 1 }
 0x2cd   :  { %v2597_v20 = vpop.f32.mrf.mxu1 }
 0x2ce   :  { %v2598_v28 = vadd.f32 %v2597_v20, %v1948_v27  ;;  %v3274_v56 = vadd.f32 %v7445_v63, %v2936_v25  ;;  %v3558_v36 = vmax.f32 %v3556_v35, %v3557_v5  ;;  %v5708_v25 = vld [vmem:[#allocation2 + $0x2b0] sm:$0xf]  ;;  %v6601_v27 = vld [vmem:[#allocation2 + $0x2b4] sm:$0xf0] }
 0x2cf   :  { %v6252_v20 = vld [vmem:[#allocation2 + $0x6f0] sm:$0xf]  ;;  %v6737_v35 = vld [vmem:[#allocation2 + $0x6f4] sm:$0xf0] }
 0x2d0   :  { %v3139_v46 = vadd.f32 %v7437_v58, %v2598_v28  ;;  %v4256_v37 = vmax.f32 %v3558_v36, 0.0 }
 0x2d2   :  { %v3559_v9 = vmax.f32 %v3138_v31, %v3139_v46  ;;  %v2288_v8 = vpop.f32.mrf.mxu2  ;;  %v4384_v28 = vpack.c.bf16 %v4256_v37, %v4256_v37 }
 0x2d3   :  { %v2937_v14 = vpop.f32.mrf.mxu3 }
 0x2d4   :  { %v3560_v2 = vrot.slane %v3559_v9, 4  ;;  %v2938_v48 = vadd.f32 %v2937_v14, %v2288_v8  ;;  %v1951_v41 = vpop.f32.mrf.mxu0  ;;  %v4660_v8 = vunpack.c.l.b16 %v4384_v28  ;;  %v6253_v14 = vor.u32 %v6737_v35, %v6252_v20  ;;  %v6260_v20 = vld [vmem:[#allocation2 + $0x700] sm:$0xf]  ;;  %v6739_v28 = vld [vmem:[#allocation2 + $0x704] sm:$0xf0] }
 0x2d5   :  { %v2600_v39 = vpop.f32.mrf.mxu1  ;;  %v6602_v35 = vld [vmem:[#allocation2 + $0x2c4] sm:$0xf] }
 0x2d6   :  { %v3561_v21 = vmax.f32 %v3559_v9, %v3560_v2  ;;  %v3275_v59 = vadd.f32 %v7437_v58, %v2938_v48  ;;  %v2601_v4 = vadd.f32 %v2600_v39, %v1951_v41  ;;  %v5709_v9 = vor.u32 %v6601_v27, %v5708_v25  ;;  %v5716_v25 = vld [vmem:[#allocation2 + $0x2c0] sm:$0xf]  ;;  %v6603_v27 = vld [vmem:[#allocation2 + $0x2c4] sm:$0xf0] }
 0x2d7   :  { %1990 = vmatmul.bf16.gmra.mxu0 %v5701_v53  ;;  %2330 = vmatmul.bf16.gmra.mxu2 %v6245_v38  ;;  %v5713_v53 = vor.u32 %v6600_v13, %v5710_v44  ;;  %v6257_v38 = vor.u32 %v6736_v47, %v6254_v43  ;;  %v5718_v13 = vld [vmem:[#allocation2 + $0x2c8] sm:$0xf0] }
 0x2d8   :  { %v3562_v11 = vrot.slane %v3561_v21, 2  ;;  %v7479_v61 = vmax.f32 %v3274_v56, %v3275_v59  ;;  %2639 = vmatmul.bf16.gmra.mxu1 %v5705_v49  ;;  %2979 = vmatmul.bf16.gmra.mxu3 %v6249_v33  ;;  %v3140_v31 = vadd.f32 %v7445_v63, %v2601_v4  ;;  %v6789_v33 = vld [vmem:[#allocation8 + $0x18] sm:$0xff] }
 0x2d9   :  { %4943 = vmatpush.bf16.msrb.mxu2 %v6789_v33  ;;  %v6262_v47 = vld [vmem:[#allocation2 + $0x708] sm:$0xf0] }
 0x2da   :  { %v3563_v16 = vmax.f32 %v3561_v21, %v3562_v11  ;;  %v2291_v19 = vpop.f32.mrf.mxu2 }
 0x2db   :  { %v2940_v22 = vpop.f32.mrf.mxu3 }
 0x2dc   :  { %v3564_v12 = vrot.slane %v3563_v16, 1  ;;  %v2941_v15 = vadd.f32 %v2940_v22, %v2291_v19  ;;  %v1953_v10 = vpop.f32.mrf.mxu0 }
 0x2dd   :  { %v2602_v24 = vpop.f32.mrf.mxu1 }
 0x2de   :  { %v3565_v1 = vmax.f32 %v3563_v16, %v3564_v12  ;;  %v2603_v26 = vadd.f32 %v2602_v24, %v1953_v10  ;;  %v3276_v56 = vadd.f32 %v7445_v63, %v2941_v15 }
 0x2e0   :  { %v4257_v45 = vmax.f32 %v3565_v1, 0.0  ;;  %v3141_v46 = vadd.f32 %v7437_v58, %v2603_v26 }
 0x2e2   :  { %v4385_v52 = vpack.c.bf16 %v4257_v45, %v4257_v45  ;;  %v3566_v3 = vmax.f32 %v3140_v31, %v3141_v46  ;;  %v2293_v60 = vpop.f32.mrf.mxu2  ;;  %v6738_v46 = vld [vmem:[#allocation2 + $0x704] sm:$0xf] }
 0x2e3   :  { %v2942_v5 = vpop.f32.mrf.mxu3 }
 0x2e4   :  { %v4661_v49 = vunpack.c.l.b16 %v4385_v52  ;;  %v3567_v2 = vrot.slane %v3566_v3, 4  ;;  %v2943_v48 = vadd.f32 %v2942_v5, %v2293_v60  ;;  %v1956_v41 = vpop.f32.mrf.mxu0  ;;  %v5721_v5 = vor.u32 %v6602_v35, %v5718_v13  ;;  %v5724_v13 = vld [vmem:[#allocation2 + $0x2d0] sm:$0xf] }
 0x2e5   :  { %v2605_v39 = vpop.f32.mrf.mxu1 }
 0x2e6   :  { %v4791_v21 = vsel %vm4756_vm0, %v4661_v49, %v4660_v8  ;;  %v3568_v59 = vmax.f32 %v3566_v3, %v3567_v2  ;;  %v3277_v4 = vadd.f32 %v7437_v58, %v2943_v48  ;;  %v2606_v36 = vadd.f32 %v2605_v39, %v1956_v41 }
 0x2e7   :  { %1995 = vmatmul.bf16.gmra.mxu0 %v5709_v9  ;;  %2335 = vmatmul.bf16.gmra.mxu2 %v6253_v14  ;;  %v5717_v9 = vor.u32 %v6603_v27, %v5716_v25  ;;  %v6261_v8 = vor.u32 %v6739_v28, %v6260_v20  ;;  %v6265_v14 = vor.u32 %v6738_v46, %v6262_v47  ;;  %v6604_v46 = vld [vmem:[#allocation2 + $0x2d4] sm:$0xf]  ;;  %v5726_v47 = vld [vmem:[#allocation2 + $0x2d8] sm:$0xf0] }
 0x2e8   :  { %v3569_v11 = vrot.slane %v3568_v59, 2  ;;  %v7486_v16 = vmax.f32 %v3276_v56, %v3277_v4  ;;  %2644 = vmatmul.bf16.gmra.mxu1 %v5713_v53  ;;  %2984 = vmatmul.bf16.gmra.mxu3 %v6257_v38  ;;  %v3142_v45 = vadd.f32 %v7445_v63, %v2606_v36 }
 0x2ea   :  { %v3570_v19 = vmax.f32 %v3568_v59, %v3569_v11  ;;  %v2296_v37 = vpop.f32.mrf.mxu2  ;;  %v4015_v11 = vrot.slane %v7452_v50, 4 }
 0x2eb   :  { %v2945_v22 = vpop.f32.mrf.mxu3 }
 0x2ec   :  { %v3571_v12 = vrot.slane %v3570_v19, 1  ;;  %v2946_v15 = vadd.f32 %v2945_v22, %v2296_v37  ;;  %v1958_v10 = vpop.f32.mrf.mxu0  ;;  %v4016_v27 = vmax.f32 %v7452_v50, %v4015_v11 }
 0x2ed   :  { %v2607_v24 = vpop.f32.mrf.mxu1 }
 0x2ee   :  { %v3572_v1 = vmax.f32 %v3570_v19, %v3571_v12  ;;  %v2608_v26 = vadd.f32 %v2607_v24, %v1958_v10  ;;  %v3278_v38 = vadd.f32 %v7445_v63, %v2946_v15  ;;  %v4022_v19 = vrot.slane %v7462_v34, 4  ;;  %v6798_v12 = vld [vmem:[#allocation10 + $0x20] sm:$0xff] }
 0x2ef   :  { %5083 = vmatpush.bf16.msrb.mxu3 %v6798_v12 }
 0x2f0   :  { %v4258_v44 = vmax.f32 %v3572_v1, 0.0  ;;  %v3143_v31 = vadd.f32 %v7437_v58, %v2608_v26  ;;  %v4029_v26 = vrot.slane %v7471_v57, 4  ;;  %v4023_v20 = vmax.f32 %v7462_v34, %v4022_v19 }
 0x2f1   :  { %v4017_v34 = vrot.slane %v4016_v27, 2 }
 0x2f2   :  { %v4386_v43 = vpack.c.bf16 %v4258_v44, %v4258_v44  ;;  %v3573_v52 = vmax.f32 %v3142_v45, %v3143_v31  ;;  %v2298_v3 = vpop.f32.mrf.mxu2  ;;  %v6605_v44 = vld [vmem:[#allocation2 + $0x2d4] sm:$0xf0]  ;;  %v6268_v45 = vld [vmem:[#allocation2 + $0x710] sm:$0xf] }
 0x2f3   :  { %v2947_v60 = vpop.f32.mrf.mxu3  ;;  %v6741_v31 = vld [vmem:[#allocation2 + $0x714] sm:$0xf0] }
 0x2f4   :  { %v4662_v53 = vunpack.c.l.b16 %v4386_v43  ;;  %v3574_v49 = vrot.slane %v3573_v52, 4  ;;  %v2948_v56 = vadd.f32 %v2947_v60, %v2298_v3  ;;  %v1961_v2 = vpop.f32.mrf.mxu0  ;;  %v6740_v60 = vld [vmem:[#allocation2 + $0x714] sm:$0xf] }
 0x2f5   :  { %v2610_v48 = vpop.f32.mrf.mxu1 }
 0x2f6   :  { %v3575_v41 = vmax.f32 %v3573_v52, %v3574_v49  ;;  %v3279_v33 = vadd.f32 %v7437_v58, %v2948_v56  ;;  %v2611_v39 = vadd.f32 %v2610_v48, %v1961_v2  ;;  %v4792_v59 = vsel %vm4758_vm1, %v4662_v53, %v4791_v21 }
 0x2f7   :  { %2000 = vmatmul.bf16.gmra.mxu0 %v5717_v9  ;;  %2340 = vmatmul.bf16.gmra.mxu2 %v6261_v8  ;;  %v4036_v21 = vrot.slane %v7479_v61, 4  ;;  %v6270_v9 = vld [vmem:[#allocation2 + $0x718] sm:$0xf0]  ;;  %v4030_v8 = vmax.f32 %v7471_v57, %v4029_v26  ;;  %v5725_v56 = vor.u32 %v6605_v44, %v5724_v13  ;;  %v6269_v2 = vor.u32 %v6741_v31, %v6268_v45 }
 0x2f8   :  { %v3576_v4 = vrot.slane %v3575_v41, 2  ;;  %v7493_v36 = vmax.f32 %v3278_v38, %v3279_v33  ;;  %2649 = vmatmul.bf16.gmra.mxu1 %v5721_v5  ;;  %2989 = vmatmul.bf16.gmra.mxu3 %v6265_v14  ;;  %v3144_v52 = vadd.f32 %v7445_v63, %v2611_v39  ;;  %v4024_v5 = vrot.slane %v4023_v20, 2 }
 0x2f9   :  { %v4037_v50 = vmax.f32 %v7479_v61, %v4036_v21  ;;  %v5729_v48 = vor.u32 %v6604_v46, %v5726_v47  ;;  %v4043_v61 = vrot.slane %v7486_v16, 4  ;;  %v4018_v26 = vmax.f32 %v4016_v27, %v4017_v34 }
 0x2fa   :  { %v3577_v37 = vmax.f32 %v3575_v41, %v3576_v4  ;;  %v2301_v22 = vpop.f32.mrf.mxu2  ;;  %v6273_v41 = vor.u32 %v6740_v60, %v6270_v9  ;;  %v4025_v21 = vmax.f32 %v4023_v20, %v4024_v5  ;;  %v4050_v44 = vrot.slane %v7493_v36, 4  ;;  %v5732_v5 = vld [vmem:[#allocation2 + $0x2e0] sm:$0xf] }
 0x2fb   :  { %v2950_v15 = vpop.f32.mrf.mxu3  ;;  %v4038_v57 = vrot.slane %v4037_v50, 2  ;;  %v4044_v13 = vmax.f32 %v7486_v16, %v4043_v61  ;;  %v4019_v47 = vrot.slane %v4018_v26, 1 }
 0x2fc   :  { %v3578_v10 = vrot.slane %v3577_v37, 1  ;;  %v2951_v24 = vadd.f32 %v2950_v15, %v2301_v22  ;;  %v1963_v1 = vpop.f32.mrf.mxu0 }
 0x2fd   :  { %v2612_v25 = vpop.f32.mrf.mxu1  ;;  %v4045_v34 = vrot.slane %v4044_v13, 2 }
 0x2fe   :  { %v3579_v28 = vmax.f32 %v3577_v37, %v3578_v10  ;;  %v2613_v35 = vadd.f32 %v2612_v25, %v1963_v1  ;;  %v3280_v39 = vadd.f32 %v7445_v63, %v2951_v24  ;;  %v4031_v37 = vrot.slane %v4030_v8, 2 }
 0x300   :  { %v4259_v43 = vmax.f32 %v3579_v28, 0.0  ;;  %v3145_v3 = vadd.f32 %v7437_v58, %v2613_v35  ;;  %v4032_v28 = vmax.f32 %v4030_v8, %v4031_v37  ;;  %v4039_v35 = vmax.f32 %v4037_v50, %v4038_v57 }
 0x301   :  { %v4051_v8 = vmax.f32 %v7493_v36, %v4050_v44  ;;  %v4046_v57 = vmax.f32 %v4044_v13, %v4045_v34 }
 0x302   :  { %v4387_v14 = vpack.c.bf16 %v4259_v43, %v4259_v43  ;;  %v3580_v53 = vmax.f32 %v3144_v52, %v3145_v3  ;;  %v2303_v38 = vpop.f32.mrf.mxu2  ;;  %v4026_v43 = vrot.slane %v4025_v21, 1  ;;  %v4033_v60 = vrot.slane %v4032_v28, 1 }
 0x303   :  { %v2952_v49 = vpop.f32.mrf.mxu3  ;;  %v4040_v9 = vrot.slane %v4039_v35, 1  ;;  %v4052_v61 = vrot.slane %v4051_v8, 2  ;;  %v4047_v13 = vrot.slane %v4046_v57, 1 }
 0x304   :  { %v4663_v33 = vunpack.c.l.b16 %v4387_v14  ;;  %v3581_v4 = vrot.slane %v3580_v53, 4  ;;  %v2953_v11 = vadd.f32 %v2952_v49, %v2303_v38  ;;  %v1966_v19 = vpop.f32.mrf.mxu0  ;;  %v6276_v38 = vld [vmem:[#allocation2 + $0x720] sm:$0xf]  ;;  %v6743_v49 = vld [vmem:[#allocation2 + $0x724] sm:$0xf0]  ;;  %v4027_v37 = vmax.f32 %v4025_v21, %v4026_v43 }
 0x305   :  { %v2615_v22 = vpop.f32.mrf.mxu1  ;;  %v4034_v36 = vmax.f32 %v4032_v28, %v4033_v60  ;;  %v4053_v43 = vmax.f32 %v4051_v8, %v4052_v61  ;;  %v6609_v61 = vld [vmem:[#allocation2 + $0x2f4] sm:$0xf0] }
 0x306   :  { %v3582_v12 = vmax.f32 %v3580_v53, %v3581_v4  ;;  %v3281_v15 = vadd.f32 %v7437_v58, %v2953_v11  ;;  %v2616_v10 = vadd.f32 %v2615_v22, %v1966_v19  ;;  %v7509_v1 = vsel %vm4760_vm2, %v4663_v33, %v4792_v59  ;;  %v6607_v53 = vld [vmem:[#allocation2 + $0x2e4] sm:$0xf0]  ;;  %v6742_v11 = vld [vmem:[#allocation2 + $0x724] sm:$0xf]  ;;  %v6278_v19 = vld [vmem:[#allocation2 + $0x728] sm:$0xf0] }
 0x307   :  { %2005 = vmatmul.bf16.gmra.mxu0 %v5725_v56  ;;  %2345 = vmatmul.bf16.gmra.mxu2 %v6269_v2  ;;  %v6606_v2 = vld [vmem:[#allocation2 + $0x2e4] sm:$0xf]  ;;  %v4041_v22 = vmax.f32 %v4039_v35, %v4040_v9  ;;  %v4323_v28 = vmax.f32 %v4027_v37, 0.0  ;;  %v4324_v60 = vmax.f32 %v4034_v36, 0.0  ;;  %v5740_v36 = vld [vmem:[#allocation2 + $0x2f0] sm:$0xf] }
 0x308   :  { %v3583_v24 = vrot.slane %v3582_v12, 2  ;;  %v4056_v25 = vmax.f32 %v3280_v39, %v3281_v15  ;;  %2654 = vmatmul.bf16.gmra.mxu1 %v5729_v48  ;;  %2994 = vmatmul.bf16.gmra.mxu3 %v6273_v41  ;;  %v5734_v48 = vld [vmem:[#allocation2 + $0x2e8] sm:$0xf0]  ;;  %v4020_v41 = vmax.f32 %v4018_v26, %v4019_v47  ;;  %v3146_v39 = vadd.f32 %v7445_v63, %v2616_v10 }
 0x309   :  { %v5737_v26 = vor.u32 %v6606_v2, %v5734_v48  ;;  %v4451_v8 = vpack.c.bf16 %v4323_v28, %v4323_v28  ;;  %v6286_v28 = vld [vmem:[#allocation2 + $0x738] sm:$0xf0] }
 0x30a   :  { %v3584_v45 = vmax.f32 %v3582_v12, %v3583_v24  ;;  %v4057_v31 = vrot.slane %v4056_v25, 4  ;;  %v2306_v46 = vpop.f32.mrf.mxu2  ;;  %v4322_v21 = vmax.f32 %v4020_v41, 0.0 }
 0x30b   :  { %v2955_v59 = vpop.f32.mrf.mxu3 }
 0x30c   :  { %v3585_v27 = vrot.slane %v3584_v45, 1  ;;  %v4058_v52 = vmax.f32 %v4056_v25, %v4057_v31  ;;  %v2956_v3 = vadd.f32 %v2955_v59, %v2306_v46  ;;  %v1968_v20 = vpop.f32.mrf.mxu0  ;;  %v5733_v25 = vor.u32 %v6607_v53, %v5732_v5 }
 0x30d   :  { %v2617_v50 = vpop.f32.mrf.mxu1  ;;  %v6277_v31 = vor.u32 %v6743_v49, %v6276_v38  ;;  %v6281_v46 = vor.u32 %v6742_v11, %v6278_v19  ;;  %v4450_v53 = vpack.c.bf16 %v4322_v21, %v4322_v21  ;;  %v4048_v38 = vmax.f32 %v4046_v57, %v4047_v13  ;;  %v6284_v57 = vld [vmem:[#allocation2 + $0x730] sm:$0xf]  ;;  %v6744_v21 = vld [vmem:[#allocation2 + $0x734] sm:$0xf] }
 0x30e   :  { %v3586_v16 = vmax.f32 %v3584_v45, %v3585_v27  ;;  %v2618_v14 = vadd.f32 %v2617_v50, %v1968_v20  ;;  %v4059_v56 = vrot.slane %v4058_v52, 2  ;;  %v3282_v10 = vadd.f32 %v7445_v63, %v2956_v3 }
 0x30f   :  { %v4325_v50 = vmax.f32 %v4041_v22, 0.0  ;;  %v4054_v49 = vrot.slane %v4053_v43, 1  ;;  %v4726_v22 = vunpack.c.l.b16 %v4450_v53 }
 0x310   :  { %v4260_v33 = vmax.f32 %v3586_v16, 0.0  ;;  %v3147_v4 = vadd.f32 %v7437_v58, %v2618_v14  ;;  %v4060_v44 = vmax.f32 %v4058_v52, %v4059_v56  ;;  %v4452_v56 = vpack.c.bf16 %v4324_v60, %v4324_v60 }
 0x312   :  { %v4388_v12 = vpack.c.bf16 %v4260_v33, %v4260_v33  ;;  %v3587_v15 = vmax.f32 %v3146_v39, %v3147_v4  ;;  %v2308_v24 = vpop.f32.mrf.mxu2  ;;  %v4061_v5 = vrot.slane %v4060_v44, 1  ;;  %v7522_v33 = vpack.c.bf16 %v4325_v50, %v4325_v50 }
 0x313   :  { %v2957_v45 = vpop.f32.mrf.mxu3 }
 0x314   :  { %v4664_v47 = vunpack.c.l.b16 %v4388_v12  ;;  %v3588_v59 = vrot.slane %v3587_v15, 4  ;;  %v2958_v27 = vadd.f32 %v2957_v45, %v2308_v24  ;;  %v1971_v20 = vpop.f32.mrf.mxu0  ;;  %v4062_v39 = vmax.f32 %v4060_v44, %v4061_v5  ;;  %v5742_v44 = vld [vmem:[#allocation2 + $0x2f8] sm:$0xf0] }
 0x315   :  { %v2620_v35 = vpop.f32.mrf.mxu1  ;;  %v4727_v12 = vunpack.c.l.b16 %v4451_v8  ;;  %v4055_v45 = vmax.f32 %v4053_v43, %v4054_v49  ;;  %v6289_v49 = vor.u32 %v6744_v21, %v6286_v28 }
 0x316   :  { %v3589_v9 = vmax.f32 %v3587_v15, %v3588_v59  ;;  %v3283_v34 = vadd.f32 %v7437_v58, %v2958_v27  ;;  %v2621_v52 = vadd.f32 %v2620_v35, %v1971_v20  ;;  %v7520_v3 = vsel %vm4762_vm3, %v4664_v47, %v7509_v1 }
 0x317   :  { %2010 = vmatmul.bf16.gmra.mxu0 %v5733_v25  ;;  %2350 = vmatmul.bf16.gmra.mxu2 %v6277_v31  ;;  %v4326_v15 = vmax.f32 %v4048_v38, 0.0  ;;  %v6745_v25 = vld [vmem:[#allocation2 + $0x734] sm:$0xf0]  ;;  %v4728_v31 = vunpack.c.l.b16 %v4452_v56  ;;  %v4729_v59 = vunpack.c.l.b16 %v7522_v33  ;;  %v4328_v27 = vmax.f32 %v4062_v39, 0.0 }
 0x318   :  { %v3590_v16 = vrot.slane %v3589_v9, 2  ;;  %v4063_v14 = vmax.f32 %v3282_v10, %v3283_v34  ;;  %2659 = vmatmul.bf16.gmra.mxu1 %v5737_v26  ;;  %2999 = vmatmul.bf16.gmra.mxu3 %v6281_v46  ;;  %v6608_v10 = vld [vmem:[#allocation2 + $0x2f4] sm:$0xf]  ;;  %v5741_v20 = vor.u32 %v6609_v61, %v5740_v36  ;;  %v4327_v13 = vmax.f32 %v4055_v45, 0.0 }
 0x319   :  { %v6285_v43 = vor.u32 %v6745_v25, %v6284_v57  ;;  %v5745_v50 = vor.u32 %v6608_v10, %v5742_v44  ;;  %v4454_v5 = vpack.c.bf16 %v4326_v15, %v4326_v15  ;;  %v4456_v56 = vpack.c.bf16 %v4328_v27, %v4328_v27 }
 0x31a   :  { %v3591_v2 = vmax.f32 %v3589_v9, %v3590_v16  ;;  %v4064_v48 = vrot.slane %v4063_v14, 4  ;;  %v2311_v41 = vpop.f32.mrf.mxu2  ;;  %v3148_v9 = vadd.f32 %v7445_v63, %v2621_v52  ;;  %v4848_v16 = vsel %vm4758_vm1, %v4726_v22, %v7455_v29 }
 0x31b   :  { %v2960_v4 = vpop.f32.mrf.mxu3  ;;  %v4849_v52 = vsel %vm4760_vm2, %v4727_v12, %v4848_v16  ;;  %v4730_v36 = vunpack.c.l.b16 %v4454_v5  ;;  %v4732_v25 = vunpack.c.l.b16 %v4456_v56  ;;  %v5750_v5 = vld [vmem:[#allocation2 + $0x308] sm:$0xf0] }
 0x31c   :  { %v3592_v11 = vrot.slane %v3591_v2, 1  ;;  %v4065_v19 = vmax.f32 %v4063_v14, %v4064_v48  ;;  %v2961_v1 = vadd.f32 %v2960_v4, %v2311_v41  ;;  %v1973_v37 = vpop.f32.mrf.mxu0  ;;  %v4455_v41 = vpack.c.bf16 %v4327_v13, %v4327_v13 }
 0x31d   :  { %v2622_v24 = vpop.f32.mrf.mxu1  ;;  %v4850_v29 = vsel %vm4762_vm3, %v4728_v31, %v4849_v52 }
 0x31e   :  { %v3593_v26 = vmax.f32 %v3591_v2, %v3592_v11  ;;  %v4066_v46 = vrot.slane %v4065_v19, 2  ;;  %v2623_v47 = vadd.f32 %v2622_v24, %v1973_v37  ;;  %v3284_v2 = vadd.f32 %v7445_v63, %v2961_v1 }
 0x31f   :  { %v4731_v12 = vunpack.c.l.b16 %v4455_v41  ;;  %v4851_v57 = vsel %vm4764_vm4, %v4729_v59, %v4850_v29 }
 0x320   :  { %v4261_v35 = vmax.f32 %v3593_v26, 0.0  ;;  %v4067_v60 = vmax.f32 %v4065_v19, %v4066_v46  ;;  %v3149_v34 = vadd.f32 %v7437_v58, %v2623_v47  ;;  %v4852_v31 = vsel %vm4766_vm5, %v4730_v36, %v4851_v57 }
 0x321   :  { %v7540_v27 = vsel %vm4768_vm6, %v4731_v12, %v4852_v31 }
 0x322   :  { %v4389_v14 = vpack.c.bf16 %v4261_v35, %v4261_v35  ;;  %v4068_v53 = vrot.slane %v4067_v60, 1  ;;  %v3594_v8 = vmax.f32 %v3148_v9, %v3149_v34  ;;  %v2313_v38 = vpop.f32.mrf.mxu2  ;;  %v6611_v9 = vld [vmem:[#allocation2 + $0x304] sm:$0xf0]  ;;  %v6292_v34 = vld [vmem:[#allocation2 + $0x740] sm:$0xf] }
 0x323   :  { %v2962_v48 = vpop.f32.mrf.mxu3 }
 0x324   :  { %v4665_v33 = vunpack.c.l.b16 %v4389_v14  ;;  %v4069_v39 = vmax.f32 %v4067_v60, %v4068_v53  ;;  %v3595_v4 = vrot.slane %v3594_v8, 4  ;;  %v2963_v11 = vadd.f32 %v2962_v48, %v2313_v38  ;;  %v1976_v19 = vpop.f32.mrf.mxu0  ;;  %v5748_v60 = vld [vmem:[#allocation2 + $0x300] sm:$0xf]  ;;  %v7546_v53 = vld [vmem:[#allocation7 + $0x8] sm:$0xff]  ;;  %v6746_v38 = vld [vmem:[#allocation2 + $0x744] sm:$0xf] }
 0x325   :  { %v2625_v37 = vpop.f32.mrf.mxu1  ;;  %v5749_v52 = vor.u32 %v6611_v9, %v5748_v60  ;;  %v5758_v60 = vld [vmem:[#allocation2 + $0x318] sm:$0xf0] }
 0x326   :  { %v4329_v61 = vmax.f32 %v4069_v39, 0.0  ;;  %v3596_v22 = vmax.f32 %v3594_v8, %v3595_v4  ;;  %v3285_v15 = vadd.f32 %v7437_v58, %v2963_v11  ;;  %v2626_v24 = vadd.f32 %v2625_v37, %v1976_v19 }
 0x327   :  { %2015 = vmatmul.bf16.gmra.mxu0 %v5741_v20  ;;  %2355 = vmatmul.bf16.gmra.mxu2 %v6285_v43  ;;  %v4795_v1 = vsel %vm4764_vm4, %v4665_v33, %v7520_v3  ;;  %v6747_v43 = vld [vmem:[#allocation2 + $0x744] sm:$0xf0] }
 0x328   :  { %v4457_v45 = vpack.c.bf16 %v4329_v61, %v4329_v61  ;;  %v3597_v26 = vrot.slane %v3596_v22, 2  ;;  %v7536_v46 = vmax.f32 %v3284_v2, %v3285_v15  ;;  %2664 = vmatmul.bf16.gmra.mxu1 %v5745_v50  ;;  %3004 = vmatmul.bf16.gmra.mxu3 %v6289_v49  ;;  %v6610_v50 = vld [vmem:[#allocation2 + $0x304] sm:$0xf]  ;;  %v3150_v14 = vadd.f32 %v7445_v63, %v2626_v24  ;;  %v6294_v49 = vld [vmem:[#allocation2 + $0x748] sm:$0xf0] }
 0x329   :  { %v6293_v33 = vor.u32 %v6747_v43, %v6292_v34  ;;  %v5753_v39 = vor.u32 %v6610_v50, %v5750_v5  ;;  %v6297_v4 = vor.u32 %v6746_v38, %v6294_v49  ;;  %v6748_v43 = vld [vmem:[#allocation2 + $0x754] sm:$0xf]  ;;  %v6302_v50 = vld [vmem:[#allocation2 + $0x758] sm:$0xf0] }
 0x32a   :  { %v4733_v47 = vunpack.c.l.b16 %v4457_v45  ;;  %v3598_v58 = vmax.f32 %v3596_v22, %v3597_v26  ;;  %v2316_v10 = vpop.f32.mrf.mxu2 }
 0x32b   :  { %v2965_v44 = vpop.f32.mrf.mxu3 }
 0x32c   :  { %v7543_v3 = vsel %vm4756_vm0, %v4733_v47, %v4732_v25  ;;  %v3599_v59 = vrot.slane %v3598_v58, 1  ;;  %v2966_v20 = vadd.f32 %v2965_v44, %v2316_v10  ;;  %v1978_v21 = vpop.f32.mrf.mxu0 }
 0x32d   :  { %v2627_v28 = vpop.f32.mrf.mxu1 }
 0x32e   :  { %v3600_v13 = vmax.f32 %v3598_v58, %v3599_v59  ;;  %v2628_v35 = vadd.f32 %v2627_v28, %v1978_v21  ;;  %v3286_v11 = vadd.f32 %v7445_v63, %v2966_v20  ;;  %v5756_v59 = vld [vmem:[#allocation2 + $0x310] sm:$0xf]  ;;  %v6613_v20 = vld [vmem:[#allocation2 + $0x314] sm:$0xf0] }
 0x32f   :  { %v6300_v21 = vld [vmem:[#allocation2 + $0x750] sm:$0xf]  ;;  %v5757_v49 = vor.u32 %v6613_v20, %v5756_v59 }
 0x330   :  { %v4262_v16 = vmax.f32 %v3600_v13, 0.0  ;;  %v3151_v8 = vadd.f32 %v7546_v53, %v2628_v35  ;;  %v6749_v13 = vld [vmem:[#allocation2 + $0x754] sm:$0xf0]  ;;  %v6612_v35 = vld [vmem:[#allocation2 + $0x314] sm:$0xf] }
 0x332   :  { %v3601_v56 = vmax.f32 %v3150_v14, %v3151_v8  ;;  %v2318_v2 = vpop.f32.mrf.mxu2  ;;  %v4390_v48 = vpack.c.bf16 %v4262_v16, %v4262_v16 }
 0x333   :  { %v2967_v41 = vpop.f32.mrf.mxu3 }
 0x334   :  { %v3602_v19 = vrot.slane %v3601_v56, 4  ;;  %v2968_v37 = vadd.f32 %v2967_v41, %v2318_v2  ;;  %v1981_v36 = vpop.f32.mrf.mxu0  ;;  %v4666_v29 = vunpack.c.l.b16 %v4390_v48  ;;  %v5761_v2 = vor.u32 %v6612_v35, %v5758_v60  ;;  %v6308_v35 = vld [vmem:[#allocation2 + $0x760] sm:$0xf] }
 0x335   :  { %v2630_v61 = vpop.f32.mrf.mxu1  ;;  %v6305_v48 = vor.u32 %v6748_v43, %v6302_v50 }
 0x336   :  { %v3603_v22 = vmax.f32 %v3601_v56, %v3602_v19  ;;  %v3287_v15 = vadd.f32 %v7546_v53, %v2968_v37  ;;  %v2631_v24 = vadd.f32 %v2630_v61, %v1981_v36  ;;  %v4796_v12 = vsel %vm4766_vm5, %v4666_v29, %v4795_v1  ;;  %v7552_v1 = vld [vmem:[#allocation7] sm:$0xff] }
 0x337   :  { %2020 = vmatmul.bf16.gmra.mxu0 %v5749_v52  ;;  %2360 = vmatmul.bf16.gmra.mxu2 %v6293_v33  ;;  %v6301_v56 = vor.u32 %v6749_v13, %v6300_v21  ;;  %v6615_v13 = vld [vmem:[#allocation2 + $0x324] sm:$0xf0] }
 0x338   :  { %v3604_v57 = vrot.slane %v3603_v22, 2  ;;  %v4077_v25 = vmax.f32 %v3286_v11, %v3287_v15  ;;  %2669 = vmatmul.bf16.gmra.mxu1 %v5753_v39  ;;  %3009 = vmatmul.bf16.gmra.mxu3 %v6297_v4  ;;  %v3152_v9 = vadd.f32 %v7552_v1, %v2631_v24  ;;  %v4071_v11 = vrot.slane %v7536_v46, 4 }
 0x33a   :  { %v3605_v45 = vmax.f32 %v3603_v22, %v3604_v57  ;;  %v2321_v26 = vpop.f32.mrf.mxu2  ;;  %v4078_v19 = vrot.slane %v4077_v25, 4  ;;  %v4072_v24 = vmax.f32 %v7536_v46, %v4071_v11 }
 0x33b   :  { %v2970_v63 = vpop.f32.mrf.mxu3 }
 0x33c   :  { %v3606_v31 = vrot.slane %v3605_v45, 1  ;;  %v2971_v47 = vadd.f32 %v2970_v63, %v2321_v26  ;;  %v1983_v58 = vpop.f32.mrf.mxu0  ;;  %v4079_v57 = vmax.f32 %v4077_v25, %v4078_v19  ;;  %v6751_v25 = vld [vmem:[#allocation2 + $0x764] sm:$0xf0] }
 0x33d   :  { %v2632_v10 = vpop.f32.mrf.mxu1 }
 0x33e   :  { %v2633_v44 = vadd.f32 %v2632_v10, %v1983_v58  ;;  %v3607_v28 = vmax.f32 %v3605_v45, %v3606_v31  ;;  %v3288_v41 = vadd.f32 %v7552_v1, %v2971_v47  ;;  %v4073_v10 = vrot.slane %v4072_v24, 2 }
 0x340   :  { %v3153_v34 = vadd.f32 %v7546_v53, %v2633_v44  ;;  %v4263_v5 = vmax.f32 %v3607_v28, 0.0  ;;  %v4080_v44 = vrot.slane %v4079_v57, 2  ;;  %v4074_v43 = vmax.f32 %v4072_v24, %v4073_v10 }
 0x342   :  { %v3608_v16 = vmax.f32 %v3152_v9, %v3153_v34  ;;  %v2323_v14 = vpop.f32.mrf.mxu2  ;;  %v4391_v8 = vpack.c.bf16 %v4263_v5, %v4263_v5  ;;  %v6614_v9 = vld [vmem:[#allocation2 + $0x324] sm:$0xf]  ;;  %v5766_v34 = vld [vmem:[#allocation2 + $0x328] sm:$0xf0]  ;;  %v4081_v50 = vmax.f32 %v4079_v57, %v4080_v44  ;;  %v4075_v19 = vrot.slane %v4074_v43, 1 }
 0x343   :  { %v2972_v38 = vpop.f32.mrf.mxu3  ;;  %v6788_v57 = vld [vmem:[#allocation8 + $0x10] sm:$0xff] }
 0x344   :  { %v3609_v52 = vrot.slane %v3608_v16, 4  ;;  %v2973_v33 = vadd.f32 %v2972_v38, %v2323_v14  ;;  %v1986_v39 = vpop.f32.mrf.mxu0  ;;  %v4667_v4 = vunpack.c.l.b16 %v4391_v8  ;;  %v6310_v14 = vld [vmem:[#allocation2 + $0x768] sm:$0xf0]  ;;  %4944 = vmatpush.bf16.msrb.mxu2 %v6788_v57 }
 0x345   :  { %v2635_v37 = vpop.f32.mrf.mxu1 }
 0x346   :  { %v3289_v36 = vadd.f32 %v7546_v53, %v2973_v33  ;;  %v2636_v29 = vadd.f32 %v2635_v37, %v1986_v39  ;;  %v3610_v61 = vmax.f32 %v3608_v16, %v3609_v52  ;;  %v7560_v22 = vsel %vm4768_vm6, %v4667_v4, %v4796_v12  ;;  %v5764_v12 = vld [vmem:[#allocation2 + $0x320] sm:$0xf]  ;;  %v6750_v16 = vld [vmem:[#allocation2 + $0x764] sm:$0xf] }
 0x347   :  { %2025 = vmatmul.bf16.gmra.mxu0 %v5757_v49  ;;  %2365 = vmatmul.bf16.gmra.mxu2 %v6301_v56  ;;  %v6313_v11 = vor.u32 %v6750_v16, %v6310_v14  ;;  %v4082_v37 = vrot.slane %v4081_v50, 1  ;;  %v6316_v14 = vld [vmem:[#allocation2 + $0x770] sm:$0xf] }
 0x348   :  { %v4084_v15 = vmax.f32 %v3288_v41, %v3289_v36  ;;  %2674 = vmatmul.bf16.gmra.mxu1 %v5761_v2  ;;  %3014 = vmatmul.bf16.gmra.mxu3 %v6305_v48  ;;  %v3611_v63 = vrot.slane %v3610_v61, 2  ;;  %v3154_v60 = vadd.f32 %v7552_v1, %v2636_v29  ;;  %v5765_v2 = vor.u32 %v6615_v13, %v5764_v12 }
 0x349   :  { %v6309_v48 = vor.u32 %v6751_v25, %v6308_v35  ;;  %v5769_v41 = vor.u32 %v6614_v9, %v5766_v34  ;;  %v5772_v34 = vld [vmem:[#allocation2 + $0x330] sm:$0xf] }
 0x34a   :  { %v4085_v45 = vrot.slane %v4084_v15, 4  ;;  %v2326_v26 = vpop.f32.mrf.mxu2  ;;  %v3612_v28 = vmax.f32 %v3610_v61, %v3611_v63 }
 0x34b   :  { %v2975_v31 = vpop.f32.mrf.mxu3 }
 0x34c   :  { %v2976_v47 = vadd.f32 %v2975_v31, %v2326_v26  ;;  %v1988_v58 = vpop.f32.mrf.mxu0  ;;  %v4086_v59 = vmax.f32 %v4084_v15, %v4085_v45  ;;  %v3613_v49 = vrot.slane %v3612_v28, 1  ;;  %v4076_v31 = vmax.f32 %v4074_v43, %v4075_v19 }
 0x34d   :  { %v2637_v20 = vpop.f32.mrf.mxu1 }
 0x34e   :  { %v2638_v21 = vadd.f32 %v2637_v20, %v1988_v58  ;;  %v4087_v5 = vrot.slane %v4086_v59, 2  ;;  %v3290_v52 = vadd.f32 %v7552_v1, %v2976_v47  ;;  %v3614_v45 = vmax.f32 %v3612_v28, %v3613_v49  ;;  %v6616_v49 = vld [vmem:[#allocation2 + $0x334] sm:$0xf] }
 0x34f   :  { %v4083_v47 = vmax.f32 %v4081_v50, %v4082_v37  ;;  %v4330_v28 = vmax.f32 %v4076_v31, 0.0  ;;  %v6617_v50 = vld [vmem:[#allocation2 + $0x334] sm:$0xf0] }
 0x350   :  { %v3155_v46 = vadd.f32 %v7546_v53, %v2638_v21  ;;  %v4088_v36 = vmax.f32 %v4086_v59, %v4087_v5  ;;  %v4264_v20 = vmax.f32 %v3614_v45, 0.0  ;;  %v5773_v37 = vor.u32 %v6617_v50, %v5772_v34 }
 0x352   :  { %v3615_v8 = vmax.f32 %v3154_v60, %v3155_v46  ;;  %v2328_v38 = vpop.f32.mrf.mxu2  ;;  %v4089_v58 = vrot.slane %v4088_v36, 1  ;;  %v4331_v46 = vmax.f32 %v4083_v47, 0.0 }
 0x353   :  { %v2977_v56 = vpop.f32.mrf.mxu3 }
 0x354   :  { %v3616_v33 = vrot.slane %v3615_v8, 4  ;;  %v2978_v39 = vadd.f32 %v2977_v56, %v2328_v38  ;;  %v1991_v4 = vpop.f32.mrf.mxu0  ;;  %v4090_v25 = vmax.f32 %v4088_v36, %v4089_v58  ;;  %v6753_v38 = vld [vmem:[#allocation2 + $0x774] sm:$0xf0]  ;;  %v5774_v56 = vld [vmem:[#allocation2 + $0x338] sm:$0xf0] }
 0x355   :  { %v2640_v29 = vpop.f32.mrf.mxu1  ;;  %v6317_v57 = vor.u32 %v6753_v38, %v6316_v14  ;;  %v5777_v31 = vor.u32 %v6616_v49, %v5774_v56 }
 0x356   :  { %v3617_v61 = vmax.f32 %v3615_v8, %v3616_v33  ;;  %v3291_v15 = vadd.f32 %v7546_v53, %v2978_v39  ;;  %v2641_v24 = vadd.f32 %v2640_v29, %v1991_v4  ;;  %v4392_v8 = vpack.c.bf16 %v4264_v20, %v4264_v20  ;;  %v6752_v33 = vld [vmem:[#allocation2 + $0x774] sm:$0xf]  ;;  %v6318_v39 = vld [vmem:[#allocation2 + $0x778] sm:$0xf0] }
 0x357   :  { %2030 = vmatmul.bf16.gmra.mxu0 %v5765_v2  ;;  %2370 = vmatmul.bf16.gmra.mxu2 %v6309_v48  ;;  %v4458_v4 = vpack.c.bf16 %v4330_v28, %v4330_v28  ;;  %v4332_v19 = vmax.f32 %v4090_v25, 0.0  ;;  %v6321_v47 = vor.u32 %v6752_v33, %v6318_v39  ;;  %v5780_v39 = vld [vmem:[#allocation2 + $0x340] sm:$0xf] }
 0x358   :  { %v3618_v26 = vrot.slane %v3617_v61, 2  ;;  %v4091_v63 = vmax.f32 %v3290_v52, %v3291_v15  ;;  %2679 = vmatmul.bf16.gmra.mxu1 %v5769_v41  ;;  %3019 = vmatmul.bf16.gmra.mxu3 %v6313_v11  ;;  %v3156_v41 = vadd.f32 %v7552_v1, %v2641_v24  ;;  %v4459_v11 = vpack.c.bf16 %v4331_v46, %v4331_v46 }
 0x359   :  { %v4668_v45 = vunpack.c.l.b16 %v4392_v8  ;;  %v4460_v20 = vpack.c.bf16 %v4332_v19, %v4332_v19  ;;  %v4734_v46 = vunpack.c.l.b16 %v4458_v4 }
 0x35a   :  { %v3619_v10 = vmax.f32 %v3617_v61, %v3618_v26  ;;  %v4092_v44 = vrot.slane %v4091_v63, 4  ;;  %v2331_v59 = vpop.f32.mrf.mxu2 }
 0x35b   :  { %v2980_v21 = vpop.f32.mrf.mxu3  ;;  %v4855_v49 = vsel %vm4758_vm1, %v4734_v46, %v7543_v3 }
 0x35c   :  { %v3620_v12 = vrot.slane %v3619_v10, 1  ;;  %v4093_v13 = vmax.f32 %v4091_v63, %v4092_v44  ;;  %v2981_v35 = vadd.f32 %v2980_v21, %v2331_v59  ;;  %v1993_v60 = vpop.f32.mrf.mxu0 }
 0x35d   :  { %v2642_v9 = vpop.f32.mrf.mxu1 }
 0x35e   :  { %v3621_v5 = vmax.f32 %v3619_v10, %v3620_v12  ;;  %v4094_v16 = vrot.slane %v4093_v13, 2  ;;  %v2643_v43 = vadd.f32 %v2642_v9, %v1993_v60  ;;  %v3292_v26 = vadd.f32 %v7552_v1, %v2981_v35 }
 0x35f   :  { %v4735_v35 = vunpack.c.l.b16 %v4459_v11 }
 0x360   :  { %v4265_v2 = vmax.f32 %v3621_v5, 0.0  ;;  %v4095_v48 = vmax.f32 %v4093_v13, %v4094_v16  ;;  %v3157_v52 = vadd.f32 %v7546_v53, %v2643_v43  ;;  %v4736_v16 = vunpack.c.l.b16 %v4460_v20 }
 0x362   :  { %v4393_v36 = vpack.c.bf16 %v4265_v2, %v4265_v2  ;;  %v4096_v29 = vrot.slane %v4095_v48, 1  ;;  %v3622_v61 = vmax.f32 %v3156_v41, %v3157_v52  ;;  %v2333_v15 = vpop.f32.mrf.mxu2  ;;  %v4856_v52 = vsel %vm4760_vm2, %v4735_v35, %v4855_v49 }
 0x363   :  { %v2982_v63 = vpop.f32.mrf.mxu3  ;;  %v4857_v4 = vsel %vm4762_vm3, %v4736_v16, %v4856_v52  ;;  %v6797_v16 = vld [vmem:[#allocation10 + $0x18] sm:$0xff] }
 0x364   :  { %v4669_v24 = vunpack.c.l.b16 %v4393_v36  ;;  %v4097_v58 = vmax.f32 %v4095_v48, %v4096_v29  ;;  %v3623_v10 = vrot.slane %v3622_v61, 4  ;;  %v2983_v44 = vadd.f32 %v2982_v63, %v2333_v15  ;;  %v1996_v59 = vpop.f32.mrf.mxu0  ;;  %v6619_v36 = vld [vmem:[#allocation2 + $0x344] sm:$0xf0]  ;;  %v6324_v29 = vld [vmem:[#allocation2 + $0x780] sm:$0xf]  ;;  %5084 = vmatpush.bf16.msrb.mxu3 %v6797_v16 }
 0x365   :  { %v2645_v21 = vpop.f32.mrf.mxu1  ;;  %v6618_v15 = vld [vmem:[#allocation2 + $0x344] sm:$0xf]  ;;  %v5781_v20 = vor.u32 %v6619_v36, %v5780_v39 }
 0x366   :  { %v7571_v12 = vsel %vm4756_vm0, %v4669_v24, %v4668_v45  ;;  %v4333_v13 = vmax.f32 %v4097_v58, 0.0  ;;  %v3624_v60 = vmax.f32 %v3622_v61, %v3623_v10  ;;  %v3293_v28 = vadd.f32 %v7546_v53, %v2983_v44  ;;  %v6755_v61 = vld [vmem:[#allocation2 + $0x784] sm:$0xf0]  ;;  %v6326_v24 = vld [vmem:[#allocation2 + $0x788] sm:$0xf0] }
 0x367   :  { %v2646_v25 = vadd.f32 %v2645_v21, %v1996_v59  ;;  %2035 = vmatmul.bf16.gmra.mxu0 %v5773_v37  ;;  %2375 = vmatmul.bf16.gmra.mxu2 %v6317_v57  ;;  %v5782_v57 = vld [vmem:[#allocation2 + $0x348] sm:$0xf0] }
 0x368   :  { %v4461_v9 = vpack.c.bf16 %v4333_v13, %v4333_v13  ;;  %v3625_v34 = vrot.slane %v3624_v60, 2  ;;  %v4098_v5 = vmax.f32 %v3292_v26, %v3293_v28  ;;  %2684 = vmatmul.bf16.gmra.mxu1 %v5777_v31  ;;  %3024 = vmatmul.bf16.gmra.mxu3 %v6321_v47  ;;  %v6754_v47 = vld [vmem:[#allocation2 + $0x784] sm:$0xf]  ;;  %v5785_v28 = vor.u32 %v6618_v15, %v5782_v57 }
 0x369   :  { %v3158_v63 = vadd.f32 %v7552_v1, %v2646_v25  ;;  %v6329_v46 = vor.u32 %v6754_v47, %v6326_v24  ;;  %v6620_v47 = vld [vmem:[#allocation2 + $0x354] sm:$0xf]  ;;  %v5790_v24 = vld [vmem:[#allocation2 + $0x358] sm:$0xf0] }
 0x36a   :  { %v3626_v43 = vmax.f32 %v3624_v60, %v3625_v34  ;;  %v4099_v50 = vrot.slane %v4098_v5, 4  ;;  %v2336_v14 = vpop.f32.mrf.mxu2  ;;  %v4737_v8 = vunpack.c.l.b16 %v4461_v9  ;;  %v6325_v60 = vor.u32 %v6755_v61, %v6324_v29 }
 0x36b   :  { %v2985_v38 = vpop.f32.mrf.mxu3 }
 0x36c   :  { %v3627_v56 = vrot.slane %v3626_v43, 1  ;;  %v4100_v2 = vmax.f32 %v4098_v5, %v4099_v50  ;;  %v2986_v48 = vadd.f32 %v2985_v38, %v2336_v14  ;;  %v1998_v41 = vpop.f32.mrf.mxu0  ;;  %v4858_v3 = vsel %vm4764_vm4, %v4737_v8, %v4857_v4 }
 0x36d   :  { %v2647_v33 = vpop.f32.mrf.mxu1 }
 0x36e   :  { %v3628_v11 = vmax.f32 %v3626_v43, %v3627_v56  ;;  %v4101_v19 = vrot.slane %v4100_v2, 2  ;;  %v2648_v37 = vadd.f32 %v2647_v33, %v1998_v41  ;;  %v3294_v21 = vadd.f32 %v7552_v1, %v2986_v48 }
 0x370   :  { %v4266_v45 = vmax.f32 %v3628_v11, 0.0  ;;  %v4102_v26 = vmax.f32 %v4100_v2, %v4101_v19  ;;  %v3159_v31 = vadd.f32 %v7546_v53, %v2648_v37 }
 0x372   :  { %v4394_v58 = vpack.c.bf16 %v4266_v45, %v4266_v45  ;;  %v4103_v10 = vrot.slane %v4102_v26, 1  ;;  %v3629_v44 = vmax.f32 %v3158_v63, %v3159_v31  ;;  %v2338_v59 = vpop.f32.mrf.mxu2  ;;  %v5788_v45 = vld [vmem:[#allocation2 + $0x350] sm:$0xf]  ;;  %v6757_v31 = vld [vmem:[#allocation2 + $0x794] sm:$0xf0] }
 0x373   :  { %v2987_v13 = vpop.f32.mrf.mxu3  ;;  %v6332_v63 = vld [vmem:[#allocation2 + $0x790] sm:$0xf] }
 0x374   :  { %v4670_v35 = vunpack.c.l.b16 %v4394_v58  ;;  %v4104_v9 = vmax.f32 %v4102_v26, %v4103_v10  ;;  %v3630_v34 = vrot.slane %v3629_v44, 4  ;;  %v2988_v5 = vadd.f32 %v2987_v13, %v2338_v59  ;;  %v2001_v25 = vpop.f32.mrf.mxu0  ;;  %v6621_v26 = vld [vmem:[#allocation2 + $0x354] sm:$0xf0] }
 0x375   :  { %v2650_v43 = vpop.f32.mrf.mxu1 }
 0x376   :  { %v4334_v50 = vmax.f32 %v4104_v9, 0.0  ;;  %v3631_v14 = vmax.f32 %v3629_v44, %v3630_v34  ;;  %v3295_v8 = vadd.f32 %v7546_v53, %v2988_v5  ;;  %v2651_v38 = vadd.f32 %v2650_v43, %v2001_v25 }
 0x377   :  { %2040 = vmatmul.bf16.gmra.mxu0 %v5781_v20  ;;  %2380 = vmatmul.bf16.gmra.mxu2 %v6325_v60  ;;  %v4799_v49 = vsel %vm4758_vm1, %v4670_v35, %v7571_v12  ;;  %v6756_v20 = vld [vmem:[#allocation2 + $0x794] sm:$0xf]  ;;  %v5789_v35 = vor.u32 %v6621_v26, %v5788_v45  ;;  %v6333_v9 = vor.u32 %v6757_v31, %v6332_v63  ;;  %v5796_v26 = vld [vmem:[#allocation2 + $0x360] sm:$0xf] }
 0x378   :  { %v3632_v56 = vrot.slane %v3631_v14, 2  ;;  %v4105_v2 = vmax.f32 %v3294_v21, %v3295_v8  ;;  %2689 = vmatmul.bf16.gmra.mxu1 %v5785_v28  ;;  %3029 = vmatmul.bf16.gmra.mxu3 %v6329_v46  ;;  %v4462_v48 = vpack.c.bf16 %v4334_v50, %v4334_v50  ;;  %v3160_v44 = vadd.f32 %v7552_v1, %v2651_v38  ;;  %v6334_v21 = vld [vmem:[#allocation2 + $0x798] sm:$0xf0] }
 0x379   :  { %v5793_v34 = vor.u32 %v6620_v47, %v5790_v24  ;;  %v6337_v5 = vor.u32 %v6756_v20, %v6334_v21  ;;  %v6623_v47 = vld [vmem:[#allocation2 + $0x364] sm:$0xf0]  ;;  %v6340_v24 = vld [vmem:[#allocation2 + $0x7a0] sm:$0xf] }
 0x37a   :  { %v3633_v41 = vmax.f32 %v3631_v14, %v3632_v56  ;;  %v4106_v52 = vrot.slane %v4105_v2, 4  ;;  %v2341_v33 = vpop.f32.mrf.mxu2  ;;  %v4738_v4 = vunpack.c.l.b16 %v4462_v48 }
 0x37b   :  { %v2990_v39 = vpop.f32.mrf.mxu3 }
 0x37c   :  { %v3634_v11 = vrot.slane %v3633_v41, 1  ;;  %v4107_v19 = vmax.f32 %v4105_v2, %v4106_v52  ;;  %v2991_v37 = vadd.f32 %v2990_v39, %v2341_v33  ;;  %v2003_v36 = vpop.f32.mrf.mxu0  ;;  %v7586_v61 = vsel %vm4766_vm5, %v4738_v4, %v4858_v3 }
 0x37d   :  { %v2652_v29 = vpop.f32.mrf.mxu1 }
 0x37e   :  { %v3635_v15 = vmax.f32 %v3633_v41, %v3634_v11  ;;  %v4108_v12 = vrot.slane %v4107_v19, 2  ;;  %v2653_v57 = vadd.f32 %v2652_v29, %v2003_v36  ;;  %v3296_v16 = vadd.f32 %v7552_v1, %v2991_v37 }
 0x380   :  { %v4267_v58 = vmax.f32 %v3635_v15, 0.0  ;;  %v4109_v10 = vmax.f32 %v4107_v19, %v4108_v12  ;;  %v3161_v59 = vadd.f32 %v7546_v53, %v2653_v57 }
 0x382   :  { %v4395_v13 = vpack.c.bf16 %v4267_v58, %v4267_v58  ;;  %v4110_v3 = vrot.slane %v4109_v10, 1  ;;  %v3636_v60 = vmax.f32 %v3160_v44, %v3161_v59  ;;  %v2343_v28 = vpop.f32.mrf.mxu2  ;;  %v6759_v58 = vld [vmem:[#allocation2 + $0x7a4] sm:$0xf0]  ;;  %v6622_v44 = vld [vmem:[#allocation2 + $0x364] sm:$0xf] }
 0x383   :  { %v2992_v46 = vpop.f32.mrf.mxu3  ;;  %v5798_v59 = vld [vmem:[#allocation2 + $0x368] sm:$0xf0] }
 0x384   :  { %v4671_v25 = vunpack.c.l.b16 %v4395_v13  ;;  %v3637_v43 = vrot.slane %v3636_v60, 4  ;;  %v2993_v50 = vadd.f32 %v2992_v46, %v2343_v28  ;;  %v2006_v14 = vpop.f32.mrf.mxu0  ;;  %v4111_v38 = vmax.f32 %v4109_v10, %v4110_v3  ;;  %v6342_v28 = vld [vmem:[#allocation2 + $0x7a8] sm:$0xf0] }
 0x385   :  { %v2655_v8 = vpop.f32.mrf.mxu1 }
 0x386   :  { %v3638_v56 = vmax.f32 %v3636_v60, %v3637_v43  ;;  %v3297_v2 = vadd.f32 %v7546_v53, %v2993_v50  ;;  %v2656_v48 = vadd.f32 %v2655_v8, %v2006_v14  ;;  %v4800_v41 = vsel %vm4760_vm2, %v4671_v25, %v4799_v49  ;;  %v6758_v60 = vld [vmem:[#allocation2 + $0x7a4] sm:$0xf] }
 0x387   :  { %2045 = vmatmul.bf16.gmra.mxu0 %v5789_v35  ;;  %2385 = vmatmul.bf16.gmra.mxu2 %v6333_v9  ;;  %v4335_v39 = vmax.f32 %v4111_v38, 0.0  ;;  %v6341_v43 = vor.u32 %v6759_v58, %v6340_v24  ;;  %v5801_v50 = vor.u32 %v6622_v44, %v5798_v59  ;;  %v6625_v24 = vld [vmem:[#allocation2 + $0x374] sm:$0xf0] }
 0x388   :  { %v3639_v52 = vrot.slane %v3638_v56, 2  ;;  %v4112_v33 = vmax.f32 %v3296_v16, %v3297_v2  ;;  %2694 = vmatmul.bf16.gmra.mxu1 %v5793_v34  ;;  %3034 = vmatmul.bf16.gmra.mxu3 %v6337_v5  ;;  %v3162_v13 = vadd.f32 %v7552_v1, %v2656_v48  ;;  %v5797_v5 = vor.u32 %v6623_v47, %v5796_v26  ;;  %v5804_v47 = vld [vmem:[#allocation2 + $0x370] sm:$0xf]  ;;  %v6761_v59 = vld [vmem:[#allocation2 + $0x7b4] sm:$0xf0] }
 0x389   :  { %v4463_v36 = vpack.c.bf16 %v4335_v39, %v4335_v39 }
 0x38a   :  { %v3640_v4 = vmax.f32 %v3638_v56, %v3639_v52  ;;  %v4113_v11 = vrot.slane %v4112_v33, 4  ;;  %v2346_v19 = vpop.f32.mrf.mxu2 }
 0x38b   :  { %v2995_v37 = vpop.f32.mrf.mxu3  ;;  %v4739_v63 = vunpack.c.l.b16 %v4463_v36 }
 0x38c   :  { %v3641_v29 = vrot.slane %v3640_v4, 1  ;;  %v4114_v15 = vmax.f32 %v4112_v33, %v4113_v11  ;;  %v2996_v12 = vadd.f32 %v2995_v37, %v2346_v19  ;;  %v2008_v57 = vpop.f32.mrf.mxu0 }
 0x38d   :  { %v2657_v45 = vpop.f32.mrf.mxu1  ;;  %v7595_v20 = vsel %vm4768_vm6, %v4739_v63, %v7586_v61  ;;  %v6345_v61 = vor.u32 %v6758_v60, %v6342_v28 }
 0x38e   :  { %v3642_v49 = vmax.f32 %v3640_v4, %v3641_v29  ;;  %v2658_v31 = vadd.f32 %v2657_v45, %v2008_v57  ;;  %v4115_v10 = vrot.slane %v4114_v15, 2  ;;  %v4881_v46 = vpack.c.b16 %v7595_v20, %v7540_v27 }
 0x38f   :  { %v3298_v8 = vadd.f32 %v7552_v1, %v2996_v12 }
 0x390   :  { %v4268_v21 = vmax.f32 %v3642_v49, 0.0  ;;  %v3163_v3 = vadd.f32 %v7546_v53, %v2658_v31  ;;  %v4116_v25 = vmax.f32 %v4114_v15, %v4115_v10 }
 0x392   :  { %v4396_v35 = vpack.c.bf16 %v4268_v21, %v4268_v21  ;;  %v3643_v9 = vmax.f32 %v3162_v13, %v3163_v3  ;;  %v2348_v34 = vpop.f32.mrf.mxu2  ;;  %v4117_v4 = vrot.slane %v4116_v25, 1  ;;  %v6624_v13 = vld [vmem:[#allocation2 + $0x374] sm:$0xf]  ;;  %v5806_v3 = vld [vmem:[#allocation2 + $0x378] sm:$0xf0] }
 0x393   :  { %v2997_v16 = vpop.f32.mrf.mxu3 }
 0x394   :  { %v4672_v14 = vunpack.c.l.b16 %v4396_v35  ;;  %v3644_v38 = vrot.slane %v3643_v9, 4  ;;  %v2998_v56 = vadd.f32 %v2997_v16, %v2348_v34  ;;  %v2011_v2 = vpop.f32.mrf.mxu0  ;;  %v4118_v12 = vmax.f32 %v4116_v25, %v4117_v4  ;;  %v6760_v34 = vld [vmem:[#allocation2 + $0x7b4] sm:$0xf] }
 0x395   :  { %v2660_v48 = vpop.f32.mrf.mxu1  ;;  %v5805_v25 = vor.u32 %v6625_v24, %v5804_v47 }
 0x396   :  { %v3645_v52 = vmax.f32 %v3643_v9, %v3644_v38  ;;  %v3299_v33 = vadd.f32 %v7546_v53, %v2998_v56  ;;  %v2661_v39 = vadd.f32 %v2660_v48, %v2011_v2  ;;  %v4801_v11 = vsel %vm4762_vm3, %v4672_v14, %v4800_v41  ;;  %v6348_v41 = vld [vmem:[#allocation2 + $0x7b0] sm:$0xf] }
 0x397   :  { %2050 = vmatmul.bf16.gmra.mxu0 %v5797_v5  ;;  %2390 = vmatmul.bf16.gmra.mxu2 %v6341_v43  ;;  %v4336_v21 = vmax.f32 %v4118_v12, 0.0  ;;  %v6350_v5 = vld [vmem:[#allocation2 + $0x7b8] sm:$0xf0]  ;;  %v6349_v14 = vor.u32 %v6761_v59, %v6348_v41  ;;  %v5809_v2 = vor.u32 %v6624_v13, %v5806_v3  ;;  %v5812_v3 = vld [vmem:[#allocation2 + $0x380] sm:$0xf] }
 0x398   :  { %v3646_v19 = vrot.slane %v3645_v52, 2  ;;  %v4119_v37 = vmax.f32 %v3298_v8, %v3299_v33  ;;  %2699 = vmatmul.bf16.gmra.mxu1 %v5801_v50  ;;  %3039 = vmatmul.bf16.gmra.mxu3 %v6345_v61  ;;  %v3164_v35 = vadd.f32 %v7552_v1, %v2661_v39  ;;  %v6353_v48 = vor.u32 %v6760_v34, %v6350_v5  ;;  %v5814_v34 = vld [vmem:[#allocation2 + $0x388] sm:$0xf0] }
 0x399   :  { %v4464_v8 = vpack.c.bf16 %v4336_v21, %v4336_v21 }
 0x39a   :  { %v3647_v36 = vmax.f32 %v3645_v52, %v3646_v19  ;;  %v4120_v29 = vrot.slane %v4119_v37, 4  ;;  %v2351_v15 = vpop.f32.mrf.mxu2 }
 0x39b   :  { %v3000_v57 = vpop.f32.mrf.mxu3 }
 0x39c   :  { %v3648_v45 = vrot.slane %v3647_v36, 1  ;;  %v4121_v26 = vmax.f32 %v4119_v37, %v4120_v29  ;;  %v3001_v63 = vadd.f32 %v3000_v57, %v2351_v15  ;;  %v2013_v49 = vpop.f32.mrf.mxu0 }
 0x39d   :  { %v2662_v31 = vpop.f32.mrf.mxu1 }
 0x39e   :  { %v3649_v58 = vmax.f32 %v3647_v36, %v3648_v45  ;;  %v4122_v10 = vrot.slane %v4121_v26, 2  ;;  %v2663_v44 = vadd.f32 %v2662_v31, %v2013_v49  ;;  %v3300_v38 = vadd.f32 %v7552_v1, %v3001_v63 }
 0x39f   :  { %v4740_v45 = vunpack.c.l.b16 %v4464_v8 }
 0x3a0   :  { %v4269_v60 = vmax.f32 %v3649_v58, 0.0  ;;  %v4123_v28 = vmax.f32 %v4121_v26, %v4122_v10  ;;  %v3165_v9 = vadd.f32 %v7546_v53, %v2663_v44 }
 0x3a2   :  { %v4397_v16 = vpack.c.bf16 %v4269_v60, %v4269_v60  ;;  %v4124_v43 = vrot.slane %v4123_v28, 1  ;;  %v3650_v50 = vmax.f32 %v3164_v35, %v3165_v9  ;;  %v2353_v61 = vpop.f32.mrf.mxu2  ;;  %v6627_v60 = vld [vmem:[#allocation2 + $0x384] sm:$0xf0]  ;;  %v6626_v9 = vld [vmem:[#allocation2 + $0x384] sm:$0xf] }
 0x3a3   :  { %v3002_v56 = vpop.f32.mrf.mxu3  ;;  %v6763_v35 = vld [vmem:[#allocation2 + $0x7c4] sm:$0xf0] }
 0x3a4   :  { %v4673_v52 = vunpack.c.l.b16 %v4397_v16  ;;  %v4125_v33 = vmax.f32 %v4123_v28, %v4124_v43  ;;  %v3651_v4 = vrot.slane %v3650_v50, 4  ;;  %v3003_v39 = vadd.f32 %v3002_v56, %v2353_v61  ;;  %v2016_v19 = vpop.f32.mrf.mxu0  ;;  %v6356_v28 = vld [vmem:[#allocation2 + $0x7c0] sm:$0xf]  ;;  %v6762_v43 = vld [vmem:[#allocation2 + $0x7c4] sm:$0xf] }
 0x3a5   :  { %v2665_v37 = vpop.f32.mrf.mxu1  ;;  %v5813_v56 = vor.u32 %v6627_v60, %v5812_v3  ;;  %v6364_v3 = vld [vmem:[#allocation2 + $0x7d0] sm:$0xf] }
 0x3a6   :  { %v4337_v36 = vmax.f32 %v4125_v33, 0.0  ;;  %v3652_v29 = vmax.f32 %v3650_v50, %v3651_v4  ;;  %v3301_v15 = vadd.f32 %v7546_v53, %v3003_v39  ;;  %v2666_v12 = vadd.f32 %v2665_v37, %v2016_v19  ;;  %v6358_v50 = vld [vmem:[#allocation2 + $0x7c8] sm:$0xf0] }
 0x3a7   :  { %2055 = vmatmul.bf16.gmra.mxu0 %v5805_v25  ;;  %2395 = vmatmul.bf16.gmra.mxu2 %v6349_v14  ;;  %v4802_v57 = vsel %vm4764_vm4, %v4673_v52, %v4801_v11  ;;  %v6361_v52 = vor.u32 %v6762_v43, %v6358_v50 }
 0x3a8   :  { %v4465_v26 = vpack.c.bf16 %v4337_v36, %v4337_v36  ;;  %v3653_v63 = vrot.slane %v3652_v29, 2  ;;  %v7609_v49 = vmax.f32 %v3300_v38, %v3301_v15  ;;  %2704 = vmatmul.bf16.gmra.mxu1 %v5809_v2  ;;  %3044 = vmatmul.bf16.gmra.mxu3 %v6353_v48  ;;  %v3166_v25 = vadd.f32 %v7552_v1, %v2666_v12 }
 0x3a9   :  { %v6357_v2 = vor.u32 %v6763_v35, %v6356_v28  ;;  %v5817_v48 = vor.u32 %v6626_v9, %v5814_v34  ;;  %v6765_v28 = vld [vmem:[#allocation2 + $0x7d4] sm:$0xf0]  ;;  %v6628_v35 = vld [vmem:[#allocation2 + $0x394] sm:$0xf] }
 0x3aa   :  { %v4741_v31 = vunpack.c.l.b16 %v4465_v26  ;;  %v3654_v47 = vmax.f32 %v3652_v29, %v3653_v63  ;;  %v2356_v24 = vpop.f32.mrf.mxu2 }
 0x3ab   :  { %v3005_v58 = vpop.f32.mrf.mxu3 }
 0x3ac   :  { %v7612_v10 = vsel %vm4756_vm0, %v4741_v31, %v4740_v45  ;;  %v3655_v44 = vrot.slane %v3654_v47, 1  ;;  %v3006_v41 = vadd.f32 %v3005_v58, %v2356_v24  ;;  %v2018_v59 = vpop.f32.mrf.mxu0 }
 0x3ad   :  { %v2667_v21 = vpop.f32.mrf.mxu1 }
 0x3ae   :  { %v3656_v13 = vmax.f32 %v3654_v47, %v3655_v44  ;;  %v2668_v11 = vadd.f32 %v2667_v21, %v2018_v59  ;;  %v3302_v33 = vadd.f32 %v7552_v1, %v3006_v41 }
 0x3b0   :  { %v4270_v5 = vmax.f32 %v3656_v13, 0.0  ;;  %v3167_v16 = vadd.f32 %v7546_v53, %v2668_v11  ;;  %v5820_v13 = vld [vmem:[#allocation2 + $0x390] sm:$0xf]  ;;  %v6629_v11 = vld [vmem:[#allocation2 + $0x394] sm:$0xf0] }
 0x3b2   :  { %v3657_v61 = vmax.f32 %v3166_v25, %v3167_v16  ;;  %v2358_v14 = vpop.f32.mrf.mxu2  ;;  %v4398_v8 = vpack.c.bf16 %v4270_v5, %v4270_v5  ;;  %v6764_v5 = vld [vmem:[#allocation2 + $0x7d4] sm:$0xf]  ;;  %v6366_v25 = vld [vmem:[#allocation2 + $0x7d8] sm:$0xf0] }
 0x3b3   :  { %v3007_v38 = vpop.f32.mrf.mxu3 }
 0x3b4   :  { %v3658_v4 = vrot.slane %v3657_v61, 4  ;;  %v3008_v39 = vadd.f32 %v3007_v38, %v2358_v14  ;;  %v2021_v19 = vpop.f32.mrf.mxu0  ;;  %v4674_v37 = vunpack.c.l.b16 %v4398_v8  ;;  %v5821_v8 = vor.u32 %v6629_v11, %v5820_v13  ;;  %v6631_v13 = vld [vmem:[#allocation2 + $0x3a4] sm:$0xf0]  ;;  %v6372_v11 = vld [vmem:[#allocation2 + $0x7e0] sm:$0xf] }
 0x3b5   :  { %v2670_v36 = vpop.f32.mrf.mxu1  ;;  %v6365_v38 = vor.u32 %v6765_v28, %v6364_v3 }
 0x3b6   :  { %v3659_v29 = vmax.f32 %v3657_v61, %v3658_v4  ;;  %v3303_v15 = vadd.f32 %v7546_v53, %v3008_v39  ;;  %v2671_v12 = vadd.f32 %v2670_v36, %v2021_v19  ;;  %v4803_v45 = vsel %vm4766_vm5, %v4674_v37, %v4802_v57  ;;  %v5822_v57 = vld [vmem:[#allocation2 + $0x398] sm:$0xf0] }
 0x3b7   :  { %2060 = vmatmul.bf16.gmra.mxu0 %v5813_v56  ;;  %2400 = vmatmul.bf16.gmra.mxu2 %v6357_v2  ;;  %v5825_v56 = vor.u32 %v6628_v35, %v5822_v57  ;;  %v6369_v2 = vor.u32 %v6764_v5, %v6366_v25  ;;  %v6630_v35 = vld [vmem:[#allocation2 + $0x3a4] sm:$0xf]  ;;  %v5830_v57 = vld [vmem:[#allocation2 + $0x3a8] sm:$0xf0] }
 0x3b8   :  { %v3660_v26 = vrot.slane %v3659_v29, 2  ;;  %v7619_v63 = vmax.f32 %v3302_v33, %v3303_v15  ;;  %2709 = vmatmul.bf16.gmra.mxu1 %v5817_v48  ;;  %3049 = vmatmul.bf16.gmra.mxu3 %v6361_v52  ;;  %v3168_v9 = vadd.f32 %v7552_v1, %v2671_v12  ;;  %v6374_v5 = vld [vmem:[#allocation2 + $0x7e8] sm:$0xf0] }
 0x3ba   :  { %v3661_v31 = vmax.f32 %v3659_v29, %v3660_v26  ;;  %v2361_v47 = vpop.f32.mrf.mxu2 }
 0x3bb   :  { %v3010_v24 = vpop.f32.mrf.mxu3 }
 0x3bc   :  { %v3662_v58 = vrot.slane %v3661_v31, 1  ;;  %v3011_v44 = vadd.f32 %v3010_v24, %v2361_v47  ;;  %v2023_v41 = vpop.f32.mrf.mxu0 }
 0x3bd   :  { %v2672_v59 = vpop.f32.mrf.mxu1 }
 0x3be   :  { %v2673_v21 = vadd.f32 %v2672_v59, %v2023_v41  ;;  %v3663_v60 = vmax.f32 %v3661_v31, %v3662_v58  ;;  %v3304_v48 = vadd.f32 %v7552_v1, %v3011_v44  ;;  %v5828_v59 = vld [vmem:[#allocation2 + $0x3a0] sm:$0xf] }
 0x3c0   :  { %v3169_v34 = vadd.f32 %v7546_v53, %v2673_v21  ;;  %v4271_v16 = vmax.f32 %v3663_v60, 0.0  ;;  %v7633_v60 = vld [vmem:[#allocation7 + $0x8] sm:$0xff] }
 0x3c2   :  { %v3664_v43 = vmax.f32 %v3168_v9, %v3169_v34  ;;  %v2363_v50 = vpop.f32.mrf.mxu2  ;;  %v4399_v61 = vpack.c.bf16 %v4271_v16, %v4271_v16  ;;  %v6787_v9 = vld [vmem:[#allocation8 + $0x8] sm:$0xff]  ;;  %v6766_v34 = vld [vmem:[#allocation2 + $0x7e4] sm:$0xf] }
 0x3c3   :  { %v3012_v14 = vpop.f32.mrf.mxu3  ;;  %4945 = vmatpush.bf16.msrb.mxu2 %v6787_v9  ;;  %v5838_v9 = vld [vmem:[#allocation2 + $0x3b8] sm:$0xf0] }
 0x3c4   :  { %v3665_v52 = vrot.slane %v3664_v43, 4  ;;  %v3013_v33 = vadd.f32 %v3012_v14, %v2363_v50  ;;  %v2026_v4 = vpop.f32.mrf.mxu0  ;;  %v4675_v39 = vunpack.c.l.b16 %v4399_v61  ;;  %v5829_v61 = vor.u32 %v6631_v13, %v5828_v59 }
 0x3c5   :  { %v2675_v19 = vpop.f32.mrf.mxu1 }
 0x3c6   :  { %v3305_v37 = vadd.f32 %v7546_v53, %v3013_v33  ;;  %v2676_v36 = vadd.f32 %v2675_v19, %v2026_v4  ;;  %v3666_v29 = vmax.f32 %v3664_v43, %v3665_v52  ;;  %v7626_v15 = vsel %vm4768_vm6, %v4675_v39, %v4803_v45  ;;  %v6767_v45 = vld [vmem:[#allocation2 + $0x7e4] sm:$0xf0]  ;;  %v6786_v33 = vld [vmem:[#allocation8] sm:$0xff] }
 0x3c7   :  { %2065 = vmatmul.bf16.gmra.mxu0 %v5821_v8  ;;  %2405 = vmatmul.bf16.gmra.mxu2 %v6365_v38  ;;  %v4877_v26 = vpack.c.b16 %v7626_v15, %v7560_v22  ;;  %v6373_v14 = vor.u32 %v6767_v45, %v6372_v11  ;;  %v5833_v8 = vor.u32 %v6630_v35, %v5830_v57  ;;  %v5836_v45 = vld [vmem:[#allocation2 + $0x3b0] sm:$0xf]  ;;  %v6769_v35 = vld [vmem:[#allocation2 + $0x7f4] sm:$0xf0]  ;;  %v6632_v57 = vld [vmem:[#allocation2 + $0x3b4] sm:$0xf] }
 0x3c8   :  { %v7628_v12 = vmax.f32 %v3304_v48, %v3305_v37  ;;  %2714 = vmatmul.bf16.gmra.mxu1 %v5825_v56  ;;  %3054 = vmatmul.bf16.gmra.mxu3 %v6369_v2  ;;  %v3667_v47 = vrot.slane %v3666_v29, 2  ;;  %v3170_v3 = vadd.f32 %v7552_v1, %v2676_v36  ;;  %v6377_v52 = vor.u32 %v6766_v34, %v6374_v5  ;;  %v7640_v5 = vld [vmem:[#allocation7] sm:$0xff] }
 0x3c9   :  { %4946 = vmatpush.bf16.msrb.mxu2 %v6786_v33 }
 0x3ca   :  { %v2366_v31 = vpop.f32.mrf.mxu2  ;;  %v3668_v21 = vmax.f32 %v3666_v29, %v3667_v47 }
 0x3cb   :  { %v3015_v24 = vpop.f32.mrf.mxu3 }
 0x3cc   :  { %v3016_v58 = vadd.f32 %v3015_v24, %v2366_v31  ;;  %v2028_v44 = vpop.f32.mrf.mxu0  ;;  %v3669_v43 = vrot.slane %v3668_v21, 1 }
 0x3cd   :  { %v2677_v53 = vpop.f32.mrf.mxu1 }
 0x3ce   :  { %v2678_v41 = vadd.f32 %v2677_v53, %v2028_v44  ;;  %v3306_v38 = vadd.f32 %v7552_v1, %v3016_v58  ;;  %v3670_v36 = vmax.f32 %v3668_v21, %v3669_v43  ;;  %v6380_v21 = vld [vmem:[#allocation2 + $0x7f0] sm:$0xf]  ;;  %v6768_v43 = vld [vmem:[#allocation2 + $0x7f4] sm:$0xf] }
 0x3d0   :  { %v3171_v28 = vadd.f32 %v7633_v60, %v2678_v41  ;;  %v4272_v24 = vmax.f32 %v3670_v36, 0.0 }
 0x3d2   :  { %v3671_v25 = vmax.f32 %v3170_v3, %v3171_v28  ;;  %v2368_v16 = vpop.f32.mrf.mxu2  ;;  %v6633_v3 = vld [vmem:[#allocation2 + $0x3b4] sm:$0xf0]  ;;  %v4400_v28 = vpack.c.bf16 %v4272_v24, %v4272_v24 }
 0x3d3   :  { %v3017_v50 = vpop.f32.mrf.mxu3 }
 0x3d4   :  { %v3672_v56 = vrot.slane %v3671_v25, 4  ;;  %v3018_v2 = vadd.f32 %v3017_v50, %v2368_v16  ;;  %v2031_v48 = vpop.f32.mrf.mxu0  ;;  %v6382_v50 = vld [vmem:[#allocation2 + $0x7f8] sm:$0xf0] }
 0x3d5   :  { %v2680_v4 = vpop.f32.mrf.mxu1  ;;  %v6385_v33 = vor.u32 %v6768_v43, %v6382_v50  ;;  %v6635_v43 = vld [vmem:[#allocation2 + $0x3c4] sm:$0xf0]  ;;  %v6634_v50 = vld [vmem:[#allocation2 + $0x3c4] sm:$0xf] }
 0x3d6   :  { %v3673_v39 = vmax.f32 %v3671_v25, %v3672_v56  ;;  %v3307_v19 = vadd.f32 %v7633_v60, %v3018_v2  ;;  %v2681_v37 = vadd.f32 %v2680_v4, %v2031_v48  ;;  %v4676_v56 = vunpack.c.l.b16 %v4400_v28 }
 0x3d7   :  { %2070 = vmatmul.bf16.gmra.mxu0 %v5829_v61  ;;  %2410 = vmatmul.bf16.gmra.mxu2 %v6373_v14  ;;  %v6381_v48 = vor.u32 %v6769_v35, %v6380_v21 }
 0x3d8   :  { %v3674_v29 = vrot.slane %v3673_v39, 2  ;;  %v7638_v31 = vmax.f32 %v3306_v38, %v3307_v19  ;;  %2719 = vmatmul.bf16.gmra.mxu1 %v5833_v8  ;;  %3059 = vmatmul.bf16.gmra.mxu3 %v6377_v52  ;;  %v3172_v25 = vadd.f32 %v7640_v5, %v2681_v37  ;;  %v5837_v38 = vor.u32 %v6633_v3, %v5836_v45  ;;  %v6796_v37 = vld [vmem:[#allocation10 + $0x10] sm:$0xff] }
 0x3d9   :  { %v5841_v52 = vor.u32 %v6632_v57, %v5838_v9  ;;  %5085 = vmatpush.bf16.msrb.mxu3 %v6796_v37 }
 0x3da   :  { %v3675_v1 = vmax.f32 %v3673_v39, %v3674_v29  ;;  %v2371_v47 = vpop.f32.mrf.mxu2 }
 0x3db   :  { %v3020_v58 = vpop.f32.mrf.mxu3 }
 0x3dc   :  { %v3676_v44 = vrot.slane %v3675_v1, 1  ;;  %v3021_v53 = vadd.f32 %v3020_v58, %v2371_v47  ;;  %v2033_v41 = vpop.f32.mrf.mxu0 }
 0x3dd   :  { %v2682_v59 = vpop.f32.mrf.mxu1 }
 0x3de   :  { %v3677_v13 = vmax.f32 %v3675_v1, %v3676_v44  ;;  %v2683_v11 = vadd.f32 %v2682_v59, %v2033_v41  ;;  %v3308_v39 = vadd.f32 %v7640_v5, %v3021_v53 }
 0x3e0   :  { %v4273_v34 = vmax.f32 %v3677_v13, 0.0  ;;  %v3173_v16 = vadd.f32 %v7633_v60, %v2683_v11 }
 0x3e2   :  { %v4401_v61 = vpack.c.bf16 %v4273_v34, %v4273_v34  ;;  %v3678_v14 = vmax.f32 %v3172_v25, %v3173_v16  ;;  %v2373_v8 = vpop.f32.mrf.mxu2  ;;  %v5844_v16 = vld [vmem:[#allocation2 + $0x3c0] sm:$0xf] }
 0x3e3   :  { %v3022_v2 = vpop.f32.mrf.mxu3 }
 0x3e4   :  { %v4677_v4 = vunpack.c.l.b16 %v4401_v61  ;;  %v3679_v19 = vrot.slane %v3678_v14, 4  ;;  %v3023_v36 = vadd.f32 %v3022_v2, %v2373_v8  ;;  %v2036_v29 = vpop.f32.mrf.mxu0  ;;  %v5846_v61 = vld [vmem:[#allocation2 + $0x3c8] sm:$0xf0]  ;;  %v5845_v2 = vor.u32 %v6635_v43, %v5844_v16 }
 0x3e5   :  { %v2685_v1 = vpop.f32.mrf.mxu1  ;;  %v4141_v43 = vrot.slane %v7628_v12, 4 }
 0x3e6   :  { %v4805_v47 = vsel %vm4756_vm0, %v4677_v4, %v4676_v56  ;;  %v3680_v24 = vmax.f32 %v3678_v14, %v3679_v19  ;;  %v3309_v58 = vadd.f32 %v7633_v60, %v3023_v36  ;;  %v2686_v44 = vadd.f32 %v2685_v1, %v2036_v29 }
 0x3e7   :  { %2075 = vmatmul.bf16.gmra.mxu0 %v5837_v38  ;;  %2415 = vmatmul.bf16.gmra.mxu2 %v6381_v48  ;;  %v5849_v4 = vor.u32 %v6634_v50, %v5846_v61 }
 0x3e8   :  { %v3681_v41 = vrot.slane %v3680_v24, 2  ;;  %v7647_v59 = vmax.f32 %v3308_v39, %v3309_v58  ;;  %2724 = vmatmul.bf16.gmra.mxu1 %v5841_v52  ;;  %3064 = vmatmul.bf16.gmra.mxu3 %v6385_v33  ;;  %v3174_v34 = vadd.f32 %v7640_v5, %v2686_v44  ;;  %v4127_v58 = vrot.slane %v7609_v49, 4 }
 0x3ea   :  { %v3682_v53 = vmax.f32 %v3680_v24, %v3681_v41  ;;  %v2376_v13 = vpop.f32.mrf.mxu2  ;;  %v4128_v17 = vmax.f32 %v7609_v49, %v4127_v58 }
 0x3eb   :  { %v3025_v11 = vpop.f32.mrf.mxu3 }
 0x3ec   :  { %v3683_v45 = vrot.slane %v3682_v53, 1  ;;  %v3026_v3 = vadd.f32 %v3025_v11, %v2376_v13  ;;  %v2038_v21 = vpop.f32.mrf.mxu0  ;;  %v4134_v11 = vrot.slane %v7619_v63, 4 }
 0x3ed   :  { %v2687_v28 = vpop.f32.mrf.mxu1 }
 0x3ee   :  { %v3684_v35 = vmax.f32 %v3682_v53, %v3683_v45  ;;  %v2688_v57 = vadd.f32 %v2687_v28, %v2038_v21  ;;  %v4135_v16 = vmax.f32 %v7619_v63, %v4134_v11  ;;  %v3310_v50 = vadd.f32 %v7640_v5, %v3026_v3 }
 0x3ef   :  { %v4142_v3 = vmax.f32 %v7628_v12, %v4141_v43 }
 0x3f0   :  { %v4274_v9 = vmax.f32 %v3684_v35, 0.0  ;;  %v3175_v25 = vadd.f32 %v7633_v60, %v2688_v57 }
 0x3f2   :  { %v4402_v14 = vpack.c.bf16 %v4274_v9, %v4274_v9  ;;  %v3685_v8 = vmax.f32 %v3174_v34, %v3175_v25  ;;  %v2378_v38 = vpop.f32.mrf.mxu2  ;;  %v6636_v34 = vld [vmem:[#allocation2 + $0x3d4] sm:$0xf]  ;;  %v5854_v25 = vld [vmem:[#allocation2 + $0x3d8] sm:$0xf0] }
 0x3f3   :  { %v3027_v56 = vpop.f32.mrf.mxu3 }
 0x3f4   :  { %v4678_v48 = vunpack.c.l.b16 %v4402_v14  ;;  %v3686_v52 = vrot.slane %v3685_v8, 4  ;;  %v2041_v33 = vpop.f32.mrf.mxu0  ;;  %v3028_v45 = vadd.f32 %v3027_v56, %v2378_v38  ;;  %v4129_v38 = vrot.slane %v4128_v17, 2 }
 0x3f5   :  { %v2690_v39 = vpop.f32.mrf.mxu1  ;;  %v4148_v56 = vrot.slane %v7638_v31, 4 }
 0x3f6   :  { %v3687_v19 = vmax.f32 %v3685_v8, %v3686_v52  ;;  %v2691_v36 = vadd.f32 %v2690_v39, %v2041_v33  ;;  %v4806_v29 = vsel %vm4758_vm1, %v4678_v48, %v4805_v47  ;;  %v3311_v61 = vadd.f32 %v7633_v60, %v3028_v45 }
 0x3f7   :  { %2080 = vmatmul.bf16.gmra.mxu0 %v5845_v2  ;;  %4947 = vmatmul.bf16.vlgmr.msrb.gmra.mxu2 %v4875_v42  ;;  %v6637_v42 = vld [vmem:[#allocation2 + $0x3d4] sm:$0xf0]  ;;  %v5857_v52 = vor.u32 %v6636_v34, %v5854_v25  ;;  %v4149_v11 = vmax.f32 %v7638_v31, %v4148_v56  ;;  %v4130_v45 = vmax.f32 %v4128_v17, %v4129_v38  ;;  %v6639_v38 = vld [vmem:[#allocation2 + $0x3e4] sm:$0xf0] }
 0x3f8   :  { %v3688_v37 = vrot.slane %v3687_v19, 2  ;;  %2729 = vmatmul.bf16.gmra.mxu1 %v5849_v4  ;;  %v3176_v57 = vadd.f32 %v7640_v5, %v2691_v36  ;;  %v5853_v48 = vor.u32 %v6637_v42, %v5852_v40  ;;  %v4136_v36 = vrot.slane %v4135_v16, 2 }
 0x3f9   :  { %v4131_v62 = vrot.slane %v4130_v45, 1 }
 0x3fa   :  { %v3689_v1 = vmax.f32 %v3687_v19, %v3688_v37  ;;  %v2381_v24 = vpop.f32.mrf.mxu2  ;;  %v4155_v37 = vrot.slane %v7647_v59, 4  ;;  %v4137_v40 = vmax.f32 %v4135_v16, %v4136_v36  ;;  %v5860_v16 = vld [vmem:[#allocation2 + $0x3e0] sm:$0xf] }
 0x3fb   :  { %v3030_v44 = vpop.f32.mrf.mxu3 }
 0x3fc   :  { %v3690_v41 = vrot.slane %v3689_v1, 1  ;;  %v3031_v53 = vadd.f32 %v3030_v44, %v2381_v24  ;;  %v2043_v13 = vpop.f32.mrf.mxu0  ;;  %v4138_v17 = vrot.slane %v4137_v40, 1 }
 0x3fd   :  { %v2692_v21 = vpop.f32.mrf.mxu1 }
 0x3fe   :  { %v3691_v28 = vmax.f32 %v3689_v1, %v3690_v41  ;;  %v2693_v35 = vadd.f32 %v2692_v21, %v2043_v13  ;;  %v3312_v4 = vadd.f32 %v7640_v5, %v3031_v53  ;;  %v4161_v1 = vmax.f32 %v3310_v50, %v3311_v61 }
 0x3ff   :  { %v4143_v21 = vrot.slane %v4142_v3, 2  ;;  %v4139_v36 = vmax.f32 %v4137_v40, %v4138_v17 }
 0x400   :  { %v4275_v47 = vmax.f32 %v3691_v28, 0.0  ;;  %v3177_v9 = vadd.f32 %v7633_v60, %v2693_v35  ;;  %v4156_v28 = vmax.f32 %v7647_v59, %v4155_v37  ;;  %v4162_v35 = vrot.slane %v4161_v1, 4 }
 0x401   :  { %v4144_v54 = vmax.f32 %v4142_v3, %v4143_v21 }
 0x402   :  { %v4403_v14 = vpack.c.bf16 %v4275_v47, %v4275_v47  ;;  %v3692_v8 = vmax.f32 %v3176_v57, %v3177_v9  ;;  %v2383_v49 = vpop.f32.mrf.mxu2  ;;  %v4150_v57 = vrot.slane %v4149_v11, 2  ;;  %v4163_v50 = vmax.f32 %v4161_v1, %v4162_v35 }
 0x403   :  { %v3032_v2 = vpop.f32.mrf.mxu3 }
 0x404   :  { %v4679_v33 = vunpack.c.l.b16 %v4403_v14  ;;  %v3693_v39 = vrot.slane %v3692_v8, 4  ;;  %v3033_v63 = vadd.f32 %v3032_v2, %v2383_v49  ;;  %v2046_v19 = vpop.f32.mrf.mxu0  ;;  %v4151_v59 = vmax.f32 %v4149_v11, %v4150_v57 }
 0x405   :  { %v2695_v24 = vpop.f32.mrf.mxu1  ;;  %v5861_v11 = vor.u32 %v6639_v38, %v5860_v16 }
 0x406   :  { %v3694_v58 = vmax.f32 %v3692_v8, %v3693_v39  ;;  %v3313_v44 = vadd.f32 %v7633_v60, %v3033_v63  ;;  %v2696_v41 = vadd.f32 %v2695_v24, %v2046_v19  ;;  %v7670_v13 = vsel %vm4760_vm2, %v4679_v33, %v4806_v29  ;;  %v5862_v33 = vld [vmem:[#allocation2 + $0x3e8] sm:$0xf0] }
 0x407   :  { %2085 = vmatmul.bf16.gmra.mxu0 %v5853_v48  ;;  %4952 = vmatmul.bf16.gmra.mxu2 %v4876_v23  ;;  %v4157_v23 = vrot.slane %v4156_v28, 2  ;;  %v4145_v39 = vrot.slane %v4144_v54, 1  ;;  %v4164_v19 = vrot.slane %v4163_v50, 2  ;;  %v4152_v24 = vrot.slane %v4151_v59, 1 }
 0x408   :  { %v3695_v53 = vrot.slane %v3694_v58, 2  ;;  %v4168_v12 = vmax.f32 %v3312_v4, %v3313_v44  ;;  %2734 = vmatmul.bf16.gmra.mxu1 %v5857_v52  ;;  %v3178_v2 = vadd.f32 %v7640_v5, %v2696_v41  ;;  %v6638_v52 = vld [vmem:[#allocation2 + $0x3e4] sm:$0xf]  ;;  %v4132_v4 = vmax.f32 %v4130_v45, %v4131_v62 }
 0x409   :  { %v4158_v63 = vmax.f32 %v4156_v28, %v4157_v23  ;;  %v4146_v45 = vmax.f32 %v4144_v54, %v4145_v39  ;;  %v4165_v28 = vmax.f32 %v4163_v50, %v4164_v19 }
 0x40a   :  { %v3696_v42 = vmax.f32 %v3694_v58, %v3695_v53  ;;  %v4169_v47 = vrot.slane %v4168_v12, 4  ;;  %v2386_v29 = vpop.f32.mrf.mxu2  ;;  %v5865_v53 = vor.u32 %v6638_v52, %v5862_v33 }
 0x40b   :  { %v3035_v9 = vpop.f32.mrf.mxu3 }
 0x40c   :  { %v3697_v31 = vrot.slane %v3696_v42, 1  ;;  %v4170_v34 = vmax.f32 %v4168_v12, %v4169_v47  ;;  %v3036_v25 = vadd.f32 %v3035_v9, %v2386_v29  ;;  %v2048_v43 = vpop.f32.mrf.mxu0  ;;  %v4338_v47 = vmax.f32 %v4132_v4, 0.0 }
 0x40d   :  { %v2697_v61 = vpop.f32.mrf.mxu1  ;;  %v4159_v29 = vrot.slane %v4158_v63, 1 }
 0x40e   :  { %v3698_v14 = vmax.f32 %v3696_v42, %v3697_v31  ;;  %v2698_v8 = vadd.f32 %v2697_v61, %v2048_v43  ;;  %v4171_v49 = vrot.slane %v4170_v34, 2  ;;  %v3314_v41 = vadd.f32 %v7640_v5, %v3036_v25 }
 0x40f   :  { %v4339_v43 = vmax.f32 %v4139_v36, 0.0  ;;  %v4466_v50 = vpack.c.bf16 %v4338_v47, %v4338_v47  ;;  %v4340_v61 = vmax.f32 %v4146_v45, 0.0  ;;  %v4160_v17 = vmax.f32 %v4158_v63, %v4159_v29 }
 0x410   :  { %v4276_v56 = vmax.f32 %v3698_v14, 0.0  ;;  %v3179_v48 = vadd.f32 %v7633_v60, %v2698_v8  ;;  %v4172_v58 = vmax.f32 %v4170_v34, %v4171_v49  ;;  %v4153_v34 = vmax.f32 %v4151_v59, %v4152_v24  ;;  %v5868_v24 = vld [vmem:[#allocation2 + $0x3f0] sm:$0xf] }
 0x411   :  { %v4166_v14 = vrot.slane %v4165_v28, 1  ;;  %v4467_v16 = vpack.c.bf16 %v4339_v43, %v4339_v43  ;;  %v4468_v52 = vpack.c.bf16 %v4340_v61, %v4340_v61  ;;  %v4342_v33 = vmax.f32 %v4160_v17, 0.0 }
 0x412   :  { %v4404_v3 = vpack.c.bf16 %v4276_v56, %v4276_v56  ;;  %v3699_v37 = vmax.f32 %v3178_v2, %v3179_v48  ;;  %v2388_v1 = vpop.f32.mrf.mxu2  ;;  %v4173_v62 = vrot.slane %v4172_v58, 1  ;;  %v4341_v38 = vmax.f32 %v4153_v34, 0.0 }
 0x413   :  { %v3037_v44 = vpop.f32.mrf.mxu3  ;;  %v4742_v48 = vunpack.c.l.b16 %v4466_v50  ;;  %v4167_v39 = vmax.f32 %v4165_v28, %v4166_v14  ;;  %v4470_v47 = vpack.c.bf16 %v4342_v33, %v4342_v33 }
 0x414   :  { %v4680_v12 = vunpack.c.l.b16 %v4404_v3  ;;  %v3700_v21 = vrot.slane %v3699_v37, 4  ;;  %v3038_v35 = vadd.f32 %v3037_v44, %v2388_v1  ;;  %v2051_v42 = vpop.f32.mrf.mxu0  ;;  %v4174_v56 = vmax.f32 %v4172_v58, %v4173_v62  ;;  %v6641_v44 = vld [vmem:[#allocation2 + $0x3f4] sm:$0xf0] }
 0x415   :  { %v2700_v57 = vpop.f32.mrf.mxu1  ;;  %v4743_v3 = vunpack.c.l.b16 %v4467_v16  ;;  %v4343_v58 = vmax.f32 %v4167_v39, 0.0  ;;  %v4862_v45 = vsel %vm4758_vm1, %v4742_v48, %v7612_v10  ;;  %v5869_v62 = vor.u32 %v6641_v44, %v5868_v24 }
 0x416   :  { %v3701_v40 = vmax.f32 %v3699_v37, %v3700_v21  ;;  %v3315_v9 = vadd.f32 %v7633_v60, %v3038_v35  ;;  %v2701_v31 = vadd.f32 %v2700_v57, %v2051_v42  ;;  %v7686_v25 = vsel %vm4762_vm3, %v4680_v12, %v7670_v13  ;;  %v6640_v21 = vld [vmem:[#allocation2 + $0x3f4] sm:$0xf]  ;;  %v5870_v35 = vld [vmem:[#allocation2 + $0x3f8] sm:$0xf0] }
 0x417   :  { %2090 = vmatmul.bf16.gmra.mxu0 %v5861_v11  ;;  %4957 = vmatmul.bf16.gmra.mxu2 %v4877_v26  ;;  %v4469_v37 = vpack.c.bf16 %v4341_v38, %v4341_v38  ;;  %v4344_v1 = vmax.f32 %v4174_v56, 0.0  ;;  %v4744_v42 = vunpack.c.l.b16 %v4468_v52 }
 0x418   :  { %v3702_v54 = vrot.slane %v3701_v40, 2  ;;  %v4175_v23 = vmax.f32 %v3314_v41, %v3315_v9  ;;  %2739 = vmatmul.bf16.gmra.mxu1 %v5865_v53  ;;  %v3180_v12 = vadd.f32 %v7640_v5, %v2701_v31  ;;  %v4471_v9 = vpack.c.bf16 %v4343_v58, %v4343_v58 }
 0x419   :  { %v4745_v43 = vunpack.c.l.b16 %v4469_v37  ;;  %v4863_v31 = vsel %vm4760_vm2, %v4743_v3, %v4862_v45 }
 0x41a   :  { %v3703_v8 = vmax.f32 %v3701_v40, %v3702_v54  ;;  %v4176_v49 = vrot.slane %v4175_v23, 4  ;;  %v2391_v59 = vpop.f32.mrf.mxu2  ;;  %v5873_v54 = vor.u32 %v6640_v21, %v5870_v35  ;;  %v4864_v10 = vsel %vm4762_vm3, %v4744_v42, %v4863_v31  ;;  %v6642_v21 = vld [vmem:[#allocation2 + $0x404] sm:$0xf]  ;;  %v5878_v35 = vld [vmem:[#allocation2 + $0x408] sm:$0xf0] }
 0x41b   :  { %v3040_v2 = vpop.f32.mrf.mxu3  ;;  %v4747_v56 = vunpack.c.l.b16 %v4471_v9 }
 0x41c   :  { %v3704_v22 = vrot.slane %v3703_v8, 1  ;;  %v4177_v15 = vmax.f32 %v4175_v23, %v4176_v49  ;;  %v7688_v26 = vadd.f32 %v3040_v2, %v2391_v59  ;;  %v2053_v13 = vpop.f32.mrf.mxu0  ;;  %v4472_v23 = vpack.c.bf16 %v4344_v1, %v4344_v1 }
 0x41d   :  { %v2702_v4 = vpop.f32.mrf.mxu1  ;;  %v4746_v49 = vunpack.c.l.b16 %v4470_v47 }
 0x41e   :  { %v3705_v19 = vmax.f32 %v3703_v8, %v3704_v22  ;;  %v4178_v63 = vrot.slane %v4177_v15, 2  ;;  %v2703_v36 = vadd.f32 %v2702_v4, %v2053_v13  ;;  %v4865_v22 = vsel %vm4764_vm4, %v4745_v43, %v4864_v10 }
 0x41f   :  { %v4866_v52 = vsel %vm4766_vm5, %v4746_v49, %v4865_v22  ;;  %v5881_v43 = vor.u32 %v6642_v21, %v5878_v35 }
 0x420   :  { %v4277_v11 = vmax.f32 %v3705_v19, 0.0  ;;  %v4179_v53 = vmax.f32 %v4177_v15, %v4178_v63  ;;  %v3181_v41 = vadd.f32 %v7633_v60, %v2703_v36  ;;  %v4748_v15 = vunpack.c.l.b16 %v4472_v23 }
 0x421   :  { %v7701_v19 = vsel %vm4768_vm6, %v4747_v56, %v4866_v52  ;;  %v3316_v56 = vadd.f32 %v7640_v5, %v7688_v26 }
 0x422   :  { %v4405_v29 = vpack.c.bf16 %v4277_v11, %v4277_v11  ;;  %v4180_v28 = vrot.slane %v4179_v53, 1  ;;  %v3706_v57 = vmax.f32 %v3180_v12, %v3181_v41  ;;  %v2393_v40 = vpop.f32.mrf.mxu2  ;;  %v5876_v12 = vld [vmem:[#allocation2 + $0x400] sm:$0xf]  ;;  %v6643_v41 = vld [vmem:[#allocation2 + $0x404] sm:$0xf0] }
 0x423   :  { %v3042_v34 = vpop.f32.mrf.mxu3 }
 0x424   :  { %v4681_v50 = vunpack.c.l.b16 %v4405_v29  ;;  %v4181_v61 = vmax.f32 %v4179_v53, %v4180_v28  ;;  %v3707_v17 = vrot.slane %v3706_v57, 4  ;;  %v2056_v14 = vpop.f32.mrf.mxu0  ;;  %v5877_v28 = vor.u32 %v6643_v41, %v5876_v12 }
 0x425   :  { %v2705_v8 = vpop.f32.mrf.mxu1 }
 0x426   :  { %v4345_v59 = vmax.f32 %v4181_v61, 0.0  ;;  %v3708_v16 = vmax.f32 %v3706_v57, %v3707_v17  ;;  %v2706_v38 = vadd.f32 %v2705_v8, %v2056_v14  ;;  %v4809_v2 = vsel %vm4764_vm4, %v4681_v50, %v7686_v25 }
 0x427   :  { %2095 = vmatmul.bf16.gmra.mxu0 %v5869_v62  ;;  %v3043_v17 = vadd.f32 %v3042_v34, %v2393_v40  ;;  %v5884_v40 = vld [vmem:[#allocation2 + $0x410] sm:$0xf]  ;;  %v6645_v34 = vld [vmem:[#allocation2 + $0x414] sm:$0xf0] }
 0x428   :  { %v4473_v13 = vpack.c.bf16 %v4345_v59, %v4345_v59  ;;  %v3709_v48 = vrot.slane %v3708_v16, 2  ;;  %2744 = vmatmul.bf16.gmra.mxu1 %v5873_v54  ;;  %v3182_v11 = vadd.f32 %v7640_v5, %v2706_v38 }
 0x429   :  { %v3317_v22 = vadd.f32 %v7633_v60, %v3043_v17 }
 0x42a   :  { %v4749_v33 = vunpack.c.l.b16 %v4473_v13  ;;  %v3710_v4 = vmax.f32 %v3708_v16, %v3709_v48  ;;  %v2396_v39 = vpop.f32.mrf.mxu2 }
 0x42b   :  { %v3045_v63 = vpop.f32.mrf.mxu3 }
 0x42c   :  { %v7704_v36 = vsel %vm4756_vm0, %v4749_v33, %v4748_v15  ;;  %v3711_v3 = vrot.slane %v3710_v4, 1  ;;  %v3046_v25 = vadd.f32 %v3045_v63, %v2396_v39  ;;  %v2058_v37 = vpop.f32.mrf.mxu0  ;;  %v6644_v39 = vld [vmem:[#allocation2 + $0x414] sm:$0xf]  ;;  %v5886_v63 = vld [vmem:[#allocation2 + $0x418] sm:$0xf0] }
 0x42d   :  { %v2707_v1 = vpop.f32.mrf.mxu1 }
 0x42e   :  { %v3712_v24 = vmax.f32 %v3710_v4, %v3711_v3  ;;  %v2708_v44 = vadd.f32 %v2707_v1, %v2058_v37  ;;  %v3318_v15 = vadd.f32 %v7640_v5, %v3046_v25  ;;  %v4182_v37 = vmax.f32 %v3316_v56, %v3317_v22 }
 0x430   :  { %v4278_v58 = vmax.f32 %v3712_v24, 0.0  ;;  %v3183_v53 = vadd.f32 %v7633_v60, %v2708_v44 }
 0x432   :  { %v3713_v42 = vmax.f32 %v3182_v11, %v3183_v53  ;;  %v2398_v47 = vpop.f32.mrf.mxu2  ;;  %v4406_v45 = vpack.c.bf16 %v4278_v58, %v4278_v58  ;;  %v5885_v58 = vor.u32 %v6645_v34, %v5884_v40  ;;  %v5889_v11 = vor.u32 %v6644_v39, %v5886_v63  ;;  %v6646_v40 = vld [vmem:[#allocation2 + $0x424] sm:$0xf]  ;;  %v5894_v34 = vld [vmem:[#allocation2 + $0x428] sm:$0xf0] }
 0x433   :  { %v3047_v29 = vpop.f32.mrf.mxu3 }
 0x434   :  { %v3714_v57 = vrot.slane %v3713_v42, 4  ;;  %v2061_v9 = vpop.f32.mrf.mxu0  ;;  %v4682_v62 = vunpack.c.l.b16 %v4406_v45  ;;  %v3048_v14 = vadd.f32 %v3047_v29, %v2398_v47 }
 0x435   :  { %v2710_v54 = vpop.f32.mrf.mxu1 }
 0x436   :  { %v3715_v31 = vmax.f32 %v3713_v42, %v3714_v57  ;;  %v2711_v23 = vadd.f32 %v2710_v54, %v2061_v9  ;;  %v4810_v50 = vsel %vm4766_vm5, %v4682_v62, %v4809_v2  ;;  %v3319_v13 = vadd.f32 %v7633_v60, %v3048_v14 }
 0x437   :  { %2100 = vmatmul.bf16.gmra.mxu0 %v5877_v28  ;;  %v4183_v42 = vrot.slane %v4182_v37, 4 }
 0x438   :  { %v3716_v61 = vrot.slane %v3715_v31, 2  ;;  %2749 = vmatmul.bf16.gmra.mxu1 %v5881_v43  ;;  %v3184_v33 = vadd.f32 %v7640_v5, %v2711_v23  ;;  %v4189_v26 = vmax.f32 %v3318_v15, %v3319_v13  ;;  %v5892_v13 = vld [vmem:[#allocation2 + $0x420] sm:$0xf] }
 0x439   :  { %v4184_v62 = vmax.f32 %v4182_v37, %v4183_v42 }
 0x43a   :  { %v3717_v8 = vmax.f32 %v3715_v31, %v3716_v61  ;;  %v2401_v49 = vpop.f32.mrf.mxu2  ;;  %v4190_v47 = vrot.slane %v4189_v26, 4 }
 0x43b   :  { %v3050_v10 = vpop.f32.mrf.mxu3 }
 0x43c   :  { %v3718_v59 = vrot.slane %v3717_v8, 1  ;;  %v3051_v16 = vadd.f32 %v3050_v10, %v2401_v49  ;;  %v2063_v38 = vpop.f32.mrf.mxu0  ;;  %v4191_v54 = vmax.f32 %v4189_v26, %v4190_v47  ;;  %v4185_v10 = vrot.slane %v4184_v62, 2 }
 0x43d   :  { %v2712_v2 = vpop.f32.mrf.mxu1 }
 0x43e   :  { %v2713_v48 = vadd.f32 %v2712_v2, %v2063_v38  ;;  %v3719_v52 = vmax.f32 %v3717_v8, %v3718_v59  ;;  %v3320_v53 = vadd.f32 %v7640_v5, %v3051_v16  ;;  %v4192_v59 = vrot.slane %v4191_v54, 2  ;;  %v6647_v2 = vld [vmem:[#allocation2 + $0x424] sm:$0xf0] }
 0x43f   :  { %v5893_v37 = vor.u32 %v6647_v2, %v5892_v13  ;;  %v6649_v13 = vld [vmem:[#allocation2 + $0x434] sm:$0xf0] }
 0x440   :  { %v3185_v4 = vadd.f32 %v7633_v60, %v2713_v48  ;;  %v4279_v3 = vmax.f32 %v3719_v52, 0.0  ;;  %v4186_v48 = vmax.f32 %v4184_v62, %v4185_v10  ;;  %v4193_v52 = vmax.f32 %v4191_v54, %v4192_v59 }
 0x442   :  { %v3720_v1 = vmax.f32 %v3184_v33, %v3185_v4  ;;  %v2403_v24 = vpop.f32.mrf.mxu2  ;;  %v4407_v44 = vpack.c.bf16 %v4279_v3, %v4279_v3 }
 0x443   :  { %v3052_v25 = vpop.f32.mrf.mxu3 }
 0x444   :  { %v3721_v12 = vrot.slane %v3720_v1, 4  ;;  %v3053_v41 = vadd.f32 %v3052_v25, %v2403_v24  ;;  %v2066_v21 = vpop.f32.mrf.mxu0  ;;  %v4683_v35 = vunpack.c.l.b16 %v4407_v44  ;;  %v5897_v25 = vor.u32 %v6646_v40, %v5894_v34  ;;  %v6648_v34 = vld [vmem:[#allocation2 + $0x434] sm:$0xf] }
 0x445   :  { %v2715_v45 = vpop.f32.mrf.mxu1 }
 0x446   :  { %v3321_v29 = vadd.f32 %v7633_v60, %v3053_v41  ;;  %v2716_v28 = vadd.f32 %v2715_v45, %v2066_v21  ;;  %v3722_v57 = vmax.f32 %v3720_v1, %v3721_v12  ;;  %v7719_v9 = vsel %vm4768_vm6, %v4683_v35, %v4810_v50 }
 0x447   :  { %2105 = vmatmul.bf16.gmra.mxu0 %v5885_v58  ;;  %v4187_v58 = vrot.slane %v4186_v48, 1 }
 0x448   :  { %v4196_v43 = vmax.f32 %v3320_v53, %v3321_v29  ;;  %2754 = vmatmul.bf16.gmra.mxu1 %v5889_v11  ;;  %v3723_v61 = vrot.slane %v3722_v57, 2  ;;  %v3186_v50 = vadd.f32 %v7640_v5, %v2716_v28  ;;  %v4194_v11 = vrot.slane %v4193_v52, 1 }
 0x449   :  { %v4188_v29 = vmax.f32 %v4186_v48, %v4187_v58 }
 0x44a   :  { %v4197_v31 = vrot.slane %v4196_v43, 4  ;;  %v2406_v23 = vpop.f32.mrf.mxu2  ;;  %v3724_v56 = vmax.f32 %v3722_v57, %v3723_v61  ;;  %v4195_v28 = vmax.f32 %v4193_v52, %v4194_v11 }
 0x44b   :  { %v3055_v17 = vpop.f32.mrf.mxu3 }
 0x44c   :  { %v4198_v14 = vmax.f32 %v4196_v43, %v4197_v31  ;;  %v3056_v8 = vadd.f32 %v3055_v17, %v2406_v23  ;;  %v2068_v49 = vpop.f32.mrf.mxu0  ;;  %v3725_v39 = vrot.slane %v3724_v56, 1 }
 0x44d   :  { %v2717_v16 = vpop.f32.mrf.mxu1 }
 0x44e   :  { %v2718_v38 = vadd.f32 %v2717_v16, %v2068_v49  ;;  %v4199_v22 = vrot.slane %v4198_v14, 2  ;;  %v3322_v26 = vadd.f32 %v7640_v5, %v3056_v8  ;;  %v3726_v35 = vmax.f32 %v3724_v56, %v3725_v39 }
 0x44f   :  { %v4346_v8 = vmax.f32 %v4188_v29, 0.0  ;;  %v4347_v49 = vmax.f32 %v4195_v28, 0.0 }
 0x450   :  { %v3187_v15 = vadd.f32 %v7633_v60, %v2718_v38  ;;  %v4200_v63 = vmax.f32 %v4198_v14, %v4199_v22  ;;  %v4280_v54 = vmax.f32 %v3726_v35, 0.0 }
 0x451   :  { %v4475_v39 = vpack.c.bf16 %v4347_v49, %v4347_v49 }
 0x452   :  { %v3727_v33 = vmax.f32 %v3186_v50, %v3187_v15  ;;  %v2408_v4 = vpop.f32.mrf.mxu2  ;;  %v4201_v42 = vrot.slane %v4200_v63, 1  ;;  %v4408_v56 = vpack.c.bf16 %v4280_v54, %v4280_v54  ;;  %v5900_v15 = vld [vmem:[#allocation2 + $0x430] sm:$0xf] }
 0x453   :  { %v3057_v3 = vpop.f32.mrf.mxu3 }
 0x454   :  { %v3728_v1 = vrot.slane %v3727_v33, 4  ;;  %v3058_v24 = vadd.f32 %v3057_v3, %v2408_v4  ;;  %v2071_v44 = vpop.f32.mrf.mxu0  ;;  %v4202_v31 = vmax.f32 %v4200_v63, %v4201_v42  ;;  %v4474_v4 = vpack.c.bf16 %v4346_v8, %v4346_v8 }
 0x455   :  { %v2720_v53 = vpop.f32.mrf.mxu1 }
 0x456   :  { %v3729_v12 = vmax.f32 %v3727_v33, %v3728_v1  ;;  %v3323_v41 = vadd.f32 %v7633_v60, %v3058_v24  ;;  %v2721_v21 = vadd.f32 %v2720_v53, %v2071_v44  ;;  %v4348_v22 = vmax.f32 %v4202_v31, 0.0  ;;  %v5902_v33 = vld [vmem:[#allocation2 + $0x438] sm:$0xf0]  ;;  %v6794_v31 = vld [vmem:[#allocation10] sm:$0xff] }
 0x457   :  { %2110 = vmatmul.bf16.gmra.mxu0 %v5893_v37  ;;  %v5901_v1 = vor.u32 %v6649_v13, %v5900_v15  ;;  %v4684_v24 = vunpack.c.l.b16 %v4408_v56  ;;  %v5905_v11 = vor.u32 %v6648_v34, %v5902_v33  ;;  %v6795_v53 = vld [vmem:[#allocation10 + $0x8] sm:$0xff] }
 0x458   :  { %v3730_v47 = vrot.slane %v3729_v12, 2  ;;  %v4203_v45 = vmax.f32 %v3322_v26, %v3323_v41  ;;  %2759 = vmatmul.bf16.gmra.mxu1 %v5897_v25  ;;  %v3188_v52 = vadd.f32 %v7640_v5, %v2721_v21  ;;  %v4476_v44 = vpack.c.bf16 %v4348_v22, %v4348_v22  ;;  %5086 = vmatpush.bf16.msrb.mxu3 %v6795_v53 }
 0x45a   :  { %v3731_v57 = vmax.f32 %v3729_v12, %v3730_v47  ;;  %v4204_v43 = vrot.slane %v4203_v45, 4  ;;  %v2411_v62 = vpop.f32.mrf.mxu2  ;;  %v4750_v47 = vunpack.c.l.b16 %v4474_v4 }
 0x45b   :  { %v3060_v23 = vpop.f32.mrf.mxu3 }
 0x45c   :  { %v3732_v61 = vrot.slane %v3731_v57, 1  ;;  %v4205_v17 = vmax.f32 %v4203_v45, %v4204_v43  ;;  %v2073_v14 = vpop.f32.mrf.mxu0  ;;  %v3061_v50 = vadd.f32 %v3060_v23, %v2411_v62  ;;  %v4751_v62 = vunpack.c.l.b16 %v4475_v39  ;;  %5087 = vmatpush.bf16.msrb.mxu3 %v6794_v31 }
 0x45d   :  { %v2722_v10 = vpop.f32.mrf.mxu1  ;;  %v4752_v23 = vunpack.c.l.b16 %v4476_v44 }
 0x45e   :  { %v3733_v59 = vmax.f32 %v3731_v57, %v3732_v61  ;;  %v4206_v16 = vrot.slane %v4205_v17, 2  ;;  %v2723_v38 = vadd.f32 %v2722_v10, %v2073_v14  ;;  %v3324_v25 = vadd.f32 %v7640_v5, %v3061_v50 }
 0x460   :  { %v4281_v2 = vmax.f32 %v3733_v59, 0.0  ;;  %v4207_v48 = vmax.f32 %v4205_v17, %v4206_v16  ;;  %v3189_v40 = vadd.f32 %v7633_v60, %v2723_v38  ;;  %v4869_v16 = vsel %vm4758_vm1, %v4750_v47, %v7704_v36 }
 0x461   :  { %v4870_v56 = vsel %vm4760_vm2, %v4751_v62, %v4869_v16 }
 0x462   :  { %v4409_v63 = vpack.c.bf16 %v4281_v2, %v4281_v2  ;;  %v4208_v3 = vrot.slane %v4207_v48, 1  ;;  %v3734_v37 = vmax.f32 %v3188_v52, %v3189_v40  ;;  %v2413_v26 = vpop.f32.mrf.mxu2  ;;  %v4871_v13 = vsel %vm4762_vm3, %v4752_v23, %v4870_v56 }
 0x463   :  { %v3062_v58 = vpop.f32.mrf.mxu3 }
 0x464   :  { %v4685_v12 = vunpack.c.l.b16 %v4409_v63  ;;  %v4209_v41 = vmax.f32 %v4207_v48, %v4208_v3  ;;  %v3735_v21 = vrot.slane %v3734_v37, 4  ;;  %v3063_v35 = vadd.f32 %v3062_v58, %v2413_v26  ;;  %v2076_v42 = vpop.f32.mrf.mxu0 }
 0x465   :  { %v2725_v45 = vpop.f32.mrf.mxu1 }
 0x466   :  { %v4812_v29 = vsel %vm4756_vm0, %v4685_v12, %v4684_v24  ;;  %v4349_v28 = vmax.f32 %v4209_v41, 0.0  ;;  %v3736_v57 = vmax.f32 %v3734_v37, %v3735_v21  ;;  %v3325_v43 = vadd.f32 %v7633_v60, %v3063_v35 }
 0x467   :  { %v2726_v54 = vadd.f32 %v2725_v45, %v2076_v42  ;;  %2115 = vmatmul.bf16.gmra.mxu0 %v5901_v1  ;;  %v7738_v42 = vld [vmem:[#allocation7 + $0x8] sm:$0xff] }
 0x468   :  { %v4477_v61 = vpack.c.bf16 %v4349_v28, %v4349_v28  ;;  %v3737_v17 = vrot.slane %v3736_v57, 2  ;;  %v4210_v14 = vmax.f32 %v3324_v25, %v3325_v43  ;;  %2764 = vmatmul.bf16.gmra.mxu1 %v5905_v11 }
 0x469   :  { %v3190_v63 = vadd.f32 %v7640_v5, %v2726_v54 }
 0x46a   :  { %v4753_v8 = vunpack.c.l.b16 %v4477_v61  ;;  %v3738_v49 = vmax.f32 %v3736_v57, %v3737_v17  ;;  %v4211_v10 = vrot.slane %v4210_v14, 4  ;;  %v2416_v59 = vpop.f32.mrf.mxu2 }
 0x46b   :  { %v3065_v38 = vpop.f32.mrf.mxu3 }
 0x46c   :  { %v3739_v22 = vrot.slane %v3738_v49, 1  ;;  %v4212_v50 = vmax.f32 %v4210_v14, %v4211_v10  ;;  %v2078_v15 = vpop.f32.mrf.mxu0  ;;  %v4872_v48 = vsel %vm4764_vm4, %v4753_v8, %v4871_v13  ;;  %v3066_v33 = vadd.f32 %v3065_v38, %v2416_v59  ;;  %v7746_v14 = vld [vmem:[%s7997_s4] ss:$0 sm:$0xff] }
 0x46d   :  { %v2727_v2 = vpop.f32.mrf.mxu1 }
 0x46e   :  { %v3740_v52 = vmax.f32 %v3738_v49, %v3739_v22  ;;  %v4213_v40 = vrot.slane %v4212_v50, 2  ;;  %v2728_v34 = vadd.f32 %v2727_v2, %v2078_v15  ;;  %v3326_v24 = vadd.f32 %v7640_v5, %v3066_v33 }
 0x470   :  { %v4282_v4 = vmax.f32 %v3740_v52, 0.0  ;;  %v4214_v39 = vmax.f32 %v4212_v50, %v4213_v40  ;;  %v3191_v36 = vadd.f32 %v7633_v60, %v2728_v34 }
 0x472   :  { %v4410_v3 = vpack.c.bf16 %v4282_v4, %v4282_v4  ;;  %v4215_v37 = vrot.slane %v4214_v39, 1  ;;  %v3741_v26 = vmax.f32 %v3190_v63, %v3191_v36  ;;  %v2418_v1 = vpop.f32.mrf.mxu2 }
 0x473   :  { %v3067_v44 = vpop.f32.mrf.mxu3 }
 0x474   :  { %v4686_v25 = vunpack.c.l.b16 %v4410_v3  ;;  %v4216_v58 = vmax.f32 %v4214_v39, %v4215_v37  ;;  %v3742_v11 = vrot.slane %v3741_v26, 4  ;;  %v3068_v53 = vadd.f32 %v3067_v44, %v2418_v1  ;;  %v2081_v12 = vpop.f32.mrf.mxu0 }
 0x475   :  { %v2730_v41 = vpop.f32.mrf.mxu1 }
 0x476   :  { %v4350_v21 = vmax.f32 %v4216_v58, 0.0  ;;  %v3743_v35 = vmax.f32 %v3741_v26, %v3742_v11  ;;  %v3327_v47 = vadd.f32 %v7738_v42, %v3068_v53  ;;  %v4813_v60 = vsel %vm4758_vm1, %v4686_v25, %v4812_v29 }
 0x478   :  { %v4478_v45 = vpack.c.bf16 %v4350_v21, %v4350_v21  ;;  %v3744_v28 = vrot.slane %v3743_v35, 2  ;;  %v4217_v57 = vmax.f32 %v3326_v24, %v3327_v47  ;;  %v2731_v21 = vadd.f32 %v2730_v41, %v2081_v12 }
 0x47a   :  { %v3745_v43 = vmax.f32 %v3743_v35, %v3744_v28  ;;  %v4218_v5 = vrot.slane %v4217_v57, 4  ;;  %v4948_v62 = vpop.f32.mrf.mxu2  ;;  %v4754_v54 = vunpack.c.l.b16 %v4478_v45 }
 0x47b   :  { %v4949_v16 = vadd.f32 %v7746_v14, %v4948_v62 }
 0x47c   :  { %v3746_v31 = vrot.slane %v3745_v43, 1  ;;  %v4219_v23 = vmax.f32 %v4217_v57, %v4218_v5  ;;  %v2083_v61 = vpop.f32.mrf.mxu0  ;;  %v4873_v17 = vsel %vm4766_vm5, %v4754_v54, %v4872_v48  ;;  %v7762_v5 = vld [vmem:[#allocation7] sm:$0xff] }
 0x47d   :  { %v2732_v8 = vpop.f32.mrf.mxu1  ;;  %v4988_v48 = vmax.f32 %v4949_v16, 0.0  ;;  %v3192_v62 = vadd.f32 %v7762_v5, %v2731_v21 }
 0x47e   :  { %v3747_v49 = vmax.f32 %v3745_v43, %v3746_v31  ;;  %v4220_v29 = vrot.slane %v4219_v23, 2  ;;  %v2733_v25 = vadd.f32 %v2732_v8, %v2083_v61 }
 0x480   :  { %v4283_v10 = vmax.f32 %v3747_v49, 0.0  ;;  %v4221_v59 = vmax.f32 %v4219_v23, %v4220_v29  ;;  %v3193_v28 = vadd.f32 %v7738_v42, %v2733_v25 }
 0x482   :  { %v4411_v38 = vpack.c.bf16 %v4283_v10, %v4283_v10  ;;  %v4222_v56 = vrot.slane %v4221_v59, 1  ;;  %v4950_v22 = vpop.f32.mrf.mxu2  ;;  %v3748_v23 = vmax.f32 %v3192_v62, %v3193_v28 }
 0x483   :  { %v4951_v50 = vadd.f32 %v7746_v14, %v4950_v22 }
 0x484   :  { %v4687_v15 = vunpack.c.l.b16 %v4411_v38  ;;  %v4223_v13 = vmax.f32 %v4221_v59, %v4222_v56  ;;  %v2086_v2 = vpop.f32.mrf.mxu0  ;;  %v3749_v49 = vrot.slane %v3748_v23, 4 }
 0x485   :  { %v4989_v52 = vmax.f32 %v4951_v50, 0.0  ;;  %v2735_v40 = vpop.f32.mrf.mxu1 }
 0x486   :  { %v7751_v34 = vsel %vm4760_vm2, %v4687_v15, %v4813_v60  ;;  %v4351_v33 = vmax.f32 %v4223_v13, 0.0  ;;  %v2736_v45 = vadd.f32 %v2735_v40, %v2086_v2  ;;  %v3750_v22 = vmax.f32 %v3748_v23, %v3749_v49 }
 0x487   :  { %v5004_v4 = vpack.c.bf16 %v4989_v52, %v4988_v48 }
 0x488   :  { %v4479_v39 = vpack.c.bf16 %v4351_v33, %v4351_v33  ;;  %v3194_v54 = vadd.f32 %v7762_v5, %v2736_v45 }
 0x489   :  { %5088 = vmatmul.bf16.vlgmr.msrb.gmra.mxu3 %v5004_v4  ;;  %v3751_v4 = vrot.slane %v3750_v22, 2 }
 0x48a   :  { %v4953_v63 = vpop.f32.mrf.mxu2  ;;  %v4755_v36 = vunpack.c.l.b16 %v4479_v39 }
 0x48b   :  { %v4954_v24 = vadd.f32 %v7746_v14, %v4953_v63 }
 0x48c   :  { %v2088_v3 = vpop.f32.mrf.mxu0  ;;  %v7754_v37 = vsel %vm4768_vm6, %v4755_v36, %v4873_v17 }
 0x48d   :  { %v2737_v26 = vpop.f32.mrf.mxu1  ;;  %v4882_v1 = vpack.c.b16 %v7754_v37, %v7701_v19  ;;  %v4990_v35 = vmax.f32 %v4954_v24, 0.0 }
 0x48e   :  { %v2738_v11 = vadd.f32 %v2737_v26, %v2088_v3  ;;  %v3752_v3 = vmax.f32 %v3750_v22, %v3751_v4 }
 0x490   :  { %v3195_v43 = vadd.f32 %v7738_v42, %v2738_v11 }
 0x492   :  { %v4955_v44 = vpop.f32.mrf.mxu2  ;;  %v3755_v61 = vmax.f32 %v3194_v54, %v3195_v43 }
 0x493   :  { %v4956_v58 = vadd.f32 %v7746_v14, %v4955_v44 }
 0x494   :  { %v2091_v53 = vpop.f32.mrf.mxu0  ;;  %v3756_v29 = vrot.slane %v3755_v61, 4 }
 0x495   :  { %v4991_v47 = vmax.f32 %v4956_v58, 0.0  ;;  %v2740_v60 = vpop.f32.mrf.mxu1 }
 0x496   :  { %v2741_v12 = vadd.f32 %v2740_v60, %v2091_v53  ;;  %v3757_v15 = vmax.f32 %v3755_v61, %v3756_v29  ;;  %v3753_v53 = vrot.slane %v3752_v3, 1 }
 0x497   :  { %v5005_v57 = vpack.c.bf16 %v4991_v47, %v4990_v35 }
 0x498   :  { %v3196_v10 = vadd.f32 %v7762_v5, %v2741_v12  ;;  %v3758_v63 = vrot.slane %v3757_v15, 2  ;;  %v3754_v28 = vmax.f32 %v3752_v3, %v3753_v53 }
 0x499   :  { %5093 = vmatmul.bf16.gmra.mxu3 %v5005_v57 }
 0x49a   :  { %v4958_v31 = vpop.f32.mrf.mxu2  ;;  %v3759_v26 = vmax.f32 %v3757_v15, %v3758_v63  ;;  %v4284_v61 = vmax.f32 %v3754_v28, 0.0 }
 0x49b   :  { %v4959_v16 = vadd.f32 %v7746_v14, %v4958_v31 }
 0x49c   :  { %v2093_v41 = vpop.f32.mrf.mxu0  ;;  %v3760_v21 = vrot.slane %v3759_v26, 1  ;;  %v4412_v49 = vpack.c.bf16 %v4284_v61, %v4284_v61 }
 0x49d   :  { %v2742_v17 = vpop.f32.mrf.mxu1  ;;  %v4992_v48 = vmax.f32 %v4959_v16, 0.0 }
 0x49e   :  { %v2743_v8 = vadd.f32 %v2742_v17, %v2093_v41  ;;  %v3761_v57 = vmax.f32 %v3759_v26, %v3760_v21  ;;  %v4688_v22 = vunpack.c.l.b16 %v4412_v49 }
 0x4a0   :  { %v3197_v59 = vadd.f32 %v7738_v42, %v2743_v8  ;;  %v4285_v12 = vmax.f32 %v3761_v57, 0.0 }
 0x4a2   :  { %v3762_v38 = vmax.f32 %v3196_v10, %v3197_v59  ;;  %v4960_v56 = vpop.f32.mrf.mxu2  ;;  %v4413_v29 = vpack.c.bf16 %v4285_v12, %v4285_v12 }
 0x4a3   :  { %v4961_v50 = vadd.f32 %v7746_v14, %v4960_v56 }
 0x4a4   :  { %v3763_v13 = vrot.slane %v3762_v38, 4  ;;  %v2096_v2 = vpop.f32.mrf.mxu0 }
 0x4a5   :  { %v4993_v52 = vmax.f32 %v4961_v50, 0.0  ;;  %v2745_v40 = vpop.f32.mrf.mxu1  ;;  %v4689_v50 = vunpack.c.l.b16 %v4413_v29  ;;  %v3812_v29 = vrot.slane %v7158_v7, 4 }
 0x4a6   :  { %v3764_v33 = vmax.f32 %v3762_v38, %v3763_v13  ;;  %v2746_v24 = vadd.f32 %v2745_v40, %v2096_v2 }
 0x4a7   :  { %v5006_v39 = vpack.c.bf16 %v4993_v52, %v4992_v48  ;;  %v4815_v48 = vsel %vm4762_vm3, %v4688_v22, %v7751_v34 }
 0x4a8   :  { %v3765_v36 = vrot.slane %v3764_v33, 2  ;;  %v3198_v35 = vadd.f32 %v7762_v5, %v2746_v24 }
 0x4a9   :  { %5098 = vmatmul.bf16.gmra.mxu3 %v5006_v39 }
 0x4aa   :  { %v3766_v25 = vmax.f32 %v3764_v33, %v3765_v36  ;;  %v4816_v33 = vsel %vm4764_vm4, %v4689_v50, %v4815_v48 }
 0x4ac   :  { %v2098_v44 = vpop.f32.mrf.mxu0  ;;  %v3767_v60 = vrot.slane %v3766_v25, 1 }
 0x4ad   :  { %v2747_v58 = vpop.f32.mrf.mxu1 }
 0x4ae   :  { %v2748_v11 = vadd.f32 %v2747_v58, %v2098_v44  ;;  %v3768_v54 = vmax.f32 %v3766_v25, %v3767_v60 }
 0x4b0   :  { %v3199_v47 = vadd.f32 %v7738_v42, %v2748_v11  ;;  %v4286_v17 = vmax.f32 %v3768_v54, 0.0 }
 0x4b2   :  { %v3769_v45 = vmax.f32 %v3198_v35, %v3199_v47  ;;  %v4414_v16 = vpack.c.bf16 %v4286_v17, %v4286_v17 }
 0x4b4   :  { %v3770_v43 = vrot.slane %v3769_v45, 4  ;;  %v2101_v62 = vpop.f32.mrf.mxu0  ;;  %v4690_v13 = vunpack.c.l.b16 %v4414_v16  ;;  %v3819_v16 = vrot.slane %v7165_v51, 4 }
 0x4b5   :  { %v2750_v31 = vpop.f32.mrf.mxu1 }
 0x4b6   :  { %v3771_v23 = vmax.f32 %v3769_v45, %v3770_v43  ;;  %v4817_v39 = vsel %vm4766_vm5, %v4690_v13, %v4816_v33  ;;  %v2751_v34 = vadd.f32 %v2750_v31, %v2101_v62 }
 0x4b8   :  { %v3772_v41 = vrot.slane %v3771_v23, 2  ;;  %v3200_v47 = vadd.f32 %v7762_v5, %v2751_v34 }
 0x4ba   :  { %v3773_v8 = vmax.f32 %v3771_v23, %v3772_v41 }
 0x4bc   :  { %v3774_v10 = vrot.slane %v3773_v8, 1  ;;  %v2103_v59 = vpop.f32.mrf.mxu0 }
 0x4bd   :  { %v2752_v38 = vpop.f32.mrf.mxu1 }
 0x4be   :  { %v3775_v56 = vmax.f32 %v3773_v8, %v3774_v10  ;;  %v2753_v58 = vadd.f32 %v2752_v38, %v2103_v59  ;;  %v3805_v8 = vrot.slane %v7152_v32, 4  ;;  %v3826_v38 = vrot.slane %v7172_v30, 4 }
 0x4c0   :  { %v4287_v15 = vmax.f32 %v3775_v56, 0.0  ;;  %v3201_v21 = vadd.f32 %v7738_v42, %v2753_v58  ;;  %v3806_v22 = vmax.f32 %v7152_v32, %v3805_v8  ;;  %v3827_v48 = vmax.f32 %v7172_v30, %v3826_v38 }
 0x4c2   :  { %v4415_v2 = vpack.c.bf16 %v4287_v15, %v4287_v15  ;;  %v3776_v57 = vmax.f32 %v3200_v47, %v3201_v21  ;;  %v3813_v15 = vmax.f32 %v7158_v7, %v3812_v29 }
 0x4c4   :  { %v2106_v52 = vpop.f32.mrf.mxu0  ;;  %v4691_v40 = vunpack.c.l.b16 %v4415_v2  ;;  %v3777_v62 = vrot.slane %v3776_v57, 4  ;;  %v3820_v2 = vmax.f32 %v7165_v51, %v3819_v16 }
 0x4c5   :  { %v2755_v4 = vpop.f32.mrf.mxu1 }
 0x4c6   :  { %v4818_v63 = vsel %vm4768_vm6, %v4691_v40, %v4817_v39  ;;  %v2756_v11 = vadd.f32 %v2755_v4, %v2106_v52  ;;  %v3778_v10 = vmax.f32 %v3776_v57, %v3777_v62  ;;  %v3807_v4 = vrot.slane %v3806_v22, 2 }
 0x4c7   :  { %v4878_v36 = vpack.c.b16 %v4818_v63, %v7719_v9 }
 0x4c8   :  { %v3202_v35 = vadd.f32 %v7762_v5, %v2756_v11  ;;  %v3779_v13 = vrot.slane %v3778_v10, 2  ;;  %v3808_v58 = vmax.f32 %v3806_v22, %v3807_v4 }
 0x4c9   :  { %4962 = vmatmul.bf16.gmra.mxu2 %v4878_v36  ;;  %v3814_v36 = vrot.slane %v3813_v15, 2 }
 0x4cb   :  { %v3815_v11 = vmax.f32 %v3813_v15, %v3814_v36 }
 0x4cc   :  { %v2108_v3 = vpop.f32.mrf.mxu0 }
 0x4cd   :  { %v2757_v26 = vpop.f32.mrf.mxu1 }
 0x4ce   :  { %v2758_v24 = vadd.f32 %v2757_v26, %v2108_v3  ;;  %v3780_v3 = vmax.f32 %v3778_v10, %v3779_v13 }
 0x4d0   :  { %v3203_v53 = vadd.f32 %v7738_v42, %v2758_v24  ;;  %v3821_v24 = vrot.slane %v3820_v2, 2  ;;  %v3781_v30 = vrot.slane %v3780_v3, 1 }
 0x4d2   :  { %v3783_v60 = vmax.f32 %v3202_v35, %v3203_v53  ;;  %v3822_v53 = vmax.f32 %v3820_v2, %v3821_v24 }
 0x4d4   :  { %v2111_v44 = vpop.f32.mrf.mxu0  ;;  %v3784_v54 = vrot.slane %v3783_v60, 4 }
 0x4d5   :  { %v2760_v25 = vpop.f32.mrf.mxu1 }
 0x4d6   :  { %v2761_v45 = vadd.f32 %v2760_v25, %v2111_v44  ;;  %v3785_v12 = vmax.f32 %v3783_v60, %v3784_v54  ;;  %v3828_v44 = vrot.slane %v3827_v48, 2  ;;  %v3809_v60 = vrot.slane %v3808_v58, 1 }
 0x4d8   :  { %v3204_v23 = vadd.f32 %v7762_v5, %v2761_v45  ;;  %v3786_v56 = vrot.slane %v3785_v12, 2  ;;  %v3829_v21 = vmax.f32 %v3827_v48, %v3828_v44 }
 0x4da   :  { %v3787_v52 = vmax.f32 %v3785_v12, %v3786_v56  ;;  %v3830_v54 = vrot.slane %v3829_v21, 1 }
 0x4dc   :  { %v2113_v9 = vpop.f32.mrf.mxu0  ;;  %v3788_v32 = vrot.slane %v3787_v52, 1 }
 0x4dd   :  { %v2762_v28 = vpop.f32.mrf.mxu1 }
 0x4de   :  { %v2763_v43 = vadd.f32 %v2762_v28, %v2113_v9  ;;  %v3789_v35 = vmax.f32 %v3787_v52, %v3788_v32  ;;  %v3816_v9 = vrot.slane %v3815_v11, 1  ;;  %v3782_v28 = vmax.f32 %v3780_v3, %v3781_v30 }
 0x4e0   :  { %v3205_v61 = vadd.f32 %v7738_v42, %v2763_v43  ;;  %v3823_v43 = vrot.slane %v3822_v53, 1  ;;  %v3817_v62 = vmax.f32 %v3815_v11, %v3816_v9 }
 0x4e2   :  { %v3790_v31 = vmax.f32 %v3204_v23, %v3205_v61  ;;  %v4289_v23 = vmax.f32 %v3789_v35, 0.0  ;;  %v3810_v61 = vmax.f32 %v3808_v58, %v3809_v60 }
 0x4e4   :  { %v3791_v41 = vrot.slane %v3790_v31, 4  ;;  %v2116_v17 = vpop.f32.mrf.mxu0  ;;  %v4292_v29 = vmax.f32 %v3810_v61, 0.0 }
 0x4e5   :  { %v2765_v49 = vpop.f32.mrf.mxu1 }
 0x4e6   :  { %v3792_v59 = vmax.f32 %v3790_v31, %v3791_v41  ;;  %v2766_v40 = vadd.f32 %v2765_v49, %v2116_v17  ;;  %v4288_v31 = vmax.f32 %v3782_v28, 0.0  ;;  %v3824_v41 = vmax.f32 %v3822_v53, %v3823_v43 }
 0x4e7   :  { %v4417_v17 = vpack.c.bf16 %v4289_v23, %v4289_v23  ;;  %v3831_v49 = vmax.f32 %v3829_v21, %v3830_v54  ;;  %v4420_v13 = vpack.c.bf16 %v4292_v29, %v4292_v29  ;;  %v7811_v21 = vld [vmem:[%s8000_s7] ss:$0 sm:$0xff] }
 0x4e8   :  { %v3793_v50 = vrot.slane %v3792_v59, 2  ;;  %v3206_v25 = vadd.f32 %v7762_v5, %v2766_v40  ;;  %v4416_v16 = vpack.c.bf16 %v4288_v31, %v4288_v31  ;;  %v4294_v56 = vmax.f32 %v3824_v41, 0.0 }
 0x4e9   :  { %v4693_v22 = vunpack.c.l.b16 %v4417_v17  ;;  %v4295_v15 = vmax.f32 %v3831_v49, 0.0  ;;  %v4696_v36 = vunpack.c.l.b16 %v4420_v13 }
 0x4ea   :  { %v3794_v39 = vmax.f32 %v3792_v59, %v3793_v50  ;;  %v4293_v59 = vmax.f32 %v3817_v62, 0.0  ;;  %v4692_v52 = vunpack.c.l.b16 %v4416_v16 }
 0x4ec   :  { %v2118_v33 = vpop.f32.mrf.mxu0  ;;  %v3795_v51 = vrot.slane %v3794_v39, 1  ;;  %v4421_v48 = vpack.c.bf16 %v4293_v59, %v4293_v59  ;;  %v4819_v4 = vsel %vm4756_vm0, %v4693_v22, %v4692_v52 }
 0x4ed   :  { %v2767_v63 = vpop.f32.mrf.mxu1 }
 0x4ee   :  { %v2768_v26 = vadd.f32 %v2767_v63, %v2118_v33  ;;  %v3796_v45 = vmax.f32 %v3794_v39, %v3795_v51  ;;  %v4422_v33 = vpack.c.bf16 %v4294_v56, %v4294_v56  ;;  %v4423_v63 = vpack.c.bf16 %v4295_v15, %v4295_v15  ;;  %v7803_v51 = vld [vmem:[%s7999_s6] ss:$0 sm:$0xff]  ;;  %s7068_s6 = smov [#allocation11]  }
 0x4ef   :  { %s5345_s7 = sshll.u32 %s7068_s6, 4  ;;  %s5346_s7 = int_to_ptr.vmem [resolvable:$true] %s5345_s7 }
 0x4f0   :  { %v3207_v7 = vadd.f32 %v7738_v42, %v2768_v26  ;;  %v4290_v42 = vmax.f32 %v3796_v45, 0.0  ;;  %v4697_v26 = vunpack.c.l.b16 %v4421_v48  ;;  %v4698_v44 = vunpack.c.l.b16 %v4422_v33 }
 0x4f2   :  { %v3797_v34 = vmax.f32 %v3206_v25, %v3207_v7  ;;  %v4418_v10 = vpack.c.bf16 %v4290_v42, %v4290_v42  ;;  %v4699_v25 = vunpack.c.l.b16 %v4423_v63 }
 0x4f4   :  { %v3798_v47 = vrot.slane %v3797_v34, 4  ;;  %v4694_v2 = vunpack.c.l.b16 %v4418_v10 }
 0x4f6   :  { %v3799_v57 = vmax.f32 %v3797_v34, %v3798_v47  ;;  %v4820_v3 = vsel %vm4758_vm1, %v4694_v2, %v4819_v4 }
 0x4f8   :  { %v3800_v5 = vrot.slane %v3799_v57, 2 }
 0x4fa   :  { %v3801_v12 = vmax.f32 %v3799_v57, %v3800_v5 }
 0x4fc   :  { %v3802_v8 = vrot.slane %v3801_v12, 1 }
 0x4fe   :  { %v3803_v38 = vmax.f32 %v3801_v12, %v3802_v8 }
 0x500   :  { %v4291_v50 = vmax.f32 %v3803_v38, 0.0 }
 0x502   :  { %v4419_v40 = vpack.c.bf16 %v4291_v50, %v4291_v50 }
 0x504   :  { %v4695_v39 = vunpack.c.l.b16 %v4419_v40 }
 0x506   :  { %v4821_v24 = vsel %vm4760_vm2, %v4695_v39, %v4820_v3 }
 0x507   :  { %v4822_v32 = vsel %vm4762_vm3, %v4696_v36, %v4821_v24 }
 0x508   :  { %v4823_v7 = vsel %vm4764_vm4, %v4697_v26, %v4822_v32 }
 0x509   :  { %v4824_v58 = vsel %vm4766_vm5, %v4698_v44, %v4823_v7 }
 0x50a   :  { %v4825_v11 = vsel %vm4768_vm6, %v4699_v25, %v4824_v58 }
 0x50b   :  { %v4879_v30 = vpack.c.b16 %v7286_v0, %v4825_v11 }
 0x50c   :  { %v5089_v34 = vpop.f32.mrf.mxu3 }
 0x50d   :  { %4967 = vmatmul.bf16.gmra.mxu2 %v4879_v30  ;;  %v5090_v53 = vadd.f32 %v7803_v51, %v5089_v34 }
 0x50f   :  { %v5129_v35 = vmax.f32 %v5090_v53, 0.0 }
 0x511   :  { %v7814_v47 = vadd.f32 %v7811_v21, %v5129_v35 }
 0x513   :  { %5165 = vmax.xlane.f32.xlu0 %v7814_v47 }
 0x514   :  { %v5091_v60 = vpop.f32.mrf.mxu3 }
 0x515   :  { %v5092_v45 = vadd.f32 %v7803_v51, %v5091_v60 }
 0x517   :  { %v5130_v9 = vmax.f32 %v5092_v45, 0.0 }
 0x519   :  { %v7819_v0 = vadd.f32 %v7811_v21, %v5130_v9 }
 0x51b   :  { %5167 = vmax.xlane.f32.xlu0 %v7819_v0 }
 0x51c   :  { %v5094_v28 = vpop.f32.mrf.mxu3 }
 0x51d   :  { %4972 = vmatmul.bf16.gmra.mxu2 %v4880_v18  ;;  %v5095_v57 = vadd.f32 %v7803_v51, %v5094_v28 }
 0x51f   :  { %v5131_v43 = vmax.f32 %v5095_v57, 0.0 }
 0x521   :  { %v7827_v54 = vadd.f32 %v7811_v21, %v5131_v43 }
 0x523   :  { %5169 = vmax.xlane.f32.xlu1 %v7827_v54 }
 0x524   :  { %v5096_v23 = vpop.f32.mrf.mxu3 }
 0x525   :  { %v5097_v5 = vadd.f32 %v7803_v51, %v5096_v23 }
 0x527   :  { %v5132_v61 = vmax.f32 %v5097_v5, 0.0 }
 0x529   :  { %v7832_v42 = vadd.f32 %v7811_v21, %v5132_v61 }
 0x52b   :  { %5171 = vmax.xlane.f32.xlu1 %v7832_v42 }
 0x52c   :  { %v5099_v62 = vpop.f32.mrf.mxu3 }
 0x52d   :  { %4977 = vmatmul.bf16.gmra.mxu2 %v4881_v46  ;;  %v5100_v55 = vadd.f32 %v7803_v51, %v5099_v62 }
 0x52f   :  { %v5133_v6 = vmax.f32 %v5100_v55, 0.0 }
 0x531   :  { %v7840_v18 = vadd.f32 %v7811_v21, %v5133_v6 }
 0x533   :  { %5173 = vmax.xlane.f32.xlu2 %v7840_v18 }
 0x534   :  { %v5101_v31 = vpop.f32.mrf.mxu3 }
 0x535   :  { %v5102_v12 = vadd.f32 %v7803_v51, %v5101_v31 }
 0x537   :  { %v5134_v41 = vmax.f32 %v5102_v12, 0.0 }
 0x539   :  { %v7845_v17 = vadd.f32 %v7811_v21, %v5134_v41 }
 0x53b   :  { %5175 = vmax.xlane.f32.xlu2 %v7845_v17 }
 0x53d   :  { %4982 = vmatmul.bf16.gmra.mxu2 %v4882_v1 }
 0x54c   :  { %v4963_v27 = vpop.f32.mrf.mxu2 }
 0x54d   :  { %v4964_v20 = vadd.f32 %v7746_v14, %v4963_v27 }
 0x54f   :  { %v4994_v49 = vmax.f32 %v4964_v20, 0.0 }
 0x554   :  { %v4965_v46 = vpop.f32.mrf.mxu2 }
 0x555   :  { %v4966_v8 = vadd.f32 %v7746_v14, %v4965_v46 }
 0x557   :  { %v4995_v29 = vmax.f32 %v4966_v8, 0.0 }
 0x559   :  { %v5007_v10 = vpack.c.bf16 %v4995_v29, %v4994_v49 }
 0x55b   :  { %5103 = vmatmul.bf16.gmra.mxu3 %v5007_v10 }
 0x590   :  { %v4968_v59 = vpop.f32.mrf.mxu2 }
 0x591   :  { %v4969_v16 = vadd.f32 %v7746_v14, %v4968_v59  ;;  %v5166_v59 = vpop.xlane.xlu0 %5165 }
 0x593   :  { %v4996_v22 = vmax.f32 %v4969_v16, 0.0 }
 0x596   :  { %v5170_v29 = vpop.xlane.xlu1 %5169 }
 0x598   :  { %v4970_v38 = vpop.f32.mrf.mxu2 }
 0x599   :  { %v4971_v56 = vadd.f32 %v7746_v14, %v4970_v38  ;;  %v7894_v38 = vsub.f32 %v7814_v47, %v5166_v59 }
 0x59b   :  { %v4997_v50 = vmax.f32 %v4971_v56, 0.0 }
 0x59d   :  { %v5008_v19 = vpack.c.bf16 %v4997_v50, %v4996_v22 }
 0x59f   :  { %5108 = vmatmul.bf16.gmra.mxu3 %v5008_v19  ;;  %v5213_v19 = vmul.f32 1.442695, %v7894_v38 }
 0x5a0   :  { %v4973_v37 = vpop.f32.mrf.mxu2 }
 0x5a1   :  { %v4974_v1 = vadd.f32 %v7746_v14, %v4973_v37  ;;  %v5172_v37 = vpop.xlane.xlu1 %5171  ;;  %6831 = vpow2.f32 %v5213_v19 }
 0x5a3   :  { %v4998_v2 = vmax.f32 %v4974_v1, 0.0 }
 0x5a8   :  { %v4975_v15 = vpop.f32.mrf.mxu2 }
 0x5a9   :  { %v4976_v13 = vadd.f32 %v7746_v14, %v4975_v15  ;;  %v5168_v15 = vpop.xlane.xlu0 %5167 }
 0x5aa   :  { %v7906_v47 = vsub.f32 %v7819_v0, %v5168_v15 }
 0x5ab   :  { %v4999_v48 = vmax.f32 %v4976_v13, 0.0  ;;  %v7903_v13 = vsub.f32 %v7832_v42, %v5172_v37  ;;  %v7915_v42 = vsub.f32 %v7827_v54, %v5170_v29 }
 0x5ad   :  { %v5009_v52 = vpack.c.bf16 %v4999_v48, %v4998_v2 }
 0x5af   :  { %5113 = vmatmul.bf16.gmra.mxu3 %v5009_v52  ;;  %v5174_v52 = vpop.xlane.xlu2 %5173 }
 0x5b0   :  { %v4978_v40 = vpop.f32.mrf.mxu2 }
 0x5b1   :  { %v4979_v33 = vadd.f32 %v7746_v14, %v4978_v40 }
 0x5b3   :  { %v5000_v63 = vmax.f32 %v4979_v33, 0.0  ;;  %v5219_v33 = vmul.f32 1.442695, %v7903_v13 }
 0x5b5   :  { %6833 = vpow2.f32 %v5219_v33 }
 0x5b8   :  { %v4980_v4 = vpop.f32.mrf.mxu2 }
 0x5b9   :  { %v4981_v39 = vadd.f32 %v7746_v14, %v4980_v4  ;;  %v5215_v4 = vmul.f32 1.442695, %v7906_v47 }
 0x5bb   :  { %v5001_v36 = vmax.f32 %v4981_v39, 0.0  ;;  %6835 = vpow2.f32 %v5215_v4 }
 0x5bd   :  { %v5010_v3 = vpack.c.bf16 %v5001_v36, %v5000_v63  ;;  %v6832_v63 = vpop.eup %6831 }
 0x5bf   :  { %5118 = vmatmul.bf16.gmra.mxu3 %v5010_v3 }
 0x5c0   :  { %v4983_v26 = vpop.f32.mrf.mxu2 }
 0x5c1   :  { %v4984_v24 = vadd.f32 %v7746_v14, %v4983_v26  ;;  %v7921_v26 = vsub.f32 %v7840_v18, %v5174_v52 }
 0x5c3   :  { %v5002_v25 = vmax.f32 %v4984_v24, 0.0  ;;  %v5221_v54 = vmul.f32 1.442695, %v7921_v26 }
 0x5c8   :  { %v4985_v44 = vpop.f32.mrf.mxu2 }
 0x5c9   :  { %v4986_v32 = vadd.f32 %v7746_v14, %v4985_v44  ;;  %v5217_v44 = vmul.f32 1.442695, %v7915_v42 }
 0x5cb   :  { %v5003_v7 = vmax.f32 %v4986_v32, 0.0  ;;  %6837 = vpow2.f32 %v5217_v44 }
 0x5cd   :  { %v5011_v58 = vpack.c.bf16 %v5003_v7, %v5002_v25  ;;  %v5176_v7 = vpop.xlane.xlu2 %5175 }
 0x5cf   :  { %5123 = vmatmul.bf16.gmra.mxu3 %v5011_v58 }
 0x5de   :  { %v5104_v11 = vpop.f32.mrf.mxu3 }
 0x5df   :  { %v5105_v30 = vadd.f32 %v7803_v51, %v5104_v11  ;;  %v6834_v11 = vpop.eup %6833 }
 0x5e1   :  { %v5135_v34 = vmax.f32 %v5105_v30, 0.0 }
 0x5e3   :  { %v5155_v53 = vadd.f32 %v7811_v21, %v5135_v34  ;;  %v6836_v34 = vpop.eup %6835 }
 0x5e5   :  { %5177 = vmax.xlane.f32.xlu0 %v5155_v53 }
 0x5e6   :  { %v5106_v35 = vpop.f32.mrf.mxu3 }
 0x5e7   :  { %v5107_v60 = vadd.f32 %v7803_v51, %v5106_v35 }
 0x5e9   :  { %v5136_v45 = vmax.f32 %v5107_v60, 0.0 }
 0x5eb   :  { %v7865_v9 = vadd.f32 %v7811_v21, %v5136_v45 }
 0x5ed   :  { %5179 = vmax.xlane.f32.xlu1 %v7865_v9 }
 0x622   :  { %v5109_v14 = vpop.f32.mrf.mxu3 }
 0x623   :  { %v5110_v28 = vadd.f32 %v7803_v51, %v5109_v14 }
 0x625   :  { %v5137_v57 = vmax.f32 %v5110_v28, 0.0 }
 0x627   :  { %v7870_v43 = vadd.f32 %v7811_v21, %v5137_v57 }
 0x629   :  { %5181 = vmax.xlane.f32.xlu2 %v7870_v43 }
 0x62a   :  { %v5111_v23 = vpop.f32.mrf.mxu3 }
 0x62b   :  { %v5112_v5 = vadd.f32 %v7803_v51, %v5111_v23 }
 0x62d   :  { %v5138_v61 = vmax.f32 %v5112_v5, 0.0 }
 0x62f   :  { %v7875_v62 = vadd.f32 %v7811_v21, %v5138_v61 }
 0x631   :  { %5183 = vmax.xlane.f32.xlu0 %v7875_v62 }
 0x632   :  { %v5114_v55 = vpop.f32.mrf.mxu3 }
 0x633   :  { %v5115_v6 = vadd.f32 %v7803_v51, %v5114_v55 }
 0x635   :  { %v5139_v31 = vmax.f32 %v5115_v6, 0.0 }
 0x637   :  { %v7880_v12 = vadd.f32 %v7811_v21, %v5139_v31 }
 0x639   :  { %5185 = vmax.xlane.f32.xlu1 %v7880_v12 }
 0x63a   :  { %v5116_v41 = vpop.f32.mrf.mxu3 }
 0x63b   :  { %v5117_v27 = vadd.f32 %v7803_v51, %v5116_v41 }
 0x63d   :  { %v5140_v20 = vmax.f32 %v5117_v27, 0.0 }
 0x63f   :  { %v7885_v46 = vadd.f32 %v7811_v21, %v5140_v20 }
 0x641   :  { %5187 = vmax.xlane.f32.xlu2 %v7885_v46 }
 0x642   :  { %v5119_v8 = vpop.f32.mrf.mxu3 }
 0x643   :  { %v5120_v49 = vadd.f32 %v7803_v51, %v5119_v8 }
 0x645   :  { %v5141_v10 = vmax.f32 %v5120_v49, 0.0 }
 0x647   :  { %v7890_v16 = vadd.f32 %v7811_v21, %v5141_v10 }
 0x649   :  { %5189 = vmax.xlane.f32.xlu0 %v7890_v16 }
 0x64a   :  { %v5121_v56 = vpop.f32.mrf.mxu3 }
 0x64b   :  { %v5122_v22 = vadd.f32 %v7803_v51, %v5121_v56 }
 0x64d   :  { %v5142_v50 = vmax.f32 %v5122_v22, 0.0 }
 0x64f   :  { %v7899_v1 = vadd.f32 %v7811_v21, %v5142_v50 }
 0x651   :  { %5191 = vmax.xlane.f32.xlu1 %v7899_v1 }
 0x652   :  { %v5124_v2 = vpop.f32.mrf.mxu3 }
 0x653   :  { %v5125_v48 = vadd.f32 %v7803_v51, %v5124_v2 }
 0x655   :  { %v5143_v40 = vmax.f32 %v5125_v48, 0.0 }
 0x657   :  { %v7912_v39 = vadd.f32 %v7811_v21, %v5143_v40 }
 0x658   :  { %v5178_v36 = vpop.xlane.xlu0 %5177 }
 0x659   :  { %5193 = vmax.xlane.f32.xlu2 %v7912_v39  ;;  %5245 = vadd.xlane.f32.xlu1 %v6832_v63  ;;  %v7918_v0 = vsub.f32 %v5155_v53, %v5178_v36 }
 0x65a   :  { %v5126_v3 = vpop.f32.mrf.mxu3 }
 0x65b   :  { %v5127_v24 = vadd.f32 %v7803_v51, %v5126_v3  ;;  %v5225_v25 = vmul.f32 1.442695, %v7918_v0  ;;  %v7932_v51 = vsub.f32 %v7845_v17, %v5176_v7 }
 0x65d   :  { %v5144_v32 = vmax.f32 %v5127_v24, 0.0  ;;  %6839 = vpow2.f32 %v5225_v25  ;;  %v5223_v53 = vmul.f32 1.442695, %v7932_v51 }
 0x65e   :  { %6841 = vpow2.f32 %v5221_v54 }
 0x65f   :  { %v7928_v58 = vadd.f32 %v7811_v21, %v5144_v32  ;;  %v6838_v21 = vpop.eup %6837  ;;  %6843 = vpow2.f32 %v5223_v53 }
 0x660   :  { %v5180_v30 = vpop.xlane.xlu1 %5179 }
 0x661   :  { %5195 = vmax.xlane.f32.xlu0 %v7928_v58  ;;  %5251 = vadd.xlane.f32.xlu1 %v6834_v11  ;;  %v7935_v18 = vsub.f32 %v7865_v9, %v5180_v30 }
 0x662   :  { %5247 = vadd.xlane.f32.xlu2 %v6836_v34 }
 0x663   :  { %v5227_v35 = vmul.f32 1.442695, %v7935_v18  ;;  %v6840_v60 = vpop.eup %6839 }
 0x664   :  { %v6842_v45 = vpop.eup %6841 }
 0x665   :  { %6845 = vpow2.f32 %v5227_v35  ;;  %v6844_v17 = vpop.eup %6843 }
 0x669   :  { %5249 = vadd.xlane.f32.xlu0 %v6838_v21  ;;  %5257 = vadd.xlane.f32.xlu1 %v6840_v60 }
 0x66a   :  { %5253 = vadd.xlane.f32.xlu2 %v6842_v45 }
 0x66b   :  { %v6846_v14 = vpop.eup %6845 }
 0x671   :  { %5255 = vadd.xlane.f32.xlu0 %v6844_v17 }
 0x672   :  { %5259 = vadd.xlane.f32.xlu2 %v6846_v14 }
 0x69c   :  { %v5182_v28 = vpop.xlane.xlu2 %5181 }
 0x69d   :  { %v7940_v9 = vsub.f32 %v7870_v43, %v5182_v28 }
 0x69f   :  { %v5229_v57 = vmul.f32 1.442695, %v7940_v9 }
 0x6a1   :  { %6847 = vpow2.f32 %v5229_v57 }
 0x6a4   :  { %v5184_v23 = vpop.xlane.xlu0 %5183 }
 0x6a5   :  { %v7944_v5 = vsub.f32 %v7875_v62, %v5184_v23 }
 0x6a7   :  { %v6848_v61 = vpop.eup %6847  ;;  %v5231_v55 = vmul.f32 1.442695, %v7944_v5 }
 0x6a8   :  { %5261 = vadd.xlane.f32.xlu0 %v6848_v61 }
 0x6a9   :  { %6849 = vpow2.f32 %v5231_v55 }
 0x6ac   :  { %v5186_v6 = vpop.xlane.xlu1 %5185 }
 0x6ad   :  { %v7948_v31 = vsub.f32 %v7880_v12, %v5186_v6 }
 0x6af   :  { %v6850_v41 = vpop.eup %6849  ;;  %v5233_v43 = vmul.f32 1.442695, %v7948_v31 }
 0x6b0   :  { %5263 = vadd.xlane.f32.xlu1 %v6850_v41 }
 0x6b1   :  { %6851 = vpow2.f32 %v5233_v43 }
 0x6b4   :  { %v5188_v27 = vpop.xlane.xlu2 %5187 }
 0x6b5   :  { %v7952_v20 = vsub.f32 %v7885_v46, %v5188_v27 }
 0x6b7   :  { %v6852_v62 = vpop.eup %6851  ;;  %v5235_v8 = vmul.f32 1.442695, %v7952_v20 }
 0x6b8   :  { %5265 = vadd.xlane.f32.xlu2 %v6852_v62 }
 0x6b9   :  { %6853 = vpow2.f32 %v5235_v8 }
 0x6bc   :  { %v5190_v49 = vpop.xlane.xlu0 %5189 }
 0x6bd   :  { %v7956_v29 = vsub.f32 %v7890_v16, %v5190_v49 }
 0x6bf   :  { %v6854_v12 = vpop.eup %6853  ;;  %v5237_v10 = vmul.f32 1.442695, %v7956_v29 }
 0x6c0   :  { %5267 = vadd.xlane.f32.xlu0 %v6854_v12 }
 0x6c1   :  { %6855 = vpow2.f32 %v5237_v10 }
 0x6c4   :  { %v5192_v59 = vpop.xlane.xlu1 %5191 }
 0x6c5   :  { %v7960_v56 = vsub.f32 %v7899_v1, %v5192_v59 }
 0x6c7   :  { %v6856_v46 = vpop.eup %6855  ;;  %v5239_v22 = vmul.f32 1.442695, %v7960_v56 }
 0x6c8   :  { %5269 = vadd.xlane.f32.xlu1 %v6856_v46 }
 0x6c9   :  { %6857 = vpow2.f32 %v5239_v22 }
 0x6cc   :  { %v5194_v50 = vpop.xlane.xlu2 %5193  ;;  %v5246_v19 = vpop.xlane.xlu1 %5245 }
 0x6cd   :  { %v7964_v37 = vsub.f32 %v7912_v39, %v5194_v50  ;;  %6859 = vlog2.f32 %v5246_v19 }
 0x6cf   :  { %v6858_v16 = vpop.eup %6857  ;;  %v5241_v15 = vmul.f32 1.442695, %v7964_v37 }
 0x6d0   :  { %5271 = vadd.xlane.f32.xlu2 %v6858_v16 }
 0x6d1   :  { %6861 = vpow2.f32 %v5241_v15 }
 0x6d3   :  { %v6860_v2 = vpop.eup %6859 }
 0x6d4   :  { %v5278_v48 = vmul.f32 0.6931472, %v6860_v2  ;;  %v5252_v1 = vpop.xlane.xlu1 %5251  ;;  %v5196_v52 = vpop.xlane.xlu0 %5195 }
 0x6d5   :  { %6863 = vlog2.f32 %v5252_v1  ;;  %v5248_v40 = vpop.xlane.xlu2 %5247  ;;  %v7968_v33 = vsub.f32 %v7928_v58, %v5196_v52 }
 0x6d6   :  { %v5309_v4 = vsub.f32 %v7894_v38, %v5278_v48  ;;  %6865 = vlog2.f32 %v5248_v40 }
 0x6d7   :  { %v6862_v39 = vpop.eup %6861  ;;  %v5243_v63 = vmul.f32 1.442695, %v7968_v33 }
 0x6d8   :  { %5325 = vst [vmem:[#allocation11] sm:$0xff] %v5309_v4  ;;  %5273 = vadd.xlane.f32.xlu0 %v6862_v39 }
 0x6d9   :  { %6867 = vpow2.f32 %v5243_v63 }
 0x6db   :  { %v6864_v36 = vpop.eup %6863 }
 0x6dc   :  { %v6866_v3 = vpop.eup %6865  ;;  %v5284_v24 = vmul.f32 0.6931472, %v6864_v36  ;;  %v5258_v44 = vpop.xlane.xlu1 %5257 }
 0x6dd   :  { %v5250_v32 = vpop.xlane.xlu0 %5249  ;;  %v5280_v25 = vmul.f32 0.6931472, %v6866_v3  ;;  %v5254_v54 = vpop.xlane.xlu2 %5253  ;;  %6869 = vlog2.f32 %v5258_v44 }
 0x6de   :  { %v5312_v7 = vsub.f32 %v7903_v13, %v5284_v24  ;;  %6871 = vlog2.f32 %v5254_v54 }
 0x6df   :  { %v6868_v58 = vpop.eup %6867  ;;  %v5310_v38 = vsub.f32 %v7906_v47, %v5280_v25  ;;  %6873 = vlog2.f32 %v5250_v32 }
 0x6e0   :  { %5328 = vst [vmem:[#allocation11 + $0x18] sm:$0xff] %v5312_v7  ;;  %5275 = vadd.xlane.f32.xlu1 %v6868_v58 }
 0x6e1   :  { %5326 = vst [vmem:[#allocation11 + $0x8] sm:$0xff] %v5310_v38 }
 0x6e3   :  { %v6870_v11 = vpop.eup %6869 }
 0x6e4   :  { %v6872_v30 = vpop.eup %6871  ;;  %v5290_v34 = vmul.f32 0.6931472, %v6870_v11 }
 0x6e5   :  { %v5256_v53 = vpop.xlane.xlu0 %5255  ;;  %v6874_v21 = vpop.eup %6873  ;;  %v5286_v35 = vmul.f32 0.6931472, %v6872_v30 }
 0x6e6   :  { %v5260_v60 = vpop.xlane.xlu2 %5259  ;;  %6875 = vlog2.f32 %v5256_v53  ;;  %v5315_v45 = vsub.f32 %v7918_v0, %v5290_v34  ;;  %v5282_v17 = vmul.f32 0.6931472, %v6874_v21 }
 0x6e7   :  { %6877 = vlog2.f32 %v5260_v60  ;;  %v5313_v13 = vsub.f32 %v7921_v26, %v5286_v35 }
 0x6e8   :  { %5331 = vst [vmem:[#allocation11 + $0x30] sm:$0xff] %v5315_v45  ;;  %v5311_v47 = vsub.f32 %v7915_v42, %v5282_v17 }
 0x6e9   :  { %5329 = vst [vmem:[#allocation11 + $0x20] sm:$0xff] %v5313_v13 }
 0x6ea   :  { %5327 = vst [vmem:[#allocation11 + $0x10] sm:$0xff] %v5311_v47 }
 0x6ec   :  { %v6876_v14 = vpop.eup %6875 }
 0x6ed   :  { %v6878_v28 = vpop.eup %6877  ;;  %v5288_v57 = vmul.f32 0.6931472, %v6876_v14 }
 0x6ee   :  { %v5292_v23 = vmul.f32 0.6931472, %v6878_v28 }
 0x6ef   :  { %v5314_v61 = vsub.f32 %v7932_v51, %v5288_v57 }
 0x6f0   :  { %v5316_v55 = vsub.f32 %v7935_v18, %v5292_v23 }
 0x6f1   :  { %5330 = vst [vmem:[#allocation11 + $0x28] sm:$0xff] %v5314_v61 }
 0x6f2   :  { %5332 = vst [vmem:[#allocation11 + $0x38] sm:$0xff] %v5316_v55 }
 0x71b   :  { %v5262_v0 = vpop.xlane.xlu0 %5261 }
 0x71c   :  { %6879 = vlog2.f32 %v5262_v0 }
 0x722   :  { %v6880_v6 = vpop.eup %6879 }
 0x723   :  { %v5294_v41 = vmul.f32 0.6931472, %v6880_v6  ;;  %v5264_v26 = vpop.xlane.xlu1 %5263 }
 0x724   :  { %6881 = vlog2.f32 %v5264_v26 }
 0x725   :  { %v5317_v42 = vsub.f32 %v7940_v9, %v5294_v41 }
 0x727   :  { %5333 = vst [vmem:[#allocation11 + $0x40] sm:$0xff] %v5317_v42 }
 0x72a   :  { %v6882_v43 = vpop.eup %6881 }
 0x72b   :  { %v5296_v27 = vmul.f32 0.6931472, %v6882_v43  ;;  %v5266_v62 = vpop.xlane.xlu2 %5265 }
 0x72c   :  { %6883 = vlog2.f32 %v5266_v62 }
 0x72d   :  { %v5318_v8 = vsub.f32 %v7944_v5, %v5296_v27 }
 0x72f   :  { %5334 = vst [vmem:[#allocation11 + $0x48] sm:$0xff] %v5318_v8 }
 0x732   :  { %v6884_v51 = vpop.eup %6883 }
 0x733   :  { %v5298_v18 = vmul.f32 0.6931472, %v6884_v51  ;;  %v5268_v49 = vpop.xlane.xlu0 %5267 }
 0x734   :  { %6885 = vlog2.f32 %v5268_v49 }
 0x735   :  { %v5319_v12 = vsub.f32 %v7948_v31, %v5298_v18 }
 0x737   :  { %5335 = vst [vmem:[#allocation11 + $0x50] sm:$0xff] %v5319_v12 }
 0x73a   :  { %v6886_v10 = vpop.eup %6885 }
 0x73b   :  { %v5300_v59 = vmul.f32 0.6931472, %v6886_v10  ;;  %v5270_v46 = vpop.xlane.xlu1 %5269 }
 0x73c   :  { %6887 = vlog2.f32 %v5270_v46 }
 0x73d   :  { %v5320_v9 = vsub.f32 %v7952_v20, %v5300_v59 }
 0x73f   :  { %5336 = vst [vmem:[#allocation11 + $0x58] sm:$0xff] %v5320_v9 }
 0x742   :  { %v6888_v22 = vpop.eup %6887 }
 0x743   :  { %v5302_v50 = vmul.f32 0.6931472, %v6888_v22  ;;  %v5272_v19 = vpop.xlane.xlu2 %5271 }
 0x744   :  { %6889 = vlog2.f32 %v5272_v19 }
 0x745   :  { %v5321_v5 = vsub.f32 %v7956_v29, %v5302_v50 }
 0x747   :  { %5337 = vst [vmem:[#allocation11 + $0x60] sm:$0xff] %v5321_v5 }
 0x74a   :  { %v6890_v16 = vpop.eup %6889 }
 0x74b   :  { %v5304_v15 = vmul.f32 0.6931472, %v6890_v16  ;;  %v5274_v2 = vpop.xlane.xlu0 %5273 }
 0x74c   :  { %6891 = vlog2.f32 %v5274_v2 }
 0x74d   :  { %v5322_v31 = vsub.f32 %v7960_v56, %v5304_v15 }
 0x74f   :  { %5338 = vst [vmem:[#allocation11 + $0x68] sm:$0xff] %v5322_v31 }
 0x752   :  { %v6892_v48 = vpop.eup %6891 }
 0x753   :  { %v5306_v1 = vmul.f32 0.6931472, %v6892_v48  ;;  %v5276_v52 = vpop.xlane.xlu1 %5275 }
 0x754   :  { %6893 = vlog2.f32 %v5276_v52 }
 0x755   :  { %v5323_v20 = vsub.f32 %v7964_v37, %v5306_v1 }
 0x757   :  { %5339 = vst [vmem:[#allocation11 + $0x70] sm:$0xff] %v5323_v20 }
 0x75a   :  { %v6894_v40 = vpop.eup %6893 }
 0x75b   :  { %v5308_v29 = vmul.f32 0.6931472, %v6894_v40 }
 0x75d   :  { %v5324_v4 = vsub.f32 %v7968_v33, %v5308_v29 }
 0x75f   :  { %5340 = vst [vmem:[#allocation11 + $0x78] sm:$0xff] %v5324_v4 }
 0x760   :  { %5353 = dma.vmem_to_hbm [thread:$0]  %s5346_s7, 2048, %s5348_s14, [#allocation4], %s7064_s23, %s7064_s23, %s7065_s24  }
 0x761   :  { %7057 = dma.done.wait [#allocation4], 2048  }
 0x762   :  { %7058 = vsyncadd [#allocation4], 4294965248 }
 0x763   :  { %5358 = vsyncpa [#allocation3], 1 }
 0x764   :  { %5359 = vsyncpa [#allocation6], 1 }
 0x765   :  { %5360 = vsyncpa [#allocation9], 1 }
 0x766   :  { %5361 = vsyncpa [#allocation4], 1 }

</bundles_post_ra>
